<compile_context>
chip_gen: v7x
topology: tpu7x:2x2x1
jax: 0.10.0
libtpu: 0.0.40
codegen_flags: <defaults>
</compile_context>

<pallas_src>
import functools

import jax
import jax.numpy as jnp
from jax.experimental import pallas as pl
from jax.experimental.pallas import tpu as pltpu

EPS = 1e-5
EXPANSION = 1                        # BasicBlock expansion
LANES = 128                          # vreg lane width
VMEM_LIMIT = 48 * 1024 * 1024        # explicit scoped-VMEM cap (v7x-safe)


def _round_up(x, m):
    return ((x + m - 1) // m) * m


def _pick_tile(dim, candidates):
    for c in candidates:
        if dim % c == 0:
            return c
    return dim


# ----------------------------- Pallas kernels -----------------------------

def _gemm_bn_kernel(*refs, apply_relu, has_res):
    """Tiled GEMM + folded BN (+ residual) (+ ReLU).

    grid = (M//tm, N//tn, K//tk); K is the reduction axis (last).  Partial
    products accumulate in a f32 VMEM scratch; scale/bias/residual/ReLU are
    applied once in the k == last epilogue, then a single cast/store.
    """
    if has_res:
        a_ref, b_ref, scale_ref, bias_ref, res_ref, o_ref, acc_ref = refs
    else:
        a_ref, b_ref, scale_ref, bias_ref, o_ref, acc_ref = refs
        res_ref = None

    kk = pl.program_id(2)

    @pl.when(kk == 0)
    def _():
        acc_ref[...] = jnp.zeros_like(acc_ref)

    acc_ref[...] += jnp.dot(a_ref[...], b_ref[...],
                            preferred_element_type=jnp.float32)

    @pl.when(kk == pl.num_programs(2) - 1)
    def _():
        out = acc_ref[...] * scale_ref[...] + bias_ref[...]
        if has_res:
            out = out + res_ref[...].astype(jnp.float32)
        if apply_relu:
            out = jnp.maximum(out, 0.0)
        o_ref[...] = out.astype(o_ref.dtype)


def _maxpool_kernel(e0_ref, e1_ref, e2_ref, o0_ref, o1_ref, o2_ref, out_ref):
    """3x3 / stride 2 / pad 1 max-pool of one (batch, output-row) tile.

    e*/o* refs are the even / odd W-phase rows of the padded input at
    padded-H offsets 2y, 2y+1, 2y+2; window position 2x+d maps onto
    E[x], O[x], E[x+1].
    """
    ow = out_ref.shape[2]

    def row_max(e_ref, o_ref):
        e = e_ref[...]
        o = o_ref[...]
        return jnp.maximum(jnp.maximum(e[:, :, :ow, :], e[:, :, 1:ow + 1, :]),
                           o[:, :, :ow, :])

    m = jnp.maximum(row_max(e0_ref, o0_ref), row_max(e1_ref, o1_ref))
    out_ref[...] = jnp.maximum(m, row_max(e2_ref, o2_ref))


# ------------------------------ fused ops ---------------------------------

def _im2col(x_nhwc, k, s):
    """k*k shifted (strided) slabs of the zero-padded NHWC activation."""
    n, h, w, c = x_nhwc.shape
    p = (k - 1) // 2
    xp = jnp.pad(x_nhwc, ((0, 0), (p, p), (p, p), (0, 0)))
    oh = (h + 2 * p - k) // s + 1
    ow = (w + 2 * p - k) // s + 1
    slabs = []
    for di in range(k):
        for dj in range(k):
            slabs.append(jax.lax.slice(
                xp, (0, di, dj, 0),
                (n, di + s * (oh - 1) + 1, dj + s * (ow - 1) + 1, c),
                (1, s, s, 1)))
    return slabs, (n, oh, ow, c)


def fused_conv_bn(x_nhwc, cp, k, s, apply_relu=True, residual_nhwc=None):
    """Conv2d(k, s, pad=(k-1)//2, bias=False) + BN (+residual) (+ReLU).

    x_nhwc is a bf16 NHWC activation (channels possibly zero-padded).
    Returns a bf16 NHWC activation with Cout padded to a multiple of 128.
    """
    n, h, w, c_stored = x_nhwc.shape
    cout, cin_true, kh, kw = cp['w'].shape
    coutp = _round_up(cout, LANES)

    # --- patch matrix A : (M, K) bf16 ------------------------------------
    # TODO(synk): fold the kh*kw taps into the K grid so A never hits HBM.
    slabs, (n, oh, ow, _) = _im2col(x_nhwc, k, s)
    cols = jnp.stack(slabs, axis=3)                 # (n, oh, ow, k*k, c)
    m = n * oh * ow
    kdim = k * k * c_stored
    kp = _round_up(kdim, LANES)

    tm = min(256, _round_up(m, 8))
    mp = _round_up(m, tm)
    tn = _pick_tile(coutp, (256, 128))
    tk = _pick_tile(kp, (512, 384, 256, 128))

    a = cols.reshape(m, kdim)
    if mp != m or kp != kdim:
        a = jnp.pad(a, ((0, mp - m), (0, kp - kdim)))
    a = a.astype(jnp.bfloat16)

    # --- weight matrix B : (K, Coutp) bf16 --------------------------------
    wt = jnp.transpose(cp['w'], (2, 3, 1, 0))       # (kh, kw, cin, cout)
    wt = jnp.pad(wt, ((0, 0), (0, 0),
                      (0, c_stored - cin_true), (0, coutp - cout)))
    b = wt.reshape(kdim, coutp)
    if kp != kdim:
        b = jnp.pad(b, ((0, kp - kdim), (0, 0)))
    b = b.astype(jnp.bfloat16)

    # --- folded BN (inference); padded channels get scale = bias = 0 ------
    inv_std = jax.lax.rsqrt(cp['var'] + EPS)
    scale_v = cp['gamma'] * inv_std
    bias_v = cp['beta'] - cp['mean'] * scale_v
    scale = jnp.zeros((1, coutp), jnp.float32).at[0, :cout].set(scale_v)
    bias = jnp.zeros((1, coutp), jnp.float32).at[0, :cout].set(bias_v)

    has_res = residual_nhwc is not None
    operands = [a, b, scale, bias]
    in_specs = [
        pl.BlockSpec((tm, tk), lambda i, j, r: (i, r)),
        pl.BlockSpec((tk, tn), lambda i, j, r: (r, j)),
        pl.BlockSpec((1, tn), lambda i, j, r: (0, j)),
        pl.BlockSpec((1, tn), lambda i, j, r: (0, j)),
    ]
    if has_res:
        res = residual_nhwc.reshape(m, coutp)
        if mp != m:
            res = jnp.pad(res, ((0, mp - m), (0, 0)))
        operands.append(res.astype(jnp.bfloat16))
        in_specs.append(pl.BlockSpec((tm, tn), lambda i, j, r: (i, j)))

    grid = (mp // tm, coutp // tn, kp // tk)
    bytes_accessed = (a.size + b.size + mp * coutp) * 2 \
        + (scale.size + bias.size) * 4
    if has_res:
        bytes_accessed += mp * coutp * 2
    cost = pl.CostEstimate(flops=2 * mp * coutp * kp, transcendentals=0,
                           bytes_accessed=int(bytes_accessed))

    out = pl.pallas_call(
        functools.partial(_gemm_bn_kernel, apply_relu=apply_relu,
                          has_res=has_res),
        out_shape=jax.ShapeDtypeStruct((mp, coutp), jnp.bfloat16),
        grid=grid,
        in_specs=in_specs,
        out_specs=pl.BlockSpec((tm, tn), lambda i, j, r: (i, j)),
        scratch_shapes=[pltpu.VMEM((tm, tn), jnp.float32)],
        compiler_params=pltpu.CompilerParams(
            dimension_semantics=("parallel", "parallel", "arbitrary"),
            vmem_limit_bytes=VMEM_LIMIT),
        cost_estimate=cost,
    )(*operands)

    return out[:m].reshape(n, oh, ow, coutp)


def maxpool_3x3_s2(x_nhwc):
    """MaxPool2d(kernel=3, stride=2, padding=1) on a bf16 NHWC activation."""
    n, h, w, c = x_nhwc.shape
    oh = (h - 1) // 2 + 1
    ow = (w - 1) // 2 + 1
    neg = float(jnp.finfo(jnp.bfloat16).min)
    xp = jnp.pad(x_nhwc, ((0, 0), (1, 1), (1, 1), (0, 0)),
                 constant_values=neg)
    even = xp[:, :, 0::2, :]                        # padded W positions 0,2,..
    odd = xp[:, :, 1::2, :]                         # padded W positions 1,3,..
    owe = even.shape[2]
    owo = odd.shape[2]

    def spec(shift, width):
        return pl.BlockSpec(
            (1, 1, width, c),
            lambda ni, yi, _s=shift: (ni, 2 * yi + _s, 0, 0))

    in_specs = ([spec(r, owe) for r in range(3)]
                + [spec(r, owo) for r in range(3)])

    cost = pl.CostEstimate(
        flops=9 * n * oh * ow * c, transcendentals=0,
        bytes_accessed=int((3 * even.size + 3 * odd.size
                            + n * oh * ow * c) * 2))

    return pl.pallas_call(
        _maxpool_kernel,
        out_shape=jax.ShapeDtypeStruct((n, oh, ow, c), x_nhwc.dtype),
        grid=(n, oh),
        in_specs=in_specs,
        out_specs=pl.BlockSpec((1, 1, ow, c), lambda ni, yi: (ni, yi, 0, 0)),
        compiler_params=pltpu.CompilerParams(
            dimension_semantics=("parallel", "parallel"),
            vmem_limit_bytes=VMEM_LIMIT),
        cost_estimate=cost,
    )(even, even, even, odd, odd, odd)


# --------------------------- parameter building ----------------------------

def init_conv_bn(key, cin, cout, k):
    kw, kg, kb, km, kv = jax.random.split(key, 5)
    fan_in = cin * k * k
    return dict(
        w=jax.random.normal(kw, (cout, cin, k, k), jnp.float32)
        * (2.0 / fan_in) ** 0.5,
        gamma=1.0 + 0.1 * jax.random.normal(kg, (cout,), jnp.float32),
        beta=0.1 * jax.random.normal(kb, (cout,), jnp.float32),
        mean=0.05 * jax.random.normal(km, (cout,), jnp.float32),
        var=1.0 + 0.1 * jnp.abs(jax.random.normal(kv, (cout,), jnp.float32)),
    )


def init_basic_block(key, cin, cout, stride):
    k1, k2, k3 = jax.random.split(key, 3)
    p = dict(conv1=init_conv_bn(k1, cin, cout, 3),
             conv2=init_conv_bn(k2, cout, cout, 3),
             stride=stride)
    if stride != 1 or cin != cout * EXPANSION:
        p['down'] = init_conv_bn(k3, cin, cout * EXPANSION, 1)
    return p


def init_resnet(key, depth):
    filters = [3, 64, 128, 256]
    keys = jax.random.split(key, 1 + sum(depth))
    ki = 0
    params = {'p1': init_conv_bn(keys[ki], filters[0], filters[1], 7)}
    ki += 1
    p2 = []
    for i in range(depth[0]):
        cin = filters[1] if i == 0 else EXPANSION * filters[1]
        p2.append(init_basic_block(keys[ki], cin, filters[1], 1))
        ki += 1
    p3 = []
    for i in range(depth[1]):
        if i == 0:
            p3.append(init_basic_block(keys[ki], EXPANSION * filters[1],
                                       filters[2], 2))
        else:
            p3.append(init_basic_block(keys[ki], EXPANSION * filters[2],
                                       filters[2], 1))
        ki += 1
    p4 = []
    for i in range(depth[2]):
        if i == 0:
            p4.append(init_basic_block(keys[ki], EXPANSION * filters[2],
                                       filters[3], 2))
        else:
            p4.append(init_basic_block(keys[ki], EXPANSION * filters[3],
                                       filters[3], 1))
        ki += 1
    params['p2'] = p2
    params['p3'] = p3
    params['p4'] = p4
    return params


# ------------------------------ forward pass -------------------------------

def basic_block_forward(x, bp):
    s = bp['stride']
    out = fused_conv_bn(x, bp['conv1'], k=3, s=s, apply_relu=True)
    if 'down' in bp:
        identity = fused_conv_bn(x, bp['down'], k=1, s=s, apply_relu=False)
    else:
        identity = x
    # relu(bn2(conv2(out)) + identity), all fused into the GEMM epilogue
    return fused_conv_bn(out, bp['conv2'], k=3, s=1, apply_relu=True,
                         residual_nhwc=identity)


def resnet_forward(x_nchw, params):
    # NCHW -> NHWC bf16 once at the boundary; stay NHWC (channel-padded to
    # 128 multiples) for the whole network.
    x = jnp.transpose(x_nchw, (0, 2, 3, 1)).astype(jnp.bfloat16)
    h = fused_conv_bn(x, params['p1'], k=7, s=2, apply_relu=True)
    h = maxpool_3x3_s2(h)
    for bp in params['p2']:
        h = basic_block_forward(h, bp)
    for bp in params['p3']:
        h = basic_block_forward(h, bp)
    p3 = h
    for bp in params['p4']:
        h = basic_block_forward(h, bp)
    p4 = h

    def to_nchw(t, c_true):
        return jnp.transpose(t[..., :c_true], (0, 3, 1, 2)).astype(jnp.float32)

    c3 = EXPANSION * params['p3'][-1]['conv2']['w'].shape[0]
    c4 = EXPANSION * params['p4'][-1]['conv2']['w'].shape[0]
    return [to_nchw(p3, c3), to_nchw(p4, c4)]


# ---------------------------------- main -----------------------------------

if __name__ == "__main__":
    key = jax.random.PRNGKey(0)
    k_param, k_x = jax.random.split(key)

    depth = (2, 2, 2)
    params = init_resnet(k_param, depth)

    # small NCHW input consistent with filters[0] = 3 input channels
    x = jax.random.normal(k_x, (2, 3, 16, 16), jnp.float32)

    fwd = jax.jit(lambda inp: resnet_forward(inp, params))
    p3, p4 = jax.block_until_ready(fwd(x))

    assert p3.shape == (2, 128, 2, 2), p3.shape
    assert p4.shape == (2, 256, 1, 1), p4.shape
    assert bool(jnp.all(jnp.isfinite(p3))) and bool(jnp.all(jnp.isfinite(p4)))
    print("KERNEL_OK")
</pallas_src>

<mosaic_0001>
module attributes {stable_mosaic.version = 11 : i64} {
  func.func @_gemm_bn_kernel(%arg0: i32, %arg1: i32, %arg2: i32, %arg3: memref<128x256xbf16, #tpu.memory_space<vmem>>, %arg4: memref<256x128xbf16, #tpu.memory_space<vmem>>, %arg5: memref<1x128xf32, #tpu.memory_space<vmem>>, %arg6: memref<1x128xf32, #tpu.memory_space<vmem>>, %arg7: memref<128x128xbf16, #tpu.memory_space<vmem>>, %arg8: memref<128x128xf32, #tpu.memory_space<vmem>>) attributes {dimension_semantics = [#tpu.dimension_semantics<parallel>, #tpu.dimension_semantics<parallel>, #tpu.dimension_semantics<arbitrary>], iteration_bounds = array<i64: 1, 1, 1>, scalar_prefetch = 0 : i64, scratch_operands = 1 : i64, tpu.core_type = #tpu.core_type<tc>, window_params = [{transform_indices = @transform_0, window_bounds = array<i64: 128, 256>}, {transform_indices = @transform_1, window_bounds = array<i64: 256, 128>}, {transform_indices = @transform_2, window_bounds = array<i64: 1, 128>}, {transform_indices = @transform_3, window_bounds = array<i64: 1, 128>}, {transform_indices = @transform_4, window_bounds = array<i64: 128, 128>}]} {
    %c0_i32 = arith.constant 0 : i32
    %0 = arith.cmpi eq, %arg2, %c0_i32 : i32
    %1 = arith.extui %0 : i1 to i32
    %c0_i32_0 = arith.constant 0 : i32
    %2 = arith.cmpi ne, %1, %c0_i32_0 : i32
    scf.if %2 {
      %cst_10 = arith.constant 0.000000e+00 : f32
      %12 = vector.broadcast %cst_10 : f32 to vector<128x128xf32>
      %c0_11 = arith.constant 0 : index
      %c0_12 = arith.constant 0 : index
      %13 = vector.load %arg8[%c0_11, %c0_12] : memref<128x128xf32, #tpu.memory_space<vmem>>, vector<128x128xf32>
      tpu.vector_store %arg8[%c0_11, %c0_12], %12 {strides = array<i32>} : memref<128x128xf32, #tpu.memory_space<vmem>>, vector<128x128xf32>,
    } else {
    }
    %c0 = arith.constant 0 : index
    %c0_1 = arith.constant 0 : index
    %3 = vector.load %arg8[%c0, %c0_1] : memref<128x128xf32, #tpu.memory_space<vmem>>, vector<128x128xf32>
    %c0_2 = arith.constant 0 : index
    %c0_3 = arith.constant 0 : index
    %4 = vector.load %arg3[%c0_2, %c0_3] : memref<128x256xbf16, #tpu.memory_space<vmem>>, vector<128x256xbf16>
    %c0_4 = arith.constant 0 : index
    %c0_5 = arith.constant 0 : index
    %5 = vector.load %arg4[%c0_4, %c0_5] : memref<256x128xbf16, #tpu.memory_space<vmem>>, vector<256x128xbf16>
    %cst = arith.constant dense<0.000000e+00> : vector<128x128xf32>
    %6 = tpu.matmul %4, %5, %cst {dimension_numbers = #tpu.dot_dimension_numbers<[1], [0], [0], [1], [0, 0, 1, 1], [], []>} : vector<128x256xbf16>, vector<256x128xbf16>, vector<128x128xf32> -> vector<128x128xf32>
    %7 = arith.addf %3, %6 : vector<128x128xf32>
    %c0_6 = arith.constant 0 : index
    %c0_7 = arith.constant 0 : index
    %8 = vector.load %arg8[%c0_6, %c0_7] : memref<128x128xf32, #tpu.memory_space<vmem>>, vector<128x128xf32>
    tpu.vector_store %arg8[%c0_6, %c0_7], %7 {strides = array<i32>} : memref<128x128xf32, #tpu.memory_space<vmem>>, vector<128x128xf32>,
    %c0_i32_8 = arith.constant 0 : i32
    %9 = arith.cmpi eq, %arg2, %c0_i32_8 : i32
    %10 = arith.extui %9 : i1 to i32
    %c0_i32_9 = arith.constant 0 : i32
    %11 = arith.cmpi ne, %10, %c0_i32_9 : i32
    scf.if %11 {
      %c0_10 = arith.constant 0 : index
      %c0_11 = arith.constant 0 : index
      %12 = vector.load %arg8[%c0_10, %c0_11] : memref<128x128xf32, #tpu.memory_space<vmem>>, vector<128x128xf32>
      %c0_12 = arith.constant 0 : index
      %c0_13 = arith.constant 0 : index
      %13 = vector.load %arg5[%c0_12, %c0_13] : memref<1x128xf32, #tpu.memory_space<vmem>>, vector<1x128xf32>
      %14 = vector.broadcast %13 : vector<1x128xf32> to vector<128x128xf32>
      %15 = arith.mulf %12, %14 : vector<128x128xf32>
      %c0_14 = arith.constant 0 : index
      %c0_15 = arith.constant 0 : index
      %16 = vector.load %arg6[%c0_14, %c0_15] : memref<1x128xf32, #tpu.memory_space<vmem>>, vector<1x128xf32>
      %17 = vector.broadcast %16 : vector<1x128xf32> to vector<128x128xf32>
      %18 = arith.addf %15, %17 : vector<128x128xf32>
      %cst_16 = arith.constant 0.000000e+00 : f32
      %19 = vector.broadcast %cst_16 : f32 to vector<128x128xf32>
      %20 = arith.maximumf %18, %19 : vector<128x128xf32>
      %21 = arith.truncf %20 : vector<128x128xf32> to vector<128x128xbf16>
      %c0_17 = arith.constant 0 : index
      %c0_18 = arith.constant 0 : index
      %22 = vector.load %arg7[%c0_17, %c0_18] : memref<128x128xbf16, #tpu.memory_space<vmem>>, vector<128x128xbf16>
      tpu.vector_store %arg7[%c0_17, %c0_18], %21 {strides = array<i32>} : memref<128x128xbf16, #tpu.memory_space<vmem>>, vector<128x128xbf16>,
    } else {
    }
    return
  }
  func.func @transform_0(%arg0: i32, %arg1: i32, %arg2: i32) -> (i32, i32) {
    %c0_i32 = arith.constant 0 : i32
    return %arg0, %arg2 : i32, i32
  }
  func.func @transform_1(%arg0: i32, %arg1: i32, %arg2: i32) -> (i32, i32) {
    %c0_i32 = arith.constant 0 : i32
    return %arg2, %arg1 : i32, i32
  }
  func.func @transform_2(%arg0: i32, %arg1: i32, %arg2: i32) -> (i32, i32) {
    %c0_i32 = arith.constant 0 : i32
    %c0_i32_0 = arith.constant 0 : i32
    return %c0_i32, %arg1 : i32, i32
  }
  func.func @transform_3(%arg0: i32, %arg1: i32, %arg2: i32) -> (i32, i32) {
    %c0_i32 = arith.constant 0 : i32
    %c0_i32_0 = arith.constant 0 : i32
    return %c0_i32, %arg1 : i32, i32
  }
  func.func @transform_4(%arg0: i32, %arg1: i32, %arg2: i32) -> (i32, i32) {
    %c0_i32 = arith.constant 0 : i32
    return %arg0, %arg1 : i32, i32
  }
}

module attributes {stable_mosaic.version = 11 : i64} {
  func.func @_maxpool_kernel(%arg0: i32, %arg1: i32, %arg2: memref<1x1x5x128xbf16, #tpu.memory_space<vmem>>, %arg3: memref<1x1x5x128xbf16, #tpu.memory_space<vmem>>, %arg4: memref<1x1x5x128xbf16, #tpu.memory_space<vmem>>, %arg5: memref<1x1x5x128xbf16, #tpu.memory_space<vmem>>, %arg6: memref<1x1x5x128xbf16, #tpu.memory_space<vmem>>, %arg7: memref<1x1x5x128xbf16, #tpu.memory_space<vmem>>, %arg8: memref<1x1x4x128xbf16, #tpu.memory_space<vmem>>) attributes {dimension_semantics = [#tpu.dimension_semantics<parallel>, #tpu.dimension_semantics<parallel>], iteration_bounds = array<i64: 2, 4>, scalar_prefetch = 0 : i64, scratch_operands = 0 : i64, tpu.core_type = #tpu.core_type<tc>, window_params = [{transform_indices = @transform_0, window_bounds = array<i64: 1, 1, 5, 128>}, {transform_indices = @transform_1, window_bounds = array<i64: 1, 1, 5, 128>}, {transform_indices = @transform_2, window_bounds = array<i64: 1, 1, 5, 128>}, {transform_indices = @transform_3, window_bounds = array<i64: 1, 1, 5, 128>}, {transform_indices = @transform_4, window_bounds = array<i64: 1, 1, 5, 128>}, {transform_indices = @transform_5, window_bounds = array<i64: 1, 1, 5, 128>}, {transform_indices = @transform_6, window_bounds = array<i64: 1, 1, 4, 128>}]} {
    %c0 = arith.constant 0 : index
    %c0_0 = arith.constant 0 : index
    %c0_1 = arith.constant 0 : index
    %c0_2 = arith.constant 0 : index
    %0 = vector.load %arg2[%c0, %c0_0, %c0_1, %c0_2] : memref<1x1x5x128xbf16, #tpu.memory_space<vmem>>, vector<1x1x5x128xbf16>
    %c0_3 = arith.constant 0 : index
    %c0_4 = arith.constant 0 : index
    %c0_5 = arith.constant 0 : index
    %c0_6 = arith.constant 0 : index
    %1 = vector.load %arg5[%c0_3, %c0_4, %c0_5, %c0_6] : memref<1x1x5x128xbf16, #tpu.memory_space<vmem>>, vector<1x1x5x128xbf16>
    %2 = vector.extract_strided_slice %0 {offsets = [0, 0, 0, 0], sizes = [1, 1, 4, 128], strides = [1, 1, 1, 1]} : vector<1x1x5x128xbf16> to vector<1x1x4x128xbf16>
    %3 = vector.extract_strided_slice %0 {offsets = [0, 0, 1, 0], sizes = [1, 1, 4, 128], strides = [1, 1, 1, 1]} : vector<1x1x5x128xbf16> to vector<1x1x4x128xbf16>
    %4 = arith.maximumf %2, %3 : vector<1x1x4x128xbf16>
    %5 = vector.extract_strided_slice %1 {offsets = [0, 0, 0, 0], sizes = [1, 1, 4, 128], strides = [1, 1, 1, 1]} : vector<1x1x5x128xbf16> to vector<1x1x4x128xbf16>
    %6 = arith.maximumf %4, %5 : vector<1x1x4x128xbf16>
    %c0_7 = arith.constant 0 : index
    %c0_8 = arith.constant 0 : index
    %c0_9 = arith.constant 0 : index
    %c0_10 = arith.constant 0 : index
    %7 = vector.load %arg3[%c0_7, %c0_8, %c0_9, %c0_10] : memref<1x1x5x128xbf16, #tpu.memory_space<vmem>>, vector<1x1x5x128xbf16>
    %c0_11 = arith.constant 0 : index
    %c0_12 = arith.constant 0 : index
    %c0_13 = arith.constant 0 : index
    %c0_14 = arith.constant 0 : index
    %8 = vector.load %arg6[%c0_11, %c0_12, %c0_13, %c0_14] : memref<1x1x5x128xbf16, #tpu.memory_space<vmem>>, vector<1x1x5x128xbf16>
    %9 = vector.extract_strided_slice %7 {offsets = [0, 0, 0, 0], sizes = [1, 1, 4, 128], strides = [1, 1, 1, 1]} : vector<1x1x5x128xbf16> to vector<1x1x4x128xbf16>
    %10 = vector.extract_strided_slice %7 {offsets = [0, 0, 1, 0], sizes = [1, 1, 4, 128], strides = [1, 1, 1, 1]} : vector<1x1x5x128xbf16> to vector<1x1x4x128xbf16>
    %11 = arith.maximumf %9, %10 : vector<1x1x4x128xbf16>
    %12 = vector.extract_strided_slice %8 {offsets = [0, 0, 0, 0], sizes = [1, 1, 4, 128], strides = [1, 1, 1, 1]} : vector<1x1x5x128xbf16> to vector<1x1x4x128xbf16>
    %13 = arith.maximumf %11, %12 : vector<1x1x4x128xbf16>
    %14 = arith.maximumf %6, %13 : vector<1x1x4x128xbf16>
    %c0_15 = arith.constant 0 : index
    %c0_16 = arith.constant 0 : index
    %c0_17 = arith.constant 0 : index
    %c0_18 = arith.constant 0 : index
    %15 = vector.load %arg4[%c0_15, %c0_16, %c0_17, %c0_18] : memref<1x1x5x128xbf16, #tpu.memory_space<vmem>>, vector<1x1x5x128xbf16>
    %c0_19 = arith.constant 0 : index
    %c0_20 = arith.constant 0 : index
    %c0_21 = arith.constant 0 : index
    %c0_22 = arith.constant 0 : index
    %16 = vector.load %arg7[%c0_19, %c0_20, %c0_21, %c0_22] : memref<1x1x5x128xbf16, #tpu.memory_space<vmem>>, vector<1x1x5x128xbf16>
    %17 = vector.extract_strided_slice %15 {offsets = [0, 0, 0, 0], sizes = [1, 1, 4, 128], strides = [1, 1, 1, 1]} : vector<1x1x5x128xbf16> to vector<1x1x4x128xbf16>
    %18 = vector.extract_strided_slice %15 {offsets = [0, 0, 1, 0], sizes = [1, 1, 4, 128], strides = [1, 1, 1, 1]} : vector<1x1x5x128xbf16> to vector<1x1x4x128xbf16>
    %19 = arith.maximumf %17, %18 : vector<1x1x4x128xbf16>
    %20 = vector.extract_strided_slice %16 {offsets = [0, 0, 0, 0], sizes = [1, 1, 4, 128], strides = [1, 1, 1, 1]} : vector<1x1x5x128xbf16> to vector<1x1x4x128xbf16>
    %21 = arith.maximumf %19, %20 : vector<1x1x4x128xbf16>
    %22 = arith.maximumf %14, %21 : vector<1x1x4x128xbf16>
    %c0_23 = arith.constant 0 : index
    %c0_24 = arith.constant 0 : index
    %c0_25 = arith.constant 0 : index
    %c0_26 = arith.constant 0 : index
    %23 = vector.load %arg8[%c0_23, %c0_24, %c0_25, %c0_26] : memref<1x1x4x128xbf16, #tpu.memory_space<vmem>>, vector<1x1x4x128xbf16>
    tpu.vector_store %arg8[%c0_23, %c0_24, %c0_25, %c0_26], %22 {strides = array<i32>} : memref<1x1x4x128xbf16, #tpu.memory_space<vmem>>, vector<1x1x4x128xbf16>,
    return
  }
  func.func @transform_0(%arg0: i32, %arg1: i32) -> (i32, i32, i32, i32) {
    %c2_i32 = arith.constant 2 : i32
    %0 = arith.muli %c2_i32, %arg1 : i32
    %c0_i32 = arith.constant 0 : i32
    %1 = arith.addi %0, %c0_i32 : i32
    %c0_i32_0 = arith.constant 0 : i32
    %c0_i32_1 = arith.constant 0 : i32
    %c0_i32_2 = arith.constant 0 : i32
    return %arg0, %1, %c0_i32_0, %c0_i32_1 : i32, i32, i32, i32
  }
  func.func @transform_1(%arg0: i32, %arg1: i32) -> (i32, i32, i32, i32) {
    %c2_i32 = arith.constant 2 : i32
    %0 = arith.muli %c2_i32, %arg1 : i32
    %c1_i32 = arith.constant 1 : i32
    %1 = arith.addi %0, %c1_i32 : i32
    %c0_i32 = arith.constant 0 : i32
    %c0_i32_0 = arith.constant 0 : i32
    %c0_i32_1 = arith.constant 0 : i32
    return %arg0, %1, %c0_i32, %c0_i32_0 : i32, i32, i32, i32
  }
  func.func @transform_2(%arg0: i32, %arg1: i32) -> (i32, i32, i32, i32) {
    %c2_i32 = arith.constant 2 : i32
    %0 = arith.muli %c2_i32, %arg1 : i32
    %c2_i32_0 = arith.constant 2 : i32
    %1 = arith.addi %0, %c2_i32_0 : i32
    %c0_i32 = arith.constant 0 : i32
    %c0_i32_1 = arith.constant 0 : i32
    %c0_i32_2 = arith.constant 0 : i32
    return %arg0, %1, %c0_i32, %c0_i32_1 : i32, i32, i32, i32
  }
  func.func @transform_3(%arg0: i32, %arg1: i32) -> (i32, i32, i32, i32) {
    %c2_i32 = arith.constant 2 : i32
    %0 = arith.muli %c2_i32, %arg1 : i32
    %c0_i32 = arith.constant 0 : i32
    %1 = arith.addi %0, %c0_i32 : i32
    %c0_i32_0 = arith.constant 0 : i32
    %c0_i32_1 = arith.constant 0 : i32
    %c0_i32_2 = arith.constant 0 : i32
    return %arg0, %1, %c0_i32_0, %c0_i32_1 : i32, i32, i32, i32
  }
  func.func @transform_4(%arg0: i32, %arg1: i32) -> (i32, i32, i32, i32) {
    %c2_i32 = arith.constant 2 : i32
    %0 = arith.muli %c2_i32, %arg1 : i32
    %c1_i32 = arith.constant 1 : i32
    %1 = arith.addi %0, %c1_i32 : i32
    %c0_i32 = arith.constant 0 : i32
    %c0_i32_0 = arith.constant 0 : i32
    %c0_i32_1 = arith.constant 0 : i32
    return %arg0, %1, %c0_i32, %c0_i32_0 : i32, i32, i32, i32
  }
  func.func @transform_5(%arg0: i32, %arg1: i32) -> (i32, i32, i32, i32) {
    %c2_i32 = arith.constant 2 : i32
    %0 = arith.muli %c2_i32, %arg1 : i32
    %c2_i32_0 = arith.constant 2 : i32
    %1 = arith.addi %0, %c2_i32_0 : i32
    %c0_i32 = arith.constant 0 : i32
    %c0_i32_1 = arith.constant 0 : i32
    %c0_i32_2 = arith.constant 0 : i32
    return %arg0, %1, %c0_i32, %c0_i32_1 : i32, i32, i32, i32
  }
  func.func @transform_6(%arg0: i32, %arg1: i32) -> (i32, i32, i32, i32) {
    %c0_i32 = arith.constant 0 : i32
    %c0_i32_0 = arith.constant 0 : i32
    %c0_i32_1 = arith.constant 0 : i32
    return %arg0, %arg1, %c0_i32, %c0_i32_0 : i32, i32, i32, i32
  }
}

module attributes {stable_mosaic.version = 11 : i64} {
  func.func @_gemm_bn_kernel(%arg0: i32, %arg1: i32, %arg2: i32, %arg3: memref<32x384xbf16, #tpu.memory_space<vmem>>, %arg4: memref<384x128xbf16, #tpu.memory_space<vmem>>, %arg5: memref<1x128xf32, #tpu.memory_space<vmem>>, %arg6: memref<1x128xf32, #tpu.memory_space<vmem>>, %arg7: memref<32x128xbf16, #tpu.memory_space<vmem>>, %arg8: memref<32x128xbf16, #tpu.memory_space<vmem>>, %arg9: memref<32x128xf32, #tpu.memory_space<vmem>>) attributes {dimension_semantics = [#tpu.dimension_semantics<parallel>, #tpu.dimension_semantics<parallel>, #tpu.dimension_semantics<arbitrary>], iteration_bounds = array<i64: 1, 1, 3>, scalar_prefetch = 0 : i64, scratch_operands = 1 : i64, tpu.core_type = #tpu.core_type<tc>, window_params = [{transform_indices = @transform_0, window_bounds = array<i64: 32, 384>}, {transform_indices = @transform_1, window_bounds = array<i64: 384, 128>}, {transform_indices = @transform_2, window_bounds = array<i64: 1, 128>}, {transform_indices = @transform_3, window_bounds = array<i64: 1, 128>}, {transform_indices = @transform_4, window_bounds = array<i64: 32, 128>}, {transform_indices = @transform_5, window_bounds = array<i64: 32, 128>}]} {
    %c0_i32 = arith.constant 0 : i32
    %0 = arith.cmpi eq, %arg2, %c0_i32 : i32
    %1 = arith.extui %0 : i1 to i32
    %c0_i32_0 = arith.constant 0 : i32
    %2 = arith.cmpi ne, %1, %c0_i32_0 : i32
    scf.if %2 {
      %cst_9 = arith.constant 0.000000e+00 : f32
      %12 = vector.broadcast %cst_9 : f32 to vector<32x128xf32>
      %c0_10 = arith.constant 0 : index
      %c0_11 = arith.constant 0 : index
      %13 = vector.load %arg9[%c0_10, %c0_11] : memref<32x128xf32, #tpu.memory_space<vmem>>, vector<32x128xf32>
      tpu.vector_store %arg9[%c0_10, %c0_11], %12 {strides = array<i32>} : memref<32x128xf32, #tpu.memory_space<vmem>>, vector<32x128xf32>,
    } else {
    }
    %c0 = arith.constant 0 : index
    %c0_1 = arith.constant 0 : index
    %3 = vector.load %arg9[%c0, %c0_1] : memref<32x128xf32, #tpu.memory_space<vmem>>, vector<32x128xf32>
    %c0_2 = arith.constant 0 : index
    %c0_3 = arith.constant 0 : index
    %4 = vector.load %arg3[%c0_2, %c0_3] : memref<32x384xbf16, #tpu.memory_space<vmem>>, vector<32x384xbf16>
    %c0_4 = arith.constant 0 : index
    %c0_5 = arith.constant 0 : index
    %5 = vector.load %arg4[%c0_4, %c0_5] : memref<384x128xbf16, #tpu.memory_space<vmem>>, vector<384x128xbf16>
    %cst = arith.constant dense<0.000000e+00> : vector<32x128xf32>
    %6 = tpu.matmul %4, %5, %cst {dimension_numbers = #tpu.dot_dimension_numbers<[1], [0], [0], [1], [0, 0, 1, 1], [], []>} : vector<32x384xbf16>, vector<384x128xbf16>, vector<32x128xf32> -> vector<32x128xf32>
    %7 = arith.addf %3, %6 : vector<32x128xf32>
    %c0_6 = arith.constant 0 : index
    %c0_7 = arith.constant 0 : index
    %8 = vector.load %arg9[%c0_6, %c0_7] : memref<32x128xf32, #tpu.memory_space<vmem>>, vector<32x128xf32>
    tpu.vector_store %arg9[%c0_6, %c0_7], %7 {strides = array<i32>} : memref<32x128xf32, #tpu.memory_space<vmem>>, vector<32x128xf32>,
    %c2_i32 = arith.constant 2 : i32
    %9 = arith.cmpi eq, %arg2, %c2_i32 : i32
    %10 = arith.extui %9 : i1 to i32
    %c0_i32_8 = arith.constant 0 : i32
    %11 = arith.cmpi ne, %10, %c0_i32_8 : i32
    scf.if %11 {
      %c0_9 = arith.constant 0 : index
      %c0_10 = arith.constant 0 : index
      %12 = vector.load %arg9[%c0_9, %c0_10] : memref<32x128xf32, #tpu.memory_space<vmem>>, vector<32x128xf32>
      %c0_11 = arith.constant 0 : index
      %c0_12 = arith.constant 0 : index
      %13 = vector.load %arg5[%c0_11, %c0_12] : memref<1x128xf32, #tpu.memory_space<vmem>>, vector<1x128xf32>
      %14 = vector.broadcast %13 : vector<1x128xf32> to vector<32x128xf32>
      %15 = arith.mulf %12, %14 : vector<32x128xf32>
      %c0_13 = arith.constant 0 : index
      %c0_14 = arith.constant 0 : index
      %16 = vector.load %arg6[%c0_13, %c0_14] : memref<1x128xf32, #tpu.memory_space<vmem>>, vector<1x128xf32>
      %17 = vector.broadcast %16 : vector<1x128xf32> to vector<32x128xf32>
      %18 = arith.addf %15, %17 : vector<32x128xf32>
      %c0_15 = arith.constant 0 : index
      %c0_16 = arith.constant 0 : index
      %19 = vector.load %arg7[%c0_15, %c0_16] : memref<32x128xbf16, #tpu.memory_space<vmem>>, vector<32x128xbf16>
      %20 = arith.extf %19 : vector<32x128xbf16> to vector<32x128xf32>
      %21 = arith.addf %18, %20 : vector<32x128xf32>
      %cst_17 = arith.constant 0.000000e+00 : f32
      %22 = vector.broadcast %cst_17 : f32 to vector<32x128xf32>
      %23 = arith.maximumf %21, %22 : vector<32x128xf32>
      %24 = arith.truncf %23 : vector<32x128xf32> to vector<32x128xbf16>
      %c0_18 = arith.constant 0 : index
      %c0_19 = arith.constant 0 : index
      %25 = vector.load %arg8[%c0_18, %c0_19] : memref<32x128xbf16, #tpu.memory_space<vmem>>, vector<32x128xbf16>
      tpu.vector_store %arg8[%c0_18, %c0_19], %24 {strides = array<i32>} : memref<32x128xbf16, #tpu.memory_space<vmem>>, vector<32x128xbf16>,
    } else {
    }
    return
  }
  func.func @transform_0(%arg0: i32, %arg1: i32, %arg2: i32) -> (i32, i32) {
    %c0_i32 = arith.constant 0 : i32
    return %arg0, %arg2 : i32, i32
  }
  func.func @transform_1(%arg0: i32, %arg1: i32, %arg2: i32) -> (i32, i32) {
    %c0_i32 = arith.constant 0 : i32
    return %arg2, %arg1 : i32, i32
  }
  func.func @transform_2(%arg0: i32, %arg1: i32, %arg2: i32) -> (i32, i32) {
    %c0_i32 = arith.constant 0 : i32
    %c0_i32_0 = arith.constant 0 : i32
    return %c0_i32, %arg1 : i32, i32
  }
  func.func @transform_3(%arg0: i32, %arg1: i32, %arg2: i32) -> (i32, i32) {
    %c0_i32 = arith.constant 0 : i32
    %c0_i32_0 = arith.constant 0 : i32
    return %c0_i32, %arg1 : i32, i32
  }
  func.func @transform_4(%arg0: i32, %arg1: i32, %arg2: i32) -> (i32, i32) {
    %c0_i32 = arith.constant 0 : i32
    return %arg0, %arg1 : i32, i32
  }
  func.func @transform_5(%arg0: i32, %arg1: i32, %arg2: i32) -> (i32, i32) {
    %c0_i32 = arith.constant 0 : i32
    return %arg0, %arg1 : i32, i32
  }
}

module attributes {stable_mosaic.version = 11 : i64} {
  func.func @_gemm_bn_kernel(%arg0: i32, %arg1: i32, %arg2: i32, %arg3: memref<32x384xbf16, #tpu.memory_space<vmem>>, %arg4: memref<384x128xbf16, #tpu.memory_space<vmem>>, %arg5: memref<1x128xf32, #tpu.memory_space<vmem>>, %arg6: memref<1x128xf32, #tpu.memory_space<vmem>>, %arg7: memref<32x128xbf16, #tpu.memory_space<vmem>>, %arg8: memref<32x128xf32, #tpu.memory_space<vmem>>) attributes {dimension_semantics = [#tpu.dimension_semantics<parallel>, #tpu.dimension_semantics<parallel>, #tpu.dimension_semantics<arbitrary>], iteration_bounds = array<i64: 1, 1, 3>, scalar_prefetch = 0 : i64, scratch_operands = 1 : i64, tpu.core_type = #tpu.core_type<tc>, window_params = [{transform_indices = @transform_0, window_bounds = array<i64: 32, 384>}, {transform_indices = @transform_1, window_bounds = array<i64: 384, 128>}, {transform_indices = @transform_2, window_bounds = array<i64: 1, 128>}, {transform_indices = @transform_3, window_bounds = array<i64: 1, 128>}, {transform_indices = @transform_4, window_bounds = array<i64: 32, 128>}]} {
    %c0_i32 = arith.constant 0 : i32
    %0 = arith.cmpi eq, %arg2, %c0_i32 : i32
    %1 = arith.extui %0 : i1 to i32
    %c0_i32_0 = arith.constant 0 : i32
    %2 = arith.cmpi ne, %1, %c0_i32_0 : i32
    scf.if %2 {
      %cst_9 = arith.constant 0.000000e+00 : f32
      %12 = vector.broadcast %cst_9 : f32 to vector<32x128xf32>
      %c0_10 = arith.constant 0 : index
      %c0_11 = arith.constant 0 : index
      %13 = vector.load %arg8[%c0_10, %c0_11] : memref<32x128xf32, #tpu.memory_space<vmem>>, vector<32x128xf32>
      tpu.vector_store %arg8[%c0_10, %c0_11], %12 {strides = array<i32>} : memref<32x128xf32, #tpu.memory_space<vmem>>, vector<32x128xf32>,
    } else {
    }
    %c0 = arith.constant 0 : index
    %c0_1 = arith.constant 0 : index
    %3 = vector.load %arg8[%c0, %c0_1] : memref<32x128xf32, #tpu.memory_space<vmem>>, vector<32x128xf32>
    %c0_2 = arith.constant 0 : index
    %c0_3 = arith.constant 0 : index
    %4 = vector.load %arg3[%c0_2, %c0_3] : memref<32x384xbf16, #tpu.memory_space<vmem>>, vector<32x384xbf16>
    %c0_4 = arith.constant 0 : index
    %c0_5 = arith.constant 0 : index
    %5 = vector.load %arg4[%c0_4, %c0_5] : memref<384x128xbf16, #tpu.memory_space<vmem>>, vector<384x128xbf16>
    %cst = arith.constant dense<0.000000e+00> : vector<32x128xf32>
    %6 = tpu.matmul %4, %5, %cst {dimension_numbers = #tpu.dot_dimension_numbers<[1], [0], [0], [1], [0, 0, 1, 1], [], []>} : vector<32x384xbf16>, vector<384x128xbf16>, vector<32x128xf32> -> vector<32x128xf32>
    %7 = arith.addf %3, %6 : vector<32x128xf32>
    %c0_6 = arith.constant 0 : index
    %c0_7 = arith.constant 0 : index
    %8 = vector.load %arg8[%c0_6, %c0_7] : memref<32x128xf32, #tpu.memory_space<vmem>>, vector<32x128xf32>
    tpu.vector_store %arg8[%c0_6, %c0_7], %7 {strides = array<i32>} : memref<32x128xf32, #tpu.memory_space<vmem>>, vector<32x128xf32>,
    %c2_i32 = arith.constant 2 : i32
    %9 = arith.cmpi eq, %arg2, %c2_i32 : i32
    %10 = arith.extui %9 : i1 to i32
    %c0_i32_8 = arith.constant 0 : i32
    %11 = arith.cmpi ne, %10, %c0_i32_8 : i32
    scf.if %11 {
      %c0_9 = arith.constant 0 : index
      %c0_10 = arith.constant 0 : index
      %12 = vector.load %arg8[%c0_9, %c0_10] : memref<32x128xf32, #tpu.memory_space<vmem>>, vector<32x128xf32>
      %c0_11 = arith.constant 0 : index
      %c0_12 = arith.constant 0 : index
      %13 = vector.load %arg5[%c0_11, %c0_12] : memref<1x128xf32, #tpu.memory_space<vmem>>, vector<1x128xf32>
      %14 = vector.broadcast %13 : vector<1x128xf32> to vector<32x128xf32>
      %15 = arith.mulf %12, %14 : vector<32x128xf32>
      %c0_13 = arith.constant 0 : index
      %c0_14 = arith.constant 0 : index
      %16 = vector.load %arg6[%c0_13, %c0_14] : memref<1x128xf32, #tpu.memory_space<vmem>>, vector<1x128xf32>
      %17 = vector.broadcast %16 : vector<1x128xf32> to vector<32x128xf32>
      %18 = arith.addf %15, %17 : vector<32x128xf32>
      %cst_15 = arith.constant 0.000000e+00 : f32
      %19 = vector.broadcast %cst_15 : f32 to vector<32x128xf32>
      %20 = arith.maximumf %18, %19 : vector<32x128xf32>
      %21 = arith.truncf %20 : vector<32x128xf32> to vector<32x128xbf16>
      %c0_16 = arith.constant 0 : index
      %c0_17 = arith.constant 0 : index
      %22 = vector.load %arg7[%c0_16, %c0_17] : memref<32x128xbf16, #tpu.memory_space<vmem>>, vector<32x128xbf16>
      tpu.vector_store %arg7[%c0_16, %c0_17], %21 {strides = array<i32>} : memref<32x128xbf16, #tpu.memory_space<vmem>>, vector<32x128xbf16>,
    } else {
    }
    return
  }
  func.func @transform_0(%arg0: i32, %arg1: i32, %arg2: i32) -> (i32, i32) {
    %c0_i32 = arith.constant 0 : i32
    return %arg0, %arg2 : i32, i32
  }
  func.func @transform_1(%arg0: i32, %arg1: i32, %arg2: i32) -> (i32, i32) {
    %c0_i32 = arith.constant 0 : i32
    return %arg2, %arg1 : i32, i32
  }
  func.func @transform_2(%arg0: i32, %arg1: i32, %arg2: i32) -> (i32, i32) {
    %c0_i32 = arith.constant 0 : i32
    %c0_i32_0 = arith.constant 0 : i32
    return %c0_i32, %arg1 : i32, i32
  }
  func.func @transform_3(%arg0: i32, %arg1: i32, %arg2: i32) -> (i32, i32) {
    %c0_i32 = arith.constant 0 : i32
    %c0_i32_0 = arith.constant 0 : i32
    return %c0_i32, %arg1 : i32, i32
  }
  func.func @transform_4(%arg0: i32, %arg1: i32, %arg2: i32) -> (i32, i32) {
    %c0_i32 = arith.constant 0 : i32
    return %arg0, %arg1 : i32, i32
  }
}

module attributes {stable_mosaic.version = 11 : i64} {
  func.func @_gemm_bn_kernel(%arg0: i32, %arg1: i32, %arg2: i32, %arg3: memref<8x384xbf16, #tpu.memory_space<vmem>>, %arg4: memref<384x128xbf16, #tpu.memory_space<vmem>>, %arg5: memref<1x128xf32, #tpu.memory_space<vmem>>, %arg6: memref<1x128xf32, #tpu.memory_space<vmem>>, %arg7: memref<8x128xbf16, #tpu.memory_space<vmem>>, %arg8: memref<8x128xf32, #tpu.memory_space<vmem>>) attributes {dimension_semantics = [#tpu.dimension_semantics<parallel>, #tpu.dimension_semantics<parallel>, #tpu.dimension_semantics<arbitrary>], iteration_bounds = array<i64: 1, 1, 3>, scalar_prefetch = 0 : i64, scratch_operands = 1 : i64, tpu.core_type = #tpu.core_type<tc>, window_params = [{transform_indices = @transform_0, window_bounds = array<i64: 8, 384>}, {transform_indices = @transform_1, window_bounds = array<i64: 384, 128>}, {transform_indices = @transform_2, window_bounds = array<i64: 1, 128>}, {transform_indices = @transform_3, window_bounds = array<i64: 1, 128>}, {transform_indices = @transform_4, window_bounds = array<i64: 8, 128>}]} {
    %c0_i32 = arith.constant 0 : i32
    %0 = arith.cmpi eq, %arg2, %c0_i32 : i32
    %1 = arith.extui %0 : i1 to i32
    %c0_i32_0 = arith.constant 0 : i32
    %2 = arith.cmpi ne, %1, %c0_i32_0 : i32
    scf.if %2 {
      %cst_9 = arith.constant 0.000000e+00 : f32
      %12 = vector.broadcast %cst_9 : f32 to vector<8x128xf32>
      %c0_10 = arith.constant 0 : index
      %c0_11 = arith.constant 0 : index
      %13 = vector.load %arg8[%c0_10, %c0_11] : memref<8x128xf32, #tpu.memory_space<vmem>>, vector<8x128xf32>
      tpu.vector_store %arg8[%c0_10, %c0_11], %12 {strides = array<i32>} : memref<8x128xf32, #tpu.memory_space<vmem>>, vector<8x128xf32>,
    } else {
    }
    %c0 = arith.constant 0 : index
    %c0_1 = arith.constant 0 : index
    %3 = vector.load %arg8[%c0, %c0_1] : memref<8x128xf32, #tpu.memory_space<vmem>>, vector<8x128xf32>
    %c0_2 = arith.constant 0 : index
    %c0_3 = arith.constant 0 : index
    %4 = vector.load %arg3[%c0_2, %c0_3] : memref<8x384xbf16, #tpu.memory_space<vmem>>, vector<8x384xbf16>
    %c0_4 = arith.constant 0 : index
    %c0_5 = arith.constant 0 : index
    %5 = vector.load %arg4[%c0_4, %c0_5] : memref<384x128xbf16, #tpu.memory_space<vmem>>, vector<384x128xbf16>
    %cst = arith.constant dense<0.000000e+00> : vector<8x128xf32>
    %6 = tpu.matmul %4, %5, %cst {dimension_numbers = #tpu.dot_dimension_numbers<[1], [0], [0], [1], [0, 0, 1, 1], [], []>} : vector<8x384xbf16>, vector<384x128xbf16>, vector<8x128xf32> -> vector<8x128xf32>
    %7 = arith.addf %3, %6 : vector<8x128xf32>
    %c0_6 = arith.constant 0 : index
    %c0_7 = arith.constant 0 : index
    %8 = vector.load %arg8[%c0_6, %c0_7] : memref<8x128xf32, #tpu.memory_space<vmem>>, vector<8x128xf32>
    tpu.vector_store %arg8[%c0_6, %c0_7], %7 {strides = array<i32>} : memref<8x128xf32, #tpu.memory_space<vmem>>, vector<8x128xf32>,
    %c2_i32 = arith.constant 2 : i32
    %9 = arith.cmpi eq, %arg2, %c2_i32 : i32
    %10 = arith.extui %9 : i1 to i32
    %c0_i32_8 = arith.constant 0 : i32
    %11 = arith.cmpi ne, %10, %c0_i32_8 : i32
    scf.if %11 {
      %c0_9 = arith.constant 0 : index
      %c0_10 = arith.constant 0 : index
      %12 = vector.load %arg8[%c0_9, %c0_10] : memref<8x128xf32, #tpu.memory_space<vmem>>, vector<8x128xf32>
      %c0_11 = arith.constant 0 : index
      %c0_12 = arith.constant 0 : index
      %13 = vector.load %arg5[%c0_11, %c0_12] : memref<1x128xf32, #tpu.memory_space<vmem>>, vector<1x128xf32>
      %14 = vector.broadcast %13 : vector<1x128xf32> to vector<8x128xf32>
      %15 = arith.mulf %12, %14 : vector<8x128xf32>
      %c0_13 = arith.constant 0 : index
      %c0_14 = arith.constant 0 : index
      %16 = vector.load %arg6[%c0_13, %c0_14] : memref<1x128xf32, #tpu.memory_space<vmem>>, vector<1x128xf32>
      %17 = vector.broadcast %16 : vector<1x128xf32> to vector<8x128xf32>
      %18 = arith.addf %15, %17 : vector<8x128xf32>
      %cst_15 = arith.constant 0.000000e+00 : f32
      %19 = vector.broadcast %cst_15 : f32 to vector<8x128xf32>
      %20 = arith.maximumf %18, %19 : vector<8x128xf32>
      %21 = arith.truncf %20 : vector<8x128xf32> to vector<8x128xbf16>
      %c0_16 = arith.constant 0 : index
      %c0_17 = arith.constant 0 : index
      %22 = vector.load %arg7[%c0_16, %c0_17] : memref<8x128xbf16, #tpu.memory_space<vmem>>, vector<8x128xbf16>
      tpu.vector_store %arg7[%c0_16, %c0_17], %21 {strides = array<i32>} : memref<8x128xbf16, #tpu.memory_space<vmem>>, vector<8x128xbf16>,
    } else {
    }
    return
  }
  func.func @transform_0(%arg0: i32, %arg1: i32, %arg2: i32) -> (i32, i32) {
    %c0_i32 = arith.constant 0 : i32
    return %arg0, %arg2 : i32, i32
  }
  func.func @transform_1(%arg0: i32, %arg1: i32, %arg2: i32) -> (i32, i32) {
    %c0_i32 = arith.constant 0 : i32
    return %arg2, %arg1 : i32, i32
  }
  func.func @transform_2(%arg0: i32, %arg1: i32, %arg2: i32) -> (i32, i32) {
    %c0_i32 = arith.constant 0 : i32
    %c0_i32_0 = arith.constant 0 : i32
    return %c0_i32, %arg1 : i32, i32
  }
  func.func @transform_3(%arg0: i32, %arg1: i32, %arg2: i32) -> (i32, i32) {
    %c0_i32 = arith.constant 0 : i32
    %c0_i32_0 = arith.constant 0 : i32
    return %c0_i32, %arg1 : i32, i32
  }
  func.func @transform_4(%arg0: i32, %arg1: i32, %arg2: i32) -> (i32, i32) {
    %c0_i32 = arith.constant 0 : i32
    return %arg0, %arg1 : i32, i32
  }
}

module attributes {stable_mosaic.version = 11 : i64} {
  func.func @_gemm_bn_kernel(%arg0: i32, %arg1: i32, %arg2: i32, %arg3: memref<8x384xbf16, #tpu.memory_space<vmem>>, %arg4: memref<384x128xbf16, #tpu.memory_space<vmem>>, %arg5: memref<1x128xf32, #tpu.memory_space<vmem>>, %arg6: memref<1x128xf32, #tpu.memory_space<vmem>>, %arg7: memref<8x128xbf16, #tpu.memory_space<vmem>>, %arg8: memref<8x128xbf16, #tpu.memory_space<vmem>>, %arg9: memref<8x128xf32, #tpu.memory_space<vmem>>) attributes {dimension_semantics = [#tpu.dimension_semantics<parallel>, #tpu.dimension_semantics<parallel>, #tpu.dimension_semantics<arbitrary>], iteration_bounds = array<i64: 1, 1, 3>, scalar_prefetch = 0 : i64, scratch_operands = 1 : i64, tpu.core_type = #tpu.core_type<tc>, window_params = [{transform_indices = @transform_0, window_bounds = array<i64: 8, 384>}, {transform_indices = @transform_1, window_bounds = array<i64: 384, 128>}, {transform_indices = @transform_2, window_bounds = array<i64: 1, 128>}, {transform_indices = @transform_3, window_bounds = array<i64: 1, 128>}, {transform_indices = @transform_4, window_bounds = array<i64: 8, 128>}, {transform_indices = @transform_5, window_bounds = array<i64: 8, 128>}]} {
    %c0_i32 = arith.constant 0 : i32
    %0 = arith.cmpi eq, %arg2, %c0_i32 : i32
    %1 = arith.extui %0 : i1 to i32
    %c0_i32_0 = arith.constant 0 : i32
    %2 = arith.cmpi ne, %1, %c0_i32_0 : i32
    scf.if %2 {
      %cst_9 = arith.constant 0.000000e+00 : f32
      %12 = vector.broadcast %cst_9 : f32 to vector<8x128xf32>
      %c0_10 = arith.constant 0 : index
      %c0_11 = arith.constant 0 : index
      %13 = vector.load %arg9[%c0_10, %c0_11] : memref<8x128xf32, #tpu.memory_space<vmem>>, vector<8x128xf32>
      tpu.vector_store %arg9[%c0_10, %c0_11], %12 {strides = array<i32>} : memref<8x128xf32, #tpu.memory_space<vmem>>, vector<8x128xf32>,
    } else {
    }
    %c0 = arith.constant 0 : index
    %c0_1 = arith.constant 0 : index
    %3 = vector.load %arg9[%c0, %c0_1] : memref<8x128xf32, #tpu.memory_space<vmem>>, vector<8x128xf32>
    %c0_2 = arith.constant 0 : index
    %c0_3 = arith.constant 0 : index
    %4 = vector.load %arg3[%c0_2, %c0_3] : memref<8x384xbf16, #tpu.memory_space<vmem>>, vector<8x384xbf16>
    %c0_4 = arith.constant 0 : index
    %c0_5 = arith.constant 0 : index
    %5 = vector.load %arg4[%c0_4, %c0_5] : memref<384x128xbf16, #tpu.memory_space<vmem>>, vector<384x128xbf16>
    %cst = arith.constant dense<0.000000e+00> : vector<8x128xf32>
    %6 = tpu.matmul %4, %5, %cst {dimension_numbers = #tpu.dot_dimension_numbers<[1], [0], [0], [1], [0, 0, 1, 1], [], []>} : vector<8x384xbf16>, vector<384x128xbf16>, vector<8x128xf32> -> vector<8x128xf32>
    %7 = arith.addf %3, %6 : vector<8x128xf32>
    %c0_6 = arith.constant 0 : index
    %c0_7 = arith.constant 0 : index
    %8 = vector.load %arg9[%c0_6, %c0_7] : memref<8x128xf32, #tpu.memory_space<vmem>>, vector<8x128xf32>
    tpu.vector_store %arg9[%c0_6, %c0_7], %7 {strides = array<i32>} : memref<8x128xf32, #tpu.memory_space<vmem>>, vector<8x128xf32>,
    %c2_i32 = arith.constant 2 : i32
    %9 = arith.cmpi eq, %arg2, %c2_i32 : i32
    %10 = arith.extui %9 : i1 to i32
    %c0_i32_8 = arith.constant 0 : i32
    %11 = arith.cmpi ne, %10, %c0_i32_8 : i32
    scf.if %11 {
      %c0_9 = arith.constant 0 : index
      %c0_10 = arith.constant 0 : index
      %12 = vector.load %arg9[%c0_9, %c0_10] : memref<8x128xf32, #tpu.memory_space<vmem>>, vector<8x128xf32>
      %c0_11 = arith.constant 0 : index
      %c0_12 = arith.constant 0 : index
      %13 = vector.load %arg5[%c0_11, %c0_12] : memref<1x128xf32, #tpu.memory_space<vmem>>, vector<1x128xf32>
      %14 = vector.broadcast %13 : vector<1x128xf32> to vector<8x128xf32>
      %15 = arith.mulf %12, %14 : vector<8x128xf32>
      %c0_13 = arith.constant 0 : index
      %c0_14 = arith.constant 0 : index
      %16 = vector.load %arg6[%c0_13, %c0_14] : memref<1x128xf32, #tpu.memory_space<vmem>>, vector<1x128xf32>
      %17 = vector.broadcast %16 : vector<1x128xf32> to vector<8x128xf32>
      %18 = arith.addf %15, %17 : vector<8x128xf32>
      %c0_15 = arith.constant 0 : index
      %c0_16 = arith.constant 0 : index
      %19 = vector.load %arg7[%c0_15, %c0_16] : memref<8x128xbf16, #tpu.memory_space<vmem>>, vector<8x128xbf16>
      %20 = arith.extf %19 : vector<8x128xbf16> to vector<8x128xf32>
      %21 = arith.addf %18, %20 : vector<8x128xf32>
      %cst_17 = arith.constant 0.000000e+00 : f32
      %22 = vector.broadcast %cst_17 : f32 to vector<8x128xf32>
      %23 = arith.maximumf %21, %22 : vector<8x128xf32>
      %24 = arith.truncf %23 : vector<8x128xf32> to vector<8x128xbf16>
      %c0_18 = arith.constant 0 : index
      %c0_19 = arith.constant 0 : index
      %25 = vector.load %arg8[%c0_18, %c0_19] : memref<8x128xbf16, #tpu.memory_space<vmem>>, vector<8x128xbf16>
      tpu.vector_store %arg8[%c0_18, %c0_19], %24 {strides = array<i32>} : memref<8x128xbf16, #tpu.memory_space<vmem>>, vector<8x128xbf16>,
    } else {
    }
    return
  }
  func.func @transform_0(%arg0: i32, %arg1: i32, %arg2: i32) -> (i32, i32) {
    %c0_i32 = arith.constant 0 : i32
    return %arg0, %arg2 : i32, i32
  }
  func.func @transform_1(%arg0: i32, %arg1: i32, %arg2: i32) -> (i32, i32) {
    %c0_i32 = arith.constant 0 : i32
    return %arg2, %arg1 : i32, i32
  }
  func.func @transform_2(%arg0: i32, %arg1: i32, %arg2: i32) -> (i32, i32) {
    %c0_i32 = arith.constant 0 : i32
    %c0_i32_0 = arith.constant 0 : i32
    return %c0_i32, %arg1 : i32, i32
  }
  func.func @transform_3(%arg0: i32, %arg1: i32, %arg2: i32) -> (i32, i32) {
    %c0_i32 = arith.constant 0 : i32
    %c0_i32_0 = arith.constant 0 : i32
    return %c0_i32, %arg1 : i32, i32
  }
  func.func @transform_4(%arg0: i32, %arg1: i32, %arg2: i32) -> (i32, i32) {
    %c0_i32 = arith.constant 0 : i32
    return %arg0, %arg1 : i32, i32
  }
  func.func @transform_5(%arg0: i32, %arg1: i32, %arg2: i32) -> (i32, i32) {
    %c0_i32 = arith.constant 0 : i32
    return %arg0, %arg1 : i32, i32
  }
}

module attributes {stable_mosaic.version = 11 : i64} {
  func.func @_gemm_bn_kernel(%arg0: i32, %arg1: i32, %arg2: i32, %arg3: memref<8x128xbf16, #tpu.memory_space<vmem>>, %arg4: memref<128x128xbf16, #tpu.memory_space<vmem>>, %arg5: memref<1x128xf32, #tpu.memory_space<vmem>>, %arg6: memref<1x128xf32, #tpu.memory_space<vmem>>, %arg7: memref<8x128xbf16, #tpu.memory_space<vmem>>, %arg8: memref<8x128xf32, #tpu.memory_space<vmem>>) attributes {dimension_semantics = [#tpu.dimension_semantics<parallel>, #tpu.dimension_semantics<parallel>, #tpu.dimension_semantics<arbitrary>], iteration_bounds = array<i64: 1, 1, 1>, scalar_prefetch = 0 : i64, scratch_operands = 1 : i64, tpu.core_type = #tpu.core_type<tc>, window_params = [{transform_indices = @transform_0, window_bounds = array<i64: 8, 128>}, {transform_indices = @transform_1, window_bounds = array<i64: 128, 128>}, {transform_indices = @transform_2, window_bounds = array<i64: 1, 128>}, {transform_indices = @transform_3, window_bounds = array<i64: 1, 128>}, {transform_indices = @transform_4, window_bounds = array<i64: 8, 128>}]} {
    %c0_i32 = arith.constant 0 : i32
    %0 = arith.cmpi eq, %arg2, %c0_i32 : i32
    %1 = arith.extui %0 : i1 to i32
    %c0_i32_0 = arith.constant 0 : i32
    %2 = arith.cmpi ne, %1, %c0_i32_0 : i32
    scf.if %2 {
      %cst_10 = arith.constant 0.000000e+00 : f32
      %12 = vector.broadcast %cst_10 : f32 to vector<8x128xf32>
      %c0_11 = arith.constant 0 : index
      %c0_12 = arith.constant 0 : index
      %13 = vector.load %arg8[%c0_11, %c0_12] : memref<8x128xf32, #tpu.memory_space<vmem>>, vector<8x128xf32>
      tpu.vector_store %arg8[%c0_11, %c0_12], %12 {strides = array<i32>} : memref<8x128xf32, #tpu.memory_space<vmem>>, vector<8x128xf32>,
    } else {
    }
    %c0 = arith.constant 0 : index
    %c0_1 = arith.constant 0 : index
    %3 = vector.load %arg8[%c0, %c0_1] : memref<8x128xf32, #tpu.memory_space<vmem>>, vector<8x128xf32>
    %c0_2 = arith.constant 0 : index
    %c0_3 = arith.constant 0 : index
    %4 = vector.load %arg3[%c0_2, %c0_3] : memref<8x128xbf16, #tpu.memory_space<vmem>>, vector<8x128xbf16>
    %c0_4 = arith.constant 0 : index
    %c0_5 = arith.constant 0 : index
    %5 = vector.load %arg4[%c0_4, %c0_5] : memref<128x128xbf16, #tpu.memory_space<vmem>>, vector<128x128xbf16>
    %cst = arith.constant dense<0.000000e+00> : vector<8x128xf32>
    %6 = tpu.matmul %4, %5, %cst {dimension_numbers = #tpu.dot_dimension_numbers<[1], [0], [0], [1], [0, 0, 1, 1], [], []>} : vector<8x128xbf16>, vector<128x128xbf16>, vector<8x128xf32> -> vector<8x128xf32>
    %7 = arith.addf %3, %6 : vector<8x128xf32>
    %c0_6 = arith.constant 0 : index
    %c0_7 = arith.constant 0 : index
    %8 = vector.load %arg8[%c0_6, %c0_7] : memref<8x128xf32, #tpu.memory_space<vmem>>, vector<8x128xf32>
    tpu.vector_store %arg8[%c0_6, %c0_7], %7 {strides = array<i32>} : memref<8x128xf32, #tpu.memory_space<vmem>>, vector<8x128xf32>,
    %c0_i32_8 = arith.constant 0 : i32
    %9 = arith.cmpi eq, %arg2, %c0_i32_8 : i32
    %10 = arith.extui %9 : i1 to i32
    %c0_i32_9 = arith.constant 0 : i32
    %11 = arith.cmpi ne, %10, %c0_i32_9 : i32
    scf.if %11 {
      %c0_10 = arith.constant 0 : index
      %c0_11 = arith.constant 0 : index
      %12 = vector.load %arg8[%c0_10, %c0_11] : memref<8x128xf32, #tpu.memory_space<vmem>>, vector<8x128xf32>
      %c0_12 = arith.constant 0 : index
      %c0_13 = arith.constant 0 : index
      %13 = vector.load %arg5[%c0_12, %c0_13] : memref<1x128xf32, #tpu.memory_space<vmem>>, vector<1x128xf32>
      %14 = vector.broadcast %13 : vector<1x128xf32> to vector<8x128xf32>
      %15 = arith.mulf %12, %14 : vector<8x128xf32>
      %c0_14 = arith.constant 0 : index
      %c0_15 = arith.constant 0 : index
      %16 = vector.load %arg6[%c0_14, %c0_15] : memref<1x128xf32, #tpu.memory_space<vmem>>, vector<1x128xf32>
      %17 = vector.broadcast %16 : vector<1x128xf32> to vector<8x128xf32>
      %18 = arith.addf %15, %17 : vector<8x128xf32>
      %19 = arith.truncf %18 : vector<8x128xf32> to vector<8x128xbf16>
      %c0_16 = arith.constant 0 : index
      %c0_17 = arith.constant 0 : index
      %20 = vector.load %arg7[%c0_16, %c0_17] : memref<8x128xbf16, #tpu.memory_space<vmem>>, vector<8x128xbf16>
      tpu.vector_store %arg7[%c0_16, %c0_17], %19 {strides = array<i32>} : memref<8x128xbf16, #tpu.memory_space<vmem>>, vector<8x128xbf16>,
    } else {
    }
    return
  }
  func.func @transform_0(%arg0: i32, %arg1: i32, %arg2: i32) -> (i32, i32) {
    %c0_i32 = arith.constant 0 : i32
    return %arg0, %arg2 : i32, i32
  }
  func.func @transform_1(%arg0: i32, %arg1: i32, %arg2: i32) -> (i32, i32) {
    %c0_i32 = arith.constant 0 : i32
    return %arg2, %arg1 : i32, i32
  }
  func.func @transform_2(%arg0: i32, %arg1: i32, %arg2: i32) -> (i32, i32) {
    %c0_i32 = arith.constant 0 : i32
    %c0_i32_0 = arith.constant 0 : i32
    return %c0_i32, %arg1 : i32, i32
  }
  func.func @transform_3(%arg0: i32, %arg1: i32, %arg2: i32) -> (i32, i32) {
    %c0_i32 = arith.constant 0 : i32
    %c0_i32_0 = arith.constant 0 : i32
    return %c0_i32, %arg1 : i32, i32
  }
  func.func @transform_4(%arg0: i32, %arg1: i32, %arg2: i32) -> (i32, i32) {
    %c0_i32 = arith.constant 0 : i32
    return %arg0, %arg1 : i32, i32
  }
}

module attributes {stable_mosaic.version = 11 : i64} {
  func.func @_gemm_bn_kernel(%arg0: i32, %arg1: i32, %arg2: i32, %arg3: memref<8x384xbf16, #tpu.memory_space<vmem>>, %arg4: memref<384x256xbf16, #tpu.memory_space<vmem>>, %arg5: memref<1x256xf32, #tpu.memory_space<vmem>>, %arg6: memref<1x256xf32, #tpu.memory_space<vmem>>, %arg7: memref<8x256xbf16, #tpu.memory_space<vmem>>, %arg8: memref<8x256xf32, #tpu.memory_space<vmem>>) attributes {dimension_semantics = [#tpu.dimension_semantics<parallel>, #tpu.dimension_semantics<parallel>, #tpu.dimension_semantics<arbitrary>], iteration_bounds = array<i64: 1, 1, 3>, scalar_prefetch = 0 : i64, scratch_operands = 1 : i64, tpu.core_type = #tpu.core_type<tc>, window_params = [{transform_indices = @transform_0, window_bounds = array<i64: 8, 384>}, {transform_indices = @transform_1, window_bounds = array<i64: 384, 256>}, {transform_indices = @transform_2, window_bounds = array<i64: 1, 256>}, {transform_indices = @transform_3, window_bounds = array<i64: 1, 256>}, {transform_indices = @transform_4, window_bounds = array<i64: 8, 256>}]} {
    %c0_i32 = arith.constant 0 : i32
    %0 = arith.cmpi eq, %arg2, %c0_i32 : i32
    %1 = arith.extui %0 : i1 to i32
    %c0_i32_0 = arith.constant 0 : i32
    %2 = arith.cmpi ne, %1, %c0_i32_0 : i32
    scf.if %2 {
      %cst_9 = arith.constant 0.000000e+00 : f32
      %12 = vector.broadcast %cst_9 : f32 to vector<8x256xf32>
      %c0_10 = arith.constant 0 : index
      %c0_11 = arith.constant 0 : index
      %13 = vector.load %arg8[%c0_10, %c0_11] : memref<8x256xf32, #tpu.memory_space<vmem>>, vector<8x256xf32>
      tpu.vector_store %arg8[%c0_10, %c0_11], %12 {strides = array<i32>} : memref<8x256xf32, #tpu.memory_space<vmem>>, vector<8x256xf32>,
    } else {
    }
    %c0 = arith.constant 0 : index
    %c0_1 = arith.constant 0 : index
    %3 = vector.load %arg8[%c0, %c0_1] : memref<8x256xf32, #tpu.memory_space<vmem>>, vector<8x256xf32>
    %c0_2 = arith.constant 0 : index
    %c0_3 = arith.constant 0 : index
    %4 = vector.load %arg3[%c0_2, %c0_3] : memref<8x384xbf16, #tpu.memory_space<vmem>>, vector<8x384xbf16>
    %c0_4 = arith.constant 0 : index
    %c0_5 = arith.constant 0 : index
    %5 = vector.load %arg4[%c0_4, %c0_5] : memref<384x256xbf16, #tpu.memory_space<vmem>>, vector<384x256xbf16>
    %cst = arith.constant dense<0.000000e+00> : vector<8x256xf32>
    %6 = tpu.matmul %4, %5, %cst {dimension_numbers = #tpu.dot_dimension_numbers<[1], [0], [0], [1], [0, 0, 1, 1], [], []>} : vector<8x384xbf16>, vector<384x256xbf16>, vector<8x256xf32> -> vector<8x256xf32>
    %7 = arith.addf %3, %6 : vector<8x256xf32>
    %c0_6 = arith.constant 0 : index
    %c0_7 = arith.constant 0 : index
    %8 = vector.load %arg8[%c0_6, %c0_7] : memref<8x256xf32, #tpu.memory_space<vmem>>, vector<8x256xf32>
    tpu.vector_store %arg8[%c0_6, %c0_7], %7 {strides = array<i32>} : memref<8x256xf32, #tpu.memory_space<vmem>>, vector<8x256xf32>,
    %c2_i32 = arith.constant 2 : i32
    %9 = arith.cmpi eq, %arg2, %c2_i32 : i32
    %10 = arith.extui %9 : i1 to i32
    %c0_i32_8 = arith.constant 0 : i32
    %11 = arith.cmpi ne, %10, %c0_i32_8 : i32
    scf.if %11 {
      %c0_9 = arith.constant 0 : index
      %c0_10 = arith.constant 0 : index
      %12 = vector.load %arg8[%c0_9, %c0_10] : memref<8x256xf32, #tpu.memory_space<vmem>>, vector<8x256xf32>
      %c0_11 = arith.constant 0 : index
      %c0_12 = arith.constant 0 : index
      %13 = vector.load %arg5[%c0_11, %c0_12] : memref<1x256xf32, #tpu.memory_space<vmem>>, vector<1x256xf32>
      %14 = vector.broadcast %13 : vector<1x256xf32> to vector<8x256xf32>
      %15 = arith.mulf %12, %14 : vector<8x256xf32>
      %c0_13 = arith.constant 0 : index
      %c0_14 = arith.constant 0 : index
      %16 = vector.load %arg6[%c0_13, %c0_14] : memref<1x256xf32, #tpu.memory_space<vmem>>, vector<1x256xf32>
      %17 = vector.broadcast %16 : vector<1x256xf32> to vector<8x256xf32>
      %18 = arith.addf %15, %17 : vector<8x256xf32>
      %cst_15 = arith.constant 0.000000e+00 : f32
      %19 = vector.broadcast %cst_15 : f32 to vector<8x256xf32>
      %20 = arith.maximumf %18, %19 : vector<8x256xf32>
      %21 = arith.truncf %20 : vector<8x256xf32> to vector<8x256xbf16>
      %c0_16 = arith.constant 0 : index
      %c0_17 = arith.constant 0 : index
      %22 = vector.load %arg7[%c0_16, %c0_17] : memref<8x256xbf16, #tpu.memory_space<vmem>>, vector<8x256xbf16>
      tpu.vector_store %arg7[%c0_16, %c0_17], %21 {strides = array<i32>} : memref<8x256xbf16, #tpu.memory_space<vmem>>, vector<8x256xbf16>,
    } else {
    }
    return
  }
  func.func @transform_0(%arg0: i32, %arg1: i32, %arg2: i32) -> (i32, i32) {
    %c0_i32 = arith.constant 0 : i32
    return %arg0, %arg2 : i32, i32
  }
  func.func @transform_1(%arg0: i32, %arg1: i32, %arg2: i32) -> (i32, i32) {
    %c0_i32 = arith.constant 0 : i32
    return %arg2, %arg1 : i32, i32
  }
  func.func @transform_2(%arg0: i32, %arg1: i32, %arg2: i32) -> (i32, i32) {
    %c0_i32 = arith.constant 0 : i32
    %c0_i32_0 = arith.constant 0 : i32
    return %c0_i32, %arg1 : i32, i32
  }
  func.func @transform_3(%arg0: i32, %arg1: i32, %arg2: i32) -> (i32, i32) {
    %c0_i32 = arith.constant 0 : i32
    %c0_i32_0 = arith.constant 0 : i32
    return %c0_i32, %arg1 : i32, i32
  }
  func.func @transform_4(%arg0: i32, %arg1: i32, %arg2: i32) -> (i32, i32) {
    %c0_i32 = arith.constant 0 : i32
    return %arg0, %arg1 : i32, i32
  }
}

module attributes {stable_mosaic.version = 11 : i64} {
  func.func @_gemm_bn_kernel(%arg0: i32, %arg1: i32, %arg2: i32, %arg3: memref<8x384xbf16, #tpu.memory_space<vmem>>, %arg4: memref<384x256xbf16, #tpu.memory_space<vmem>>, %arg5: memref<1x256xf32, #tpu.memory_space<vmem>>, %arg6: memref<1x256xf32, #tpu.memory_space<vmem>>, %arg7: memref<8x256xbf16, #tpu.memory_space<vmem>>, %arg8: memref<8x256xbf16, #tpu.memory_space<vmem>>, %arg9: memref<8x256xf32, #tpu.memory_space<vmem>>) attributes {dimension_semantics = [#tpu.dimension_semantics<parallel>, #tpu.dimension_semantics<parallel>, #tpu.dimension_semantics<arbitrary>], iteration_bounds = array<i64: 1, 1, 6>, scalar_prefetch = 0 : i64, scratch_operands = 1 : i64, tpu.core_type = #tpu.core_type<tc>, window_params = [{transform_indices = @transform_0, window_bounds = array<i64: 8, 384>}, {transform_indices = @transform_1, window_bounds = array<i64: 384, 256>}, {transform_indices = @transform_2, window_bounds = array<i64: 1, 256>}, {transform_indices = @transform_3, window_bounds = array<i64: 1, 256>}, {transform_indices = @transform_4, window_bounds = array<i64: 8, 256>}, {transform_indices = @transform_5, window_bounds = array<i64: 8, 256>}]} {
    %c0_i32 = arith.constant 0 : i32
    %0 = arith.cmpi eq, %arg2, %c0_i32 : i32
    %1 = arith.extui %0 : i1 to i32
    %c0_i32_0 = arith.constant 0 : i32
    %2 = arith.cmpi ne, %1, %c0_i32_0 : i32
    scf.if %2 {
      %cst_9 = arith.constant 0.000000e+00 : f32
      %12 = vector.broadcast %cst_9 : f32 to vector<8x256xf32>
      %c0_10 = arith.constant 0 : index
      %c0_11 = arith.constant 0 : index
      %13 = vector.load %arg9[%c0_10, %c0_11] : memref<8x256xf32, #tpu.memory_space<vmem>>, vector<8x256xf32>
      tpu.vector_store %arg9[%c0_10, %c0_11], %12 {strides = array<i32>} : memref<8x256xf32, #tpu.memory_space<vmem>>, vector<8x256xf32>,
    } else {
    }
    %c0 = arith.constant 0 : index
    %c0_1 = arith.constant 0 : index
    %3 = vector.load %arg9[%c0, %c0_1] : memref<8x256xf32, #tpu.memory_space<vmem>>, vector<8x256xf32>
    %c0_2 = arith.constant 0 : index
    %c0_3 = arith.constant 0 : index
    %4 = vector.load %arg3[%c0_2, %c0_3] : memref<8x384xbf16, #tpu.memory_space<vmem>>, vector<8x384xbf16>
    %c0_4 = arith.constant 0 : index
    %c0_5 = arith.constant 0 : index
    %5 = vector.load %arg4[%c0_4, %c0_5] : memref<384x256xbf16, #tpu.memory_space<vmem>>, vector<384x256xbf16>
    %cst = arith.constant dense<0.000000e+00> : vector<8x256xf32>
    %6 = tpu.matmul %4, %5, %cst {dimension_numbers = #tpu.dot_dimension_numbers<[1], [0], [0], [1], [0, 0, 1, 1], [], []>} : vector<8x384xbf16>, vector<384x256xbf16>, vector<8x256xf32> -> vector<8x256xf32>
    %7 = arith.addf %3, %6 : vector<8x256xf32>
    %c0_6 = arith.constant 0 : index
    %c0_7 = arith.constant 0 : index
    %8 = vector.load %arg9[%c0_6, %c0_7] : memref<8x256xf32, #tpu.memory_space<vmem>>, vector<8x256xf32>
    tpu.vector_store %arg9[%c0_6, %c0_7], %7 {strides = array<i32>} : memref<8x256xf32, #tpu.memory_space<vmem>>, vector<8x256xf32>,
    %c5_i32 = arith.constant 5 : i32
    %9 = arith.cmpi eq, %arg2, %c5_i32 : i32
    %10 = arith.extui %9 : i1 to i32
    %c0_i32_8 = arith.constant 0 : i32
    %11 = arith.cmpi ne, %10, %c0_i32_8 : i32
    scf.if %11 {
      %c0_9 = arith.constant 0 : index
      %c0_10 = arith.constant 0 : index
      %12 = vector.load %arg9[%c0_9, %c0_10] : memref<8x256xf32, #tpu.memory_space<vmem>>, vector<8x256xf32>
      %c0_11 = arith.constant 0 : index
      %c0_12 = arith.constant 0 : index
      %13 = vector.load %arg5[%c0_11, %c0_12] : memref<1x256xf32, #tpu.memory_space<vmem>>, vector<1x256xf32>
      %14 = vector.broadcast %13 : vector<1x256xf32> to vector<8x256xf32>
      %15 = arith.mulf %12, %14 : vector<8x256xf32>
      %c0_13 = arith.constant 0 : index
      %c0_14 = arith.constant 0 : index
      %16 = vector.load %arg6[%c0_13, %c0_14] : memref<1x256xf32, #tpu.memory_space<vmem>>, vector<1x256xf32>
      %17 = vector.broadcast %16 : vector<1x256xf32> to vector<8x256xf32>
      %18 = arith.addf %15, %17 : vector<8x256xf32>
      %c0_15 = arith.constant 0 : index
      %c0_16 = arith.constant 0 : index
      %19 = vector.load %arg7[%c0_15, %c0_16] : memref<8x256xbf16, #tpu.memory_space<vmem>>, vector<8x256xbf16>
      %20 = arith.extf %19 : vector<8x256xbf16> to vector<8x256xf32>
      %21 = arith.addf %18, %20 : vector<8x256xf32>
      %cst_17 = arith.constant 0.000000e+00 : f32
      %22 = vector.broadcast %cst_17 : f32 to vector<8x256xf32>
      %23 = arith.maximumf %21, %22 : vector<8x256xf32>
      %24 = arith.truncf %23 : vector<8x256xf32> to vector<8x256xbf16>
      %c0_18 = arith.constant 0 : index
      %c0_19 = arith.constant 0 : index
      %25 = vector.load %arg8[%c0_18, %c0_19] : memref<8x256xbf16, #tpu.memory_space<vmem>>, vector<8x256xbf16>
      tpu.vector_store %arg8[%c0_18, %c0_19], %24 {strides = array<i32>} : memref<8x256xbf16, #tpu.memory_space<vmem>>, vector<8x256xbf16>,
    } else {
    }
    return
  }
  func.func @transform_0(%arg0: i32, %arg1: i32, %arg2: i32) -> (i32, i32) {
    %c0_i32 = arith.constant 0 : i32
    return %arg0, %arg2 : i32, i32
  }
  func.func @transform_1(%arg0: i32, %arg1: i32, %arg2: i32) -> (i32, i32) {
    %c0_i32 = arith.constant 0 : i32
    return %arg2, %arg1 : i32, i32
  }
  func.func @transform_2(%arg0: i32, %arg1: i32, %arg2: i32) -> (i32, i32) {
    %c0_i32 = arith.constant 0 : i32
    %c0_i32_0 = arith.constant 0 : i32
    return %c0_i32, %arg1 : i32, i32
  }
  func.func @transform_3(%arg0: i32, %arg1: i32, %arg2: i32) -> (i32, i32) {
    %c0_i32 = arith.constant 0 : i32
    %c0_i32_0 = arith.constant 0 : i32
    return %c0_i32, %arg1 : i32, i32
  }
  func.func @transform_4(%arg0: i32, %arg1: i32, %arg2: i32) -> (i32, i32) {
    %c0_i32 = arith.constant 0 : i32
    return %arg0, %arg1 : i32, i32
  }
  func.func @transform_5(%arg0: i32, %arg1: i32, %arg2: i32) -> (i32, i32) {
    %c0_i32 = arith.constant 0 : i32
    return %arg0, %arg1 : i32, i32
  }
}

module attributes {stable_mosaic.version = 11 : i64} {
  func.func @_gemm_bn_kernel(%arg0: i32, %arg1: i32, %arg2: i32, %arg3: memref<8x128xbf16, #tpu.memory_space<vmem>>, %arg4: memref<128x256xbf16, #tpu.memory_space<vmem>>, %arg5: memref<1x256xf32, #tpu.memory_space<vmem>>, %arg6: memref<1x256xf32, #tpu.memory_space<vmem>>, %arg7: memref<8x256xbf16, #tpu.memory_space<vmem>>, %arg8: memref<8x256xf32, #tpu.memory_space<vmem>>) attributes {dimension_semantics = [#tpu.dimension_semantics<parallel>, #tpu.dimension_semantics<parallel>, #tpu.dimension_semantics<arbitrary>], iteration_bounds = array<i64: 1, 1, 1>, scalar_prefetch = 0 : i64, scratch_operands = 1 : i64, tpu.core_type = #tpu.core_type<tc>, window_params = [{transform_indices = @transform_0, window_bounds = array<i64: 8, 128>}, {transform_indices = @transform_1, window_bounds = array<i64: 128, 256>}, {transform_indices = @transform_2, window_bounds = array<i64: 1, 256>}, {transform_indices = @transform_3, window_bounds = array<i64: 1, 256>}, {transform_indices = @transform_4, window_bounds = array<i64: 8, 256>}]} {
    %c0_i32 = arith.constant 0 : i32
    %0 = arith.cmpi eq, %arg2, %c0_i32 : i32
    %1 = arith.extui %0 : i1 to i32
    %c0_i32_0 = arith.constant 0 : i32
    %2 = arith.cmpi ne, %1, %c0_i32_0 : i32
    scf.if %2 {
      %cst_10 = arith.constant 0.000000e+00 : f32
      %12 = vector.broadcast %cst_10 : f32 to vector<8x256xf32>
      %c0_11 = arith.constant 0 : index
      %c0_12 = arith.constant 0 : index
      %13 = vector.load %arg8[%c0_11, %c0_12] : memref<8x256xf32, #tpu.memory_space<vmem>>, vector<8x256xf32>
      tpu.vector_store %arg8[%c0_11, %c0_12], %12 {strides = array<i32>} : memref<8x256xf32, #tpu.memory_space<vmem>>, vector<8x256xf32>,
    } else {
    }
    %c0 = arith.constant 0 : index
    %c0_1 = arith.constant 0 : index
    %3 = vector.load %arg8[%c0, %c0_1] : memref<8x256xf32, #tpu.memory_space<vmem>>, vector<8x256xf32>
    %c0_2 = arith.constant 0 : index
    %c0_3 = arith.constant 0 : index
    %4 = vector.load %arg3[%c0_2, %c0_3] : memref<8x128xbf16, #tpu.memory_space<vmem>>, vector<8x128xbf16>
    %c0_4 = arith.constant 0 : index
    %c0_5 = arith.constant 0 : index
    %5 = vector.load %arg4[%c0_4, %c0_5] : memref<128x256xbf16, #tpu.memory_space<vmem>>, vector<128x256xbf16>
    %cst = arith.constant dense<0.000000e+00> : vector<8x256xf32>
    %6 = tpu.matmul %4, %5, %cst {dimension_numbers = #tpu.dot_dimension_numbers<[1], [0], [0], [1], [0, 0, 1, 1], [], []>} : vector<8x128xbf16>, vector<128x256xbf16>, vector<8x256xf32> -> vector<8x256xf32>
    %7 = arith.addf %3, %6 : vector<8x256xf32>
    %c0_6 = arith.constant 0 : index
    %c0_7 = arith.constant 0 : index
    %8 = vector.load %arg8[%c0_6, %c0_7] : memref<8x256xf32, #tpu.memory_space<vmem>>, vector<8x256xf32>
    tpu.vector_store %arg8[%c0_6, %c0_7], %7 {strides = array<i32>} : memref<8x256xf32, #tpu.memory_space<vmem>>, vector<8x256xf32>,
    %c0_i32_8 = arith.constant 0 : i32
    %9 = arith.cmpi eq, %arg2, %c0_i32_8 : i32
    %10 = arith.extui %9 : i1 to i32
    %c0_i32_9 = arith.constant 0 : i32
    %11 = arith.cmpi ne, %10, %c0_i32_9 : i32
    scf.if %11 {
      %c0_10 = arith.constant 0 : index
      %c0_11 = arith.constant 0 : index
      %12 = vector.load %arg8[%c0_10, %c0_11] : memref<8x256xf32, #tpu.memory_space<vmem>>, vector<8x256xf32>
      %c0_12 = arith.constant 0 : index
      %c0_13 = arith.constant 0 : index
      %13 = vector.load %arg5[%c0_12, %c0_13] : memref<1x256xf32, #tpu.memory_space<vmem>>, vector<1x256xf32>
      %14 = vector.broadcast %13 : vector<1x256xf32> to vector<8x256xf32>
      %15 = arith.mulf %12, %14 : vector<8x256xf32>
      %c0_14 = arith.constant 0 : index
      %c0_15 = arith.constant 0 : index
      %16 = vector.load %arg6[%c0_14, %c0_15] : memref<1x256xf32, #tpu.memory_space<vmem>>, vector<1x256xf32>
      %17 = vector.broadcast %16 : vector<1x256xf32> to vector<8x256xf32>
      %18 = arith.addf %15, %17 : vector<8x256xf32>
      %19 = arith.truncf %18 : vector<8x256xf32> to vector<8x256xbf16>
      %c0_16 = arith.constant 0 : index
      %c0_17 = arith.constant 0 : index
      %20 = vector.load %arg7[%c0_16, %c0_17] : memref<8x256xbf16, #tpu.memory_space<vmem>>, vector<8x256xbf16>
      tpu.vector_store %arg7[%c0_16, %c0_17], %19 {strides = array<i32>} : memref<8x256xbf16, #tpu.memory_space<vmem>>, vector<8x256xbf16>,
    } else {
    }
    return
  }
  func.func @transform_0(%arg0: i32, %arg1: i32, %arg2: i32) -> (i32, i32) {
    %c0_i32 = arith.constant 0 : i32
    return %arg0, %arg2 : i32, i32
  }
  func.func @transform_1(%arg0: i32, %arg1: i32, %arg2: i32) -> (i32, i32) {
    %c0_i32 = arith.constant 0 : i32
    return %arg2, %arg1 : i32, i32
  }
  func.func @transform_2(%arg0: i32, %arg1: i32, %arg2: i32) -> (i32, i32) {
    %c0_i32 = arith.constant 0 : i32
    %c0_i32_0 = arith.constant 0 : i32
    return %c0_i32, %arg1 : i32, i32
  }
  func.func @transform_3(%arg0: i32, %arg1: i32, %arg2: i32) -> (i32, i32) {
    %c0_i32 = arith.constant 0 : i32
    %c0_i32_0 = arith.constant 0 : i32
    return %c0_i32, %arg1 : i32, i32
  }
  func.func @transform_4(%arg0: i32, %arg1: i32, %arg2: i32) -> (i32, i32) {
    %c0_i32 = arith.constant 0 : i32
    return %arg0, %arg1 : i32, i32
  }
}

module attributes {stable_mosaic.version = 11 : i64} {
  func.func @_gemm_bn_kernel(%arg0: i32, %arg1: i32, %arg2: i32, %arg3: memref<8x384xbf16, #tpu.memory_space<vmem>>, %arg4: memref<384x256xbf16, #tpu.memory_space<vmem>>, %arg5: memref<1x256xf32, #tpu.memory_space<vmem>>, %arg6: memref<1x256xf32, #tpu.memory_space<vmem>>, %arg7: memref<8x256xbf16, #tpu.memory_space<vmem>>, %arg8: memref<8x256xf32, #tpu.memory_space<vmem>>) attributes {dimension_semantics = [#tpu.dimension_semantics<parallel>, #tpu.dimension_semantics<parallel>, #tpu.dimension_semantics<arbitrary>], iteration_bounds = array<i64: 1, 1, 6>, scalar_prefetch = 0 : i64, scratch_operands = 1 : i64, tpu.core_type = #tpu.core_type<tc>, window_params = [{transform_indices = @transform_0, window_bounds = array<i64: 8, 384>}, {transform_indices = @transform_1, window_bounds = array<i64: 384, 256>}, {transform_indices = @transform_2, window_bounds = array<i64: 1, 256>}, {transform_indices = @transform_3, window_bounds = array<i64: 1, 256>}, {transform_indices = @transform_4, window_bounds = array<i64: 8, 256>}]} {
    %c0_i32 = arith.constant 0 : i32
    %0 = arith.cmpi eq, %arg2, %c0_i32 : i32
    %1 = arith.extui %0 : i1 to i32
    %c0_i32_0 = arith.constant 0 : i32
    %2 = arith.cmpi ne, %1, %c0_i32_0 : i32
    scf.if %2 {
      %cst_9 = arith.constant 0.000000e+00 : f32
      %12 = vector.broadcast %cst_9 : f32 to vector<8x256xf32>
      %c0_10 = arith.constant 0 : index
      %c0_11 = arith.constant 0 : index
      %13 = vector.load %arg8[%c0_10, %c0_11] : memref<8x256xf32, #tpu.memory_space<vmem>>, vector<8x256xf32>
      tpu.vector_store %arg8[%c0_10, %c0_11], %12 {strides = array<i32>} : memref<8x256xf32, #tpu.memory_space<vmem>>, vector<8x256xf32>,
    } else {
    }
    %c0 = arith.constant 0 : index
    %c0_1 = arith.constant 0 : index
    %3 = vector.load %arg8[%c0, %c0_1] : memref<8x256xf32, #tpu.memory_space<vmem>>, vector<8x256xf32>
    %c0_2 = arith.constant 0 : index
    %c0_3 = arith.constant 0 : index
    %4 = vector.load %arg3[%c0_2, %c0_3] : memref<8x384xbf16, #tpu.memory_space<vmem>>, vector<8x384xbf16>
    %c0_4 = arith.constant 0 : index
    %c0_5 = arith.constant 0 : index
    %5 = vector.load %arg4[%c0_4, %c0_5] : memref<384x256xbf16, #tpu.memory_space<vmem>>, vector<384x256xbf16>
    %cst = arith.constant dense<0.000000e+00> : vector<8x256xf32>
    %6 = tpu.matmul %4, %5, %cst {dimension_numbers = #tpu.dot_dimension_numbers<[1], [0], [0], [1], [0, 0, 1, 1], [], []>} : vector<8x384xbf16>, vector<384x256xbf16>, vector<8x256xf32> -> vector<8x256xf32>
    %7 = arith.addf %3, %6 : vector<8x256xf32>
    %c0_6 = arith.constant 0 : index
    %c0_7 = arith.constant 0 : index
    %8 = vector.load %arg8[%c0_6, %c0_7] : memref<8x256xf32, #tpu.memory_space<vmem>>, vector<8x256xf32>
    tpu.vector_store %arg8[%c0_6, %c0_7], %7 {strides = array<i32>} : memref<8x256xf32, #tpu.memory_space<vmem>>, vector<8x256xf32>,
    %c5_i32 = arith.constant 5 : i32
    %9 = arith.cmpi eq, %arg2, %c5_i32 : i32
    %10 = arith.extui %9 : i1 to i32
    %c0_i32_8 = arith.constant 0 : i32
    %11 = arith.cmpi ne, %10, %c0_i32_8 : i32
    scf.if %11 {
      %c0_9 = arith.constant 0 : index
      %c0_10 = arith.constant 0 : index
      %12 = vector.load %arg8[%c0_9, %c0_10] : memref<8x256xf32, #tpu.memory_space<vmem>>, vector<8x256xf32>
      %c0_11 = arith.constant 0 : index
      %c0_12 = arith.constant 0 : index
      %13 = vector.load %arg5[%c0_11, %c0_12] : memref<1x256xf32, #tpu.memory_space<vmem>>, vector<1x256xf32>
      %14 = vector.broadcast %13 : vector<1x256xf32> to vector<8x256xf32>
      %15 = arith.mulf %12, %14 : vector<8x256xf32>
      %c0_13 = arith.constant 0 : index
      %c0_14 = arith.constant 0 : index
      %16 = vector.load %arg6[%c0_13, %c0_14] : memref<1x256xf32, #tpu.memory_space<vmem>>, vector<1x256xf32>
      %17 = vector.broadcast %16 : vector<1x256xf32> to vector<8x256xf32>
      %18 = arith.addf %15, %17 : vector<8x256xf32>
      %cst_15 = arith.constant 0.000000e+00 : f32
      %19 = vector.broadcast %cst_15 : f32 to vector<8x256xf32>
      %20 = arith.maximumf %18, %19 : vector<8x256xf32>
      %21 = arith.truncf %20 : vector<8x256xf32> to vector<8x256xbf16>
      %c0_16 = arith.constant 0 : index
      %c0_17 = arith.constant 0 : index
      %22 = vector.load %arg7[%c0_16, %c0_17] : memref<8x256xbf16, #tpu.memory_space<vmem>>, vector<8x256xbf16>
      tpu.vector_store %arg7[%c0_16, %c0_17], %21 {strides = array<i32>} : memref<8x256xbf16, #tpu.memory_space<vmem>>, vector<8x256xbf16>,
    } else {
    }
    return
  }
  func.func @transform_0(%arg0: i32, %arg1: i32, %arg2: i32) -> (i32, i32) {
    %c0_i32 = arith.constant 0 : i32
    return %arg0, %arg2 : i32, i32
  }
  func.func @transform_1(%arg0: i32, %arg1: i32, %arg2: i32) -> (i32, i32) {
    %c0_i32 = arith.constant 0 : i32
    return %arg2, %arg1 : i32, i32
  }
  func.func @transform_2(%arg0: i32, %arg1: i32, %arg2: i32) -> (i32, i32) {
    %c0_i32 = arith.constant 0 : i32
    %c0_i32_0 = arith.constant 0 : i32
    return %c0_i32, %arg1 : i32, i32
  }
  func.func @transform_3(%arg0: i32, %arg1: i32, %arg2: i32) -> (i32, i32) {
    %c0_i32 = arith.constant 0 : i32
    %c0_i32_0 = arith.constant 0 : i32
    return %c0_i32, %arg1 : i32, i32
  }
  func.func @transform_4(%arg0: i32, %arg1: i32, %arg2: i32) -> (i32, i32) {
    %c0_i32 = arith.constant 0 : i32
    return %arg0, %arg1 : i32, i32
  }
}

</mosaic_0001>

<bundles_post_ra>
// kernel: _lambda_.16
= control target key start
LH: loop header
LB: loop body
LE: loop exit
PB: predicated region body
PF: predicated region fallthrough
CT: control target
= control target key end

     0   :  { %s992_s1 = inlined_call_operand.vmem [shape: bf16[256,128], index: 1, kind: input, shape index: {}]   ;;  %s993_s0 = inlined_call_operand.vmem [shape: bf16[128,256], index: 0, kind: input, shape index: {}]   ;;  %s994_s2 = inlined_call_operand.vmem [shape: f32[1,128], index: 2, kind: input, shape index: {}]   ;;  %s995_s3 = inlined_call_operand.vmem [shape: f32[1,128], index: 3, kind: input, shape index: {}]   ;;  %s996_s4 = inlined_call_operand.vmem [shape: bf16[128,128], index: 4, kind: output, shape index: {}]  }
   0x1   :  { %v765_v0 = vld [vmem:[%s992_s1 + $0x40] sm:$0xff]   ;;  %v767_v2 = vld [vmem:[%s992_s1 + $0x48] sm:$0xff]   ;;  %v769_v4 = vld [vmem:[%s992_s1 + $0x50] sm:$0xff]  }
   0x2   :  { %v766_v1 = vld [vmem:[%s992_s1] sm:$0xff]   ;;  %685 = vmatprep.subr.bf16.mxu0 %v765_v0  ;;  %749 = vmatprep.subr.bf16.mxu1 %v765_v0  ;;  %v768_v3 = vld [vmem:[%s992_s1 + $0x8] sm:$0xff]   ;;  %v770_v5 = vld [vmem:[%s992_s1 + $0x10] sm:$0xff]  }
   0x3   :  { %686 = vmatpush3.bf16.msra.mxu0 %v766_v1  ;;  %757 = vmatpush3.bf16.msra.mxu1 %v766_v1  ;;  %v771_v6 = vld [vmem:[%s992_s1 + $0x58] sm:$0xff]   ;;  %v773_v8 = vld [vmem:[%s992_s1 + $0x60] sm:$0xff]   ;;  %v775_v10 = vld [vmem:[%s992_s1 + $0x68] sm:$0xff]  }
   0x4   :  { %687 = vmatprep.subr.bf16.mxu0 %v767_v2  ;;  %750 = vmatprep.subr.bf16.mxu1 %v767_v2  ;;  %v772_v7 = vld [vmem:[%s992_s1 + $0x18] sm:$0xff]   ;;  %v774_v9 = vld [vmem:[%s992_s1 + $0x20] sm:$0xff]   ;;  %v776_v13 = vld [vmem:[%s992_s1 + $0x28] sm:$0xff]  }
   0x5   :  { %v783_v11 = vld [vmem:[%s993_s0 + $0x4] ss:$8 sps:$4 sm:$0xff]   ;;  %v777_v14 = vld [vmem:[%s992_s1 + $0x70] sm:$0xff]   ;;  %v779_v16 = vld [vmem:[%s992_s1 + $0x78] sm:$0xff]  }
   0x6   :  { %v786_v12 = vld [vmem:[%s993_s0 + $0x44] ss:$8 sps:$4 sm:$0xff]   ;;  %310 = vmatprep.mubr.bf16.mxu0 %v783_v11  ;;  %v778_v15 = vld [vmem:[%s992_s1 + $0x30] sm:$0xff]   ;;  %v780_v17 = vld [vmem:[%s992_s1 + $0x38] sm:$0xff]  }
   0x7   :  { %688 = vmatpush3.bf16.msra.mxu0 %v768_v3  ;;  %758 = vmatpush3.bf16.msra.mxu1 %v768_v3  ;;  %v781_v18 = vld [vmem:[%s993_s0] ss:$8 sps:$4 sm:$0xff]   ;;  %v787_v20 = vld [vmem:[%s993_s0 + $0x14] ss:$8 sps:$4 sm:$0xff]   ;;  %v791_v22 = vld [vmem:[%s993_s0 + $0x10] ss:$8 sps:$4 sm:$0xff]  }
   0x8   :  { %689 = vmatprep.subr.bf16.mxu0 %v769_v4  ;;  %751 = vmatprep.subr.bf16.mxu1 %v769_v4  ;;  %v784_v19 = vld [vmem:[%s993_s0 + $0x40] ss:$8 sps:$4 sm:$0xff]   ;;  %v789_v21 = vld [vmem:[%s993_s0 + $0x54] ss:$8 sps:$4 sm:$0xff]   ;;  %v792_v23 = vld [vmem:[%s993_s0 + $0x50] ss:$8 sps:$4 sm:$0xff]  }
   0x9   :  { %342 = vmatprep.mubr.bf16.mxu1 %v786_v12  ;;  %v793_v24 = vld [vmem:[%s993_s0 + $0x24] ss:$8 sps:$4 sm:$0xff]   ;;  %v797_v26 = vld [vmem:[%s993_s0 + $0x20] ss:$8 sps:$4 sm:$0xff]   ;;  %v799_v28 = vld [vmem:[%s993_s0 + $0x34] ss:$8 sps:$4 sm:$0xff]  }
   0xa   :  { %v795_v25 = vld [vmem:[%s993_s0 + $0x64] ss:$8 sps:$4 sm:$0xff]   ;;  %v798_v27 = vld [vmem:[%s993_s0 + $0x60] ss:$8 sps:$4 sm:$0xff]   ;;  %v801_v29 = vld [vmem:[%s993_s0 + $0x74] ss:$8 sps:$4 sm:$0xff]  }
   0xb   :  { %690 = vmatpush3.bf16.msra.mxu0 %v770_v5  ;;  %759 = vmatpush3.bf16.msra.mxu1 %v770_v5  ;;  %v803_v30 = vld [vmem:[%s993_s0 + $0x30] ss:$8 sps:$4 sm:$0xff]   ;;  %v929_v35 = vld [vmem:[%s994_s2] ss:$0 sm:$0xff] }
   0xc   :  { %691 = vmatprep.subr.bf16.mxu0 %v771_v6  ;;  %752 = vmatprep.subr.bf16.mxu1 %v771_v6  ;;  %v804_v31 = vld [vmem:[%s993_s0 + $0x70] ss:$8 sps:$4 sm:$0xff]   ;;  %v934_v41 = vld [vmem:[%s995_s3] ss:$0 sm:$0xff] }
   0xf   :  { %692 = vmatpush3.bf16.msra.mxu0 %v772_v7  ;;  %760 = vmatpush3.bf16.msra.mxu1 %v772_v7 }
  0x10   :  { %693 = vmatprep.subr.bf16.mxu0 %v773_v8  ;;  %753 = vmatprep.subr.bf16.mxu1 %v773_v8 }
  0x13   :  { %694 = vmatpush3.bf16.msra.mxu0 %v774_v9  ;;  %761 = vmatpush3.bf16.msra.mxu1 %v774_v9 }
  0x14   :  { %695 = vmatprep.subr.bf16.mxu0 %v775_v10  ;;  %754 = vmatprep.subr.bf16.mxu1 %v775_v10 }
  0x17   :  { %696 = vmatpush3.bf16.msra.mxu0 %v776_v13  ;;  %762 = vmatpush3.bf16.msra.mxu1 %v776_v13 }
  0x18   :  { %697 = vmatprep.subr.bf16.mxu0 %v777_v14  ;;  %755 = vmatprep.subr.bf16.mxu1 %v777_v14 }
  0x1b   :  { %698 = vmatpush3.bf16.msra.mxu0 %v778_v15  ;;  %763 = vmatpush3.bf16.msra.mxu1 %v778_v15 }
  0x1c   :  { %699 = vmatprep.subr.bf16.mxu0 %v779_v16  ;;  %756 = vmatprep.subr.bf16.mxu1 %v779_v16 }
  0x1f   :  { %700 = vmatpush3.bf16.msra.mxu0 %v780_v17  ;;  %764 = vmatpush3.bf16.msra.mxu1 %v780_v17 }
  0x22   :  { %311 = vmatmul.mubr.bf16.vlgmr.msra.gmra.mrb[0].mxu0 %v781_v18  ;;  %343 = vmatmul.mubr.bf16.vlgmr.msra.gmra.mrb[0].mxu1 %v784_v19 }
  0x23   :  { %318 = vmatprep.mubr.bf16.mxu0 %v787_v20  ;;  %350 = vmatprep.mubr.bf16.mxu1 %v789_v21 }
  0x2a   :  { %319 = vmatmul.mubr.bf16.gmra.mrb[4].mxu0 %v791_v22  ;;  %351 = vmatmul.mubr.bf16.gmra.mrb[4].mxu1 %v792_v23 }
  0x2b   :  { %326 = vmatprep.mubr.bf16.mxu0 %v793_v24  ;;  %358 = vmatprep.mubr.bf16.mxu1 %v795_v25 }
  0x32   :  { %327 = vmatmul.mubr.bf16.gmra.mrb[8].mxu0 %v797_v26  ;;  %359 = vmatmul.mubr.bf16.gmra.mrb[8].mxu1 %v798_v27 }
  0x33   :  { %334 = vmatprep.mubr.bf16.mxu0 %v799_v28  ;;  %366 = vmatprep.mubr.bf16.mxu1 %v801_v29 }
  0x3a   :  { %335 = vmatmul.mubr.bf16.gmra.mrb[12].mxu0 %v803_v30  ;;  %367 = vmatmul.mubr.bf16.gmra.mrb[12].mxu1 %v804_v31 }
  0xf5   :  { %v701_v32 = vpop.f32.mrb[0].mxu0  ;;  %v725_v33 = vpop.f32.mrb[0].mxu1 }
  0xf6   :  { %v702_v34 = vpop.f32.mrb[1].mxu0  ;;  %v726_v36 = vpop.f32.mrb[1].mxu1 }
  0xf7   :  { %v703_v37 = vadd.f32 %v702_v34, %v701_v32  ;;  %v727_v38 = vadd.f32 %v726_v36, %v725_v33  ;;  %v704_v39 = vpop.f32.mrb[2].mxu0  ;;  %v728_v40 = vpop.f32.mrb[2].mxu1 }
  0xf8   :  { %v705_v42 = vpop.f32.mrb[3].mxu0  ;;  %v729_v43 = vpop.f32.mrb[3].mxu1 }
  0xf9   :  { %v433_v44 = vmul.f32 %v703_v37, %v929_v35  ;;  %v441_v45 = vmul.f32 %v727_v38, %v929_v35  ;;  %v706_v46 = vadd.f32 %v705_v42, %v704_v39  ;;  %v730_v47 = vadd.f32 %v729_v43, %v728_v40 }
  0xfb   :  { %v456_v48 = vadd.f32 %v934_v41, %v433_v44  ;;  %v464_v49 = vadd.f32 %v934_v41, %v441_v45  ;;  %v434_v50 = vmul.f32 %v706_v46, %v929_v35  ;;  %v442_v51 = vmul.f32 %v730_v47, %v929_v35 }
  0xfd   :  { %v457_v52 = vadd.f32 %v934_v41, %v434_v50  ;;  %v465_v53 = vadd.f32 %v934_v41, %v442_v51  ;;  %v707_v54 = vpop.f32.mrb[4].mxu0  ;;  %v731_v55 = vpop.f32.mrb[4].mxu1  ;;  %v472_v56 = vmax.f32 %v456_v48, 0.0  ;;  %v480_v57 = vmax.f32 %v464_v49, 0.0 }
  0xfe   :  { %v708_v58 = vpop.f32.mrb[5].mxu0  ;;  %v732_v59 = vpop.f32.mrb[5].mxu1 }
  0xff   :  { %v473_v60 = vmax.f32 %v457_v52, 0.0  ;;  %v481_v61 = vmax.f32 %v465_v53, 0.0  ;;  %v709_v62 = vadd.f32 %v708_v58, %v707_v54  ;;  %v733_v63 = vadd.f32 %v732_v59, %v731_v55  ;;  %v710_v0 = vpop.f32.mrb[6].mxu0  ;;  %v734_v1 = vpop.f32.mrb[6].mxu1 }
 0x100   :  { %v711_v2 = vpop.f32.mrb[7].mxu0  ;;  %v735_v3 = vpop.f32.mrb[7].mxu1 }
 0x101   :  { %v641_v4 = vpack.c.bf16 %v473_v60, %v472_v56  ;;  %v661_v5 = vpack.c.bf16 %v481_v61, %v480_v57  ;;  %v435_v6 = vmul.f32 %v709_v62, %v929_v35  ;;  %v443_v7 = vmul.f32 %v733_v63, %v929_v35 }
 0x102   :  { %v712_v8 = vadd.f32 %v711_v2, %v710_v0  ;;  %v736_v9 = vadd.f32 %v735_v3, %v734_v1 }
 0x103   :  { %642 = vst [vmem:[%s996_s4] sm:$0xff] %v641_v4   ;;  %681 = vst [vmem:[%s996_s4 + $0x20] sm:$0xff] %v661_v5   ;;  %v458_v10 = vadd.f32 %v934_v41, %v435_v6  ;;  %v466_v11 = vadd.f32 %v934_v41, %v443_v7 }
 0x104   :  { %v436_v12 = vmul.f32 %v712_v8, %v929_v35  ;;  %v444_v13 = vmul.f32 %v736_v9, %v929_v35 }
 0x105   :  { %v713_v14 = vpop.f32.mrb[8].mxu0  ;;  %v737_v15 = vpop.f32.mrb[8].mxu1  ;;  %v474_v24 = vmax.f32 %v458_v10, 0.0  ;;  %v482_v25 = vmax.f32 %v466_v11, 0.0 }
 0x106   :  { %v459_v16 = vadd.f32 %v934_v41, %v436_v12  ;;  %v467_v17 = vadd.f32 %v934_v41, %v444_v13  ;;  %v714_v18 = vpop.f32.mrb[9].mxu0  ;;  %v738_v19 = vpop.f32.mrb[9].mxu1 }
 0x107   :  { %v715_v20 = vadd.f32 %v714_v18, %v713_v14  ;;  %v739_v21 = vadd.f32 %v738_v19, %v737_v15  ;;  %v716_v22 = vpop.f32.mrb[10].mxu0  ;;  %v740_v23 = vpop.f32.mrb[10].mxu1 }
 0x108   :  { %v475_v26 = vmax.f32 %v459_v16, 0.0  ;;  %v483_v27 = vmax.f32 %v467_v17, 0.0  ;;  %v717_v28 = vpop.f32.mrb[11].mxu0  ;;  %v741_v29 = vpop.f32.mrb[11].mxu1 }
 0x109   :  { %v437_v30 = vmul.f32 %v715_v20, %v929_v35  ;;  %v445_v31 = vmul.f32 %v739_v21, %v929_v35  ;;  %v718_v32 = vadd.f32 %v717_v28, %v716_v22  ;;  %v742_v33 = vadd.f32 %v741_v29, %v740_v23 }
 0x10a   :  { %v646_v34 = vpack.c.bf16 %v475_v26, %v474_v24  ;;  %v666_v36 = vpack.c.bf16 %v483_v27, %v482_v25 }
 0x10b   :  { %v460_v37 = vadd.f32 %v934_v41, %v437_v30  ;;  %v468_v38 = vadd.f32 %v934_v41, %v445_v31  ;;  %v438_v39 = vmul.f32 %v718_v32, %v929_v35  ;;  %v446_v40 = vmul.f32 %v742_v33, %v929_v35 }
 0x10c   :  { %678 = vst [vmem:[%s996_s4 + $0x8] sm:$0xff] %v646_v34   ;;  %682 = vst [vmem:[%s996_s4 + $0x28] sm:$0xff] %v666_v36  }
 0x10d   :  { %v461_v42 = vadd.f32 %v934_v41, %v438_v39  ;;  %v469_v43 = vadd.f32 %v934_v41, %v446_v40  ;;  %v719_v44 = vpop.f32.mrb[12].mxu0  ;;  %v743_v45 = vpop.f32.mrb[12].mxu1  ;;  %v476_v46 = vmax.f32 %v460_v37, 0.0  ;;  %v484_v47 = vmax.f32 %v468_v38, 0.0 }
 0x10e   :  { %v720_v48 = vpop.f32.mrb[13].mxu0  ;;  %v744_v49 = vpop.f32.mrb[13].mxu1 }
 0x10f   :  { %v477_v50 = vmax.f32 %v461_v42, 0.0  ;;  %v485_v51 = vmax.f32 %v469_v43, 0.0  ;;  %v721_v52 = vadd.f32 %v720_v48, %v719_v44  ;;  %v745_v53 = vadd.f32 %v744_v49, %v743_v45  ;;  %v722_v54 = vpop.f32.mrb[14].mxu0  ;;  %v746_v55 = vpop.f32.mrb[14].mxu1 }
 0x110   :  { %v723_v56 = vpop.f32.mrb[15].mxu0  ;;  %v747_v57 = vpop.f32.mrb[15].mxu1 }
 0x111   :  { %v651_v58 = vpack.c.bf16 %v477_v50, %v476_v46  ;;  %v671_v59 = vpack.c.bf16 %v485_v51, %v484_v47  ;;  %v439_v60 = vmul.f32 %v721_v52, %v929_v35  ;;  %v447_v61 = vmul.f32 %v745_v53, %v929_v35 }
 0x112   :  { %v724_v62 = vadd.f32 %v723_v56, %v722_v54  ;;  %v748_v63 = vadd.f32 %v747_v57, %v746_v55 }
 0x113   :  { %679 = vst [vmem:[%s996_s4 + $0x10] sm:$0xff] %v651_v58   ;;  %683 = vst [vmem:[%s996_s4 + $0x30] sm:$0xff] %v671_v59   ;;  %v462_v0 = vadd.f32 %v934_v41, %v439_v60  ;;  %v470_v1 = vadd.f32 %v934_v41, %v447_v61 }
 0x114   :  { %v440_v2 = vmul.f32 %v724_v62, %v929_v35  ;;  %v448_v3 = vmul.f32 %v748_v63, %v929_v35 }
 0x115   :  { %v478_v6 = vmax.f32 %v462_v0, 0.0  ;;  %v486_v7 = vmax.f32 %v470_v1, 0.0 }
 0x116   :  { %v463_v4 = vadd.f32 %v934_v41, %v440_v2  ;;  %v471_v5 = vadd.f32 %v934_v41, %v448_v3 }
 0x118   :  { %v479_v8 = vmax.f32 %v463_v4, 0.0  ;;  %v487_v9 = vmax.f32 %v471_v5, 0.0 }
 0x11a   :  { %v656_v10 = vpack.c.bf16 %v479_v8, %v478_v6  ;;  %v676_v11 = vpack.c.bf16 %v487_v9, %v486_v7 }
 0x11c   :  { %680 = vst [vmem:[%s996_s4 + $0x18] sm:$0xff] %v656_v10   ;;  %684 = vst [vmem:[%s996_s4 + $0x38] sm:$0xff] %v676_v11  }

// kernel: _lambda_.17
= control target key start
LH: loop header
LB: loop body
LE: loop exit
PB: predicated region body
PF: predicated region fallthrough
CT: control target
= control target key end

     0   :  { %s878_s21 = smov 0   ;;  %s880_s22 = smov 0   ;;  %s965_s0 = inlined_call_operand.vmem [shape: bf16[2,10,5,128], index: 0, kind: input, shape index: {}, may-alias: {0,1,2}]   ;;  %s966_s1 = inlined_call_operand.vmem [shape: bf16[2,10,5,128], index: 1, kind: input, shape index: {}, may-alias: {0,1,2}]   ;;  %s967_s2 = inlined_call_operand.vmem [shape: bf16[2,10,5,128], index: 2, kind: input, shape index: {}, may-alias: {0,1,2}]   ;;  %s968_s3 = inlined_call_operand.vmem [shape: bf16[2,10,5,128], index: 3, kind: input, shape index: {}, may-alias: {3,4,5}]   ;;  %s969_s4 = inlined_call_operand.vmem [shape: bf16[2,10,5,128], index: 4, kind: input, shape index: {}, may-alias: {3,4,5}]   ;;  %s970_s5 = inlined_call_operand.vmem [shape: bf16[2,10,5,128], index: 5, kind: input, shape index: {}, may-alias: {3,4,5}]   ;;  %s971_s6 = inlined_call_operand.vmem [shape: bf16[2,4,4,128], index: 6, kind: output, shape index: {}]  }
   0x1   :  { %s882_s23 = smov 0   ;;  %s884_s24 = smov 0  }
   0x2   :  { %s886_s25 = smov 0  }
   0x3 LB: > { %s25_s26 = sadd.s32 1, %s833_s23  ;;  %s28_s27 = sadd.s32 1, %s837_s24  ;;  %s841_s25 = sphi %s886_s25, %s16_s25   ;;  %s837_s24 = sphi %s884_s24, %s975_s24   ;;  %s833_s23 = sphi %s882_s23, %s974_s23   ;;  %s829_s22 = sphi %s880_s22, %s973_s22   ;;  %s825_s21 = sphi %s878_s21, %s972_s21  }
   0x4   : > { %p26_p0 = scmp.ge.s32.totalorder %s25_s26, 4  ;;  %p745_p1 = scmp.ge.s32.totalorder %s841_s25, 1 }
   0x5   : > { %p346_p2 = scmp.lt.s32.totalorder %s841_s25, 9 }
   0x6   : > { %s977_s26 = smov (%p26_p0, %s25_s26), 0  ;;  %s979_s27 = smov (!%p26_p0, %s28_s27), %s837_s24 }
   0x7   : > { %p347_p3 = pnand %p745_p1, %p346_p2  ;;  %p30_p4 = scmp.ge.s32.totalorder %s979_s27, 2 }
   0x8   : > { %s746_s28 = sshll.u32 (!%p347_p3), %s825_s21, 1  ;;  %p433_p5 = scmp.lt.s32.totalorder (!%p347_p3), %s829_s22, 1 }
   0x9   : > { %s981_s27 = smov (%p30_p4, %s979_s27), 0  ;;  %350 = sbr.rel (%p347_p3) target bundleno = 42 (0x2a), region = 44 }
   0xa   : > { %p435_p6 = scmp.lt.s32.totalorder (!%p347_p3), %s746_s28, 9  ;;  %s443_s29 = sadd.s32 (!%p347_p3), 1, %s746_s28 }
   0xb   : > { %p446_p7 = scmp.lt.s32.totalorder (!%p347_p3), %s443_s29, 9  ;;  %s455_s8 = sadd.s32 (!%p347_p3), 2, %s746_s28 }
   0xc   : > { %p458_p8 = scmp.lt.s32.totalorder (!%p347_p3), %s455_s8, 9  ;;  %p502_p9 = scmp.lt.s32.totalorder (!%p347_p3), %s825_s21, 3 }
  0x10   : > { %s983_s22 = smov (!%p433_p5, %s829_s22), 1  ;;  %s985_s29 = smov (!%p446_p7, %s443_s29), 9 }
  0x11   : > { %s436_s30 = scalar_select %p435_p6, %s746_s28, 9 }
  0x12   : > { %s762_s7 = smul.u32 10, %s983_s22  ;;  %s987_s8 = smov (!%p458_p8, %s455_s8), 9 }
  0x13   : > { %s989_s21 = smov (!%p502_p9, %s825_s21), 3 }
  0x14   : > { %s438_s9 = sadd.s32 %s762_s7, %s436_s30  ;;  %s449_s14 = sadd.s32 %s762_s7, %s985_s29 }
  0x15   : > { %s914_s10 = sshll.u32 %s438_s9, 2  ;;  %s920_s15 = sshll.u32 %s449_s14, 2 }
  0x16   : > { %s440_s13 = scalar_lea.vmem %s965_s0, %s914_s10  ;;  %s461_s16 = sadd.s32 %s762_s7, %s987_s8 }
  0x17   : > { %v508_v0 = vld [vmem:[%s440_s13] sm:$0x7]  ;;  %s451_s19 = scalar_lea.vmem %s966_s1, %s920_s15  ;;  %s926_s20 = sshll.u32 %s461_s16, 2 }
  0x18   : > { %v511_v1 = vshrl.u32 %v508_v0, 16  ;;  %v514_v2 = vshll.u32 %v508_v0, 16  ;;  %s463_s9 = scalar_lea.vmem %s967_s2, %s926_s20  ;;  %v522_v6 = vld [vmem:[%s451_s19] sm:$0x7]  ;;  %s474_s8 = scalar_lea.vmem %s968_s3, %s914_s10 }
  0x19   : > { %v525_v7 = vshrl.u32 %v522_v6, 16  ;;  %v528_v8 = vshll.u32 %v522_v6, 16  ;;  %v537_v9 = vld [vmem:[%s463_s9] sm:$0x7]  ;;  %s485_s13 = scalar_lea.vmem %s969_s4, %s920_s15  ;;  %s758_s14 = sshll.u32 %s983_s22, 2 }
  0x1a   : > { %v513_v3 = vrot.slane %v511_v1, 4  ;;  %v516_v4 = vrot.slane %v514_v2, 5  ;;  %v540_v11 = vshrl.u32 %v537_v9, 16  ;;  %v543_v12 = vshll.u32 %v537_v9, 16  ;;  %s497_s18 = scalar_lea.vmem %s970_s5, %s926_s20  ;;  %v509_v19 = vld [vmem:[%s474_s8] sm:$0x7]  ;;  %s505_s10 = sadd.s32 %s758_s14, %s989_s21 }
  0x1b   : > { %v527_v13 = vrot.slane %v525_v7, 4  ;;  %v530_v14 = vrot.slane %v528_v8, 5  ;;  %v523_v22 = vld [vmem:[%s485_s13] sm:$0x7]  ;;  %s759_s19 = sshll.u32 %s505_s10, 1 }
  0x1c   : > { %v517_v5 = vor.u32 %v516_v4, %v513_v3  ;;  %v542_v15 = vrot.slane %v540_v11, 4  ;;  %v545_v16 = vrot.slane %v543_v12, 5  ;;  %v538_v26 = vld [vmem:[%s497_s18] sm:$0x7]  ;;  %s507_s28 = scalar_lea.vmem %s971_s6, %s759_s19 }
  0x1d   : > { %v531_v18 = vor.u32 %v530_v14, %v527_v13 }
  0x1e   : > { %v518_v10 = vrot.slane %v517_v5, 4  ;;  %v546_v20 = vor.u32 %v545_v16, %v542_v15 }
  0x1f   : > { %v532_v21 = vrot.slane %v531_v18, 4 }
  0x20   : > { %v520_v17 = vmax.bf16 %v518_v10, %v508_v0  ;;  %v547_v23 = vrot.slane %v546_v20, 4 }
  0x21   : > { %v534_v25 = vmax.bf16 %v532_v21, %v522_v6 }
  0x22   : > { %v521_v24 = vmax.bf16 %v520_v17, %v509_v19  ;;  %v549_v27 = vmax.bf16 %v547_v23, %v537_v9 }
  0x23   : > { %v535_v28 = vmax.bf16 %v534_v25, %v523_v22 }
  0x24   : > { %v550_v29 = vmax.bf16 %v549_v27, %v538_v26 }
  0x25   : > { %v536_v30 = vmax.bf16 %v535_v28, %v521_v24 }
  0x27   : > { %v551_v31 = vmax.bf16 %v550_v29, %v536_v30 }
  0x29   : > { %552 = vst [vmem:[%s507_s28] sm:$0x3] %v551_v31 }
  0x2a PF: > { %s16_s25 = sadd.s32 1, %s841_s25   ;;  %s972_s21 = smov %s833_s23 }
  0x2b   : > { %p13_p10 = scmp.ge.s32.totalorder %s16_s25, 10   ;;  %s973_s22 = smov %s837_s24 }
  0x2c   : > { %s974_s23 = smov %s977_s26  ;;  %s975_s24 = smov %s981_s27 }
  0x2d   :  { %15 = sbr.rel (!%p13_p10) target bundleno = 3 (0x3), region = 89 }

// kernel: _lambda_.19
= control target key start
LH: loop header
LB: loop body
LE: loop exit
PB: predicated region body
PF: predicated region fallthrough
CT: control target
= control target key end

     0   :  { %s1247_s18 = smov 0   ;;  %s1249_s19 = smov 0   ;;  %s1366_s0 = inlined_call_operand.vmem [shape: bf16[32,1152], index: 0, kind: input, shape index: {}]   ;;  %s1367_s1 = inlined_call_operand.vmem [shape: bf16[1152,128], index: 1, kind: input, shape index: {}]   ;;  %s1368_s2 = inlined_call_operand.vmem [shape: f32[1,128], index: 2, kind: input, shape index: {}]   ;;  %s1369_s3 = inlined_call_operand.vmem [shape: f32[1,128], index: 3, kind: input, shape index: {}]   ;;  %s1370_s4 = inlined_call_operand.vmem [shape: bf16[32,128], index: 4, kind: input, shape index: {}]   ;;  %s1371_s5 = inlined_call_operand.vmem [shape: bf16[32,128], index: 5, kind: output, shape index: {}]  }
   0x1   :  { %s1251_s20 = smov 0   ;;  %s1253_s21 = smov 0  }
   0x2   :  { %s1255_s22 = smov 0  }
   0x3 LB: > { %s27_s23 = sadd.s32 1, %s1210_s21  ;;  %p50_p1 = scmp.ne.s32.totalorder %s1202_s19, %s1198_s18  ;;  %s1214_s22 = sphi %s1255_s22, %s15_s22   ;;  %s1210_s21 = sphi %s1253_s21, %s1375_s21   ;;  %s1206_s20 = sphi %s1251_s20, %s1374_s20   ;;  %s1202_s19 = sphi %s1249_s19, %s1373_s19   ;;  %s1198_s18 = sphi %s1247_s18, %s1372_s18  }
   0x4   : > { %p28_p0 = scmp.ge.s32.totalorder %s27_s23, 3  ;;  %p51_p2 = scmp.eq.s32.totalorder %s1214_s22, 0 }
   0x5   : > { %s43_s25 = sadd.s32 1, %s1202_s19  ;;  %p964_p5 = scmp.ge.s32.totalorder %s1214_s22, 3 }
   0x6   : > { %s1377_s23 = smov (%p28_p0, %s27_s23), 0  ;;  %p52_p3 = por %p51_p2, %p50_p1 }
   0x7   : > { %s39_s24 = ssub.s32 %s1210_s21, %s1377_s23  ;;  %236 = sbr.rel (%p964_p5) target bundleno = 23 (0x17), region = 28 }
   0x8   : > { %p41_p4 = scmp.eq.s32.totalorder %s39_s24, 0 }
   0xa   : > { %s1282_s26 = scalar_select %p41_p4, %s1202_s19, %s43_s25  }
   0xe   : > { %239 = sbr.rel (!%p52_p3) target bundleno = 23 (0x17), region = 32  ;;  %s241_s27 = sand.u32 (%p52_p3), 1, %s1202_s19  }
   0xf   : > { %s1018_s28 = smul.u32 (%p52_p3), 12, %s1210_s21 }
  0x10   : > { %s1101_s29 = smul.u32 (%p52_p3), 48, %s241_s27 }
  0x11   : > { %s249_s7 = scalar_lea.vmem (%p52_p3), %s1366_s0, %s1018_s28 }
  0x12   : > { %v264_v0 = vld [vmem:[%s249_s7] sm:$0xff] (%p52_p3)  ;;  %v268_v2 = vld [vmem:[%s249_s7 + $0x48] sm:$0xff] (%p52_p3)  ;;  %s243_s8 = scalar_lea.vmem (%p52_p3), [#allocation3], %s1101_s29  ;;  %v970_v6 = vld [vmem:[%s249_s7 + $0x50] sm:$0xf] (%p52_p3) }
  0x13   : > { %v266_v1 = vld [vmem:[%s249_s7 + $0x24] sm:$0xff] (%p52_p3)  ;;  %265 = vst [vmem:[%s243_s8] sm:$0xff] (%p52_p3), %v264_v0  ;;  %269 = vst [vmem:[%s243_s8 + $0x18] sm:$0xff] (%p52_p3), %v268_v2  ;;  %v270_v3 = vld [vmem:[%s249_s7 + $0x6c] sm:$0xff] (%p52_p3) }
  0x14   : > { %267 = vst [vmem:[%s243_s8 + $0xc] sm:$0xff] (%p52_p3), %v266_v1  ;;  %v966_v4 = vld [vmem:[%s249_s7 + $0x8] sm:$0xf] (%p52_p3)  ;;  %v968_v5 = vld [vmem:[%s249_s7 + $0x2c] sm:$0xf] (%p52_p3)  ;;  %271 = vst [vmem:[%s243_s8 + $0x24] sm:$0xff] (%p52_p3), %v270_v3 }
  0x15   : > { %967 = vst [vmem:[%s243_s8 + $0x8] sm:$0xf] %v966_v4  ;;  %969 = vst [vmem:[%s243_s8 + $0x14] sm:$0xf] %v968_v5  ;;  %v972_v7 = vld [vmem:[%s249_s7 + $0x74] sm:$0xf] }
  0x16   : > { %971 = vst [vmem:[%s243_s8 + $0x20] sm:$0xf] %v970_v6  ;;  %973 = vst [vmem:[%s243_s8 + $0x2c] sm:$0xf] %v972_v7 }
  0x17 PF: > { %p974_p6 = scmp.ge.s32.totalorder %s1214_s22, 1  ;;  %p303_p7 = scmp.lt.s32.totalorder %s1214_s22, 4 }
  0x19   : > { %p304_p8 = pnand %p974_p6, %p303_p7 }
  0x1a   : > { %s310_s9 = sand.u32 (!%p304_p8), 1, %s1198_s18   ;;  %s364_s10 = smul.u32 (!%p304_p8), 48, %s1206_s20 }
  0x1b   : > { %307 = sbr.rel (%p304_p8) target bundleno = 322 (0x142), region = 62  ;;  %p976_p10 = scmp.ne.s32.totalorder (!%p304_p8), %s1206_s20, 0 }
  0x1c   : > { %s1102_s11 = smul.u32 (!%p304_p8), 48, %s310_s9  ;;  %p365_p9 = scmp.lt.s32.totalorder (!%p304_p8), %s364_s10, 143 }
  0x1e   : > { %s1299_s16 = scalar_lea.vmem (!%p304_p8), [#allocation3], %s1102_s11 }
  0x22   : > { %s1379_s10 = smov (!%p365_p9, %s364_s10), 143  ;;  %401 = sbr.rel (%p976_p10) target bundleno = 41 (0x29), region = 70 }
  0x23   : > { %s975_s12 = sshll.u32 %s1379_s10, 2  ;;  %v1216_v8 = vmov (!%p976_p10), 0.0  }
  0x24   : > { %s1297_s15 = scalar_lea.vmem %s1367_s1, %s975_s12  ;;  %402 = vst [vmem:[#allocation2] sm:$0xff] (!%p976_p10), %v1216_v8  ;;  %403 = vst [vmem:[#allocation2 + $0x8] sm:$0xff] (!%p976_p10), %v1216_v8 }
  0x25   : > { %404 = vst [vmem:[#allocation2 + $0x10] sm:$0xff] (!%p976_p10), %v1216_v8  ;;  %405 = vst [vmem:[#allocation2 + $0x18] sm:$0xff] (!%p976_p10), %v1216_v8 }
  0x29 PF: > { %v1144_v9 = vld [vmem:[%s1297_s15 + $0x40] sm:$0xff]   ;;  %v1147_v12 = vld [vmem:[%s1297_s15 + $0x48] sm:$0xff]   ;;  %v1150_v15 = vld [vmem:[%s1297_s15 + $0x50] sm:$0xff]   ;;  %p1007_p11 = scmp.ne.s32.totalorder %s1206_s20, 2 }
  0x2a   : > { %v1145_v10 = vld [vmem:[%s1297_s15] sm:$0xff]   ;;  %1043 = vmatprep.subr.bf16.mxu0 %v1144_v9  ;;  %v1148_v13 = vld [vmem:[%s1297_s15 + $0x8] sm:$0xff]   ;;  %v1151_v16 = vld [vmem:[%s1297_s15 + $0x10] sm:$0xff]  }
  0x2b   : > { %v1146_v11 = vld [vmem:[%s1297_s15 + $0x80] sm:$0xff]   ;;  %1044 = vmatpush3.bf16.msra.mxu0 %v1145_v10  ;;  %v1149_v14 = vld [vmem:[%s1297_s15 + $0x88] sm:$0xff]   ;;  %v1152_v17 = vld [vmem:[%s1297_s15 + $0x90] sm:$0xff]  }
  0x2c   : > { %1081 = vmatprep.subr.bf16.mxu1 %v1146_v11  ;;  %1045 = vmatprep.subr.bf16.mxu0 %v1147_v12  ;;  %v1153_v18 = vld [vmem:[%s1297_s15 + $0x58] sm:$0xff]   ;;  %v1156_v21 = vld [vmem:[%s1297_s15 + $0x60] sm:$0xff]   ;;  %v1159_v24 = vld [vmem:[%s1297_s15 + $0x68] sm:$0xff]  }
  0x2d   : > { %1082 = vmatpush3.bf16.msra.mxu1 %v1146_v11  ;;  %v1154_v19 = vld [vmem:[%s1297_s15 + $0x18] sm:$0xff]   ;;  %v1158_v22 = vld [vmem:[%s1297_s15 + $0xa0] sm:$0xff]   ;;  %v1161_v25 = vld [vmem:[%s1297_s15 + $0xa8] sm:$0xff]  }
  0x2e   : > { %1083 = vmatprep.subr.bf16.mxu1 %v1149_v14  ;;  %v1155_v20 = vld [vmem:[%s1297_s15 + $0x98] sm:$0xff]   ;;  %v1157_v23 = vld [vmem:[%s1297_s15 + $0x20] sm:$0xff]   ;;  %v1160_v26 = vld [vmem:[%s1297_s15 + $0x28] sm:$0xff]  }
  0x2f   : > { %1046 = vmatpush3.bf16.msra.mxu0 %v1148_v13  ;;  %v1162_v27 = vld [vmem:[%s1297_s15 + $0x70] sm:$0xff]   ;;  %v1165_v30 = vld [vmem:[%s1297_s15 + $0x78] sm:$0xff]   ;;  %v406_v45 = vld [vmem:[#allocation2] sm:$0xff] }
  0x30   : > { %1047 = vmatprep.subr.bf16.mxu0 %v1150_v15  ;;  %v1163_v28 = vld [vmem:[%s1297_s15 + $0x30] sm:$0xff]   ;;  %v1167_v31 = vld [vmem:[%s1297_s15 + $0xb8] sm:$0xff]   ;;  %v407_v50 = vld [vmem:[#allocation2 + $0x8] sm:$0xff] }
  0x31   : > { %1084 = vmatpush3.bf16.msra.mxu1 %v1149_v14  ;;  %v1164_v29 = vld [vmem:[%s1297_s15 + $0xb0] sm:$0xff]   ;;  %v1166_v34 = vld [vmem:[%s1297_s15 + $0x38] sm:$0xff]   ;;  %v1008_v5 = vld [vmem:[%s1368_s2] ss:$0 sm:$0xff] (!%p1007_p11) }
  0x32   : > { %1085 = vmatprep.subr.bf16.mxu1 %v1152_v17  ;;  %v1170_v32 = vld [vmem:[%s1299_s16 + $0x4] ss:$12 sps:$4 sm:$0xff]   ;;  %v1171_v33 = vld [vmem:[%s1299_s16 + $0x8] ss:$12 sps:$4 sm:$0xff]   ;;  %v1168_v35 = vld [vmem:[%s1299_s16] ss:$12 sps:$4 sm:$0xff]  }
  0x33   : > { %1048 = vmatpush3.bf16.msra.mxu0 %v1151_v16  ;;  %674 = vmatprep.mubr.bf16.mxu0 %v1170_v32  ;;  %v1173_v36 = vld [vmem:[%s1299_s16 + $0x1c] ss:$12 sps:$4 sm:$0xff]   ;;  %v1172_v37 = vld [vmem:[%s1299_s16 + $0x20] ss:$12 sps:$4 sm:$0xff]   ;;  %v1175_v38 = vld [vmem:[%s1299_s16 + $0x18] ss:$12 sps:$4 sm:$0xff]  }
  0x34   : > { %1049 = vmatprep.subr.bf16.mxu0 %v1153_v18  ;;  %1097 = vmatprep.mubr.bf16.mxu1 %v1171_v33  ;;  %v408_v59 = vld [vmem:[#allocation2 + $0x10] sm:$0xff]  ;;  %v409_v63 = vld [vmem:[#allocation2 + $0x18] sm:$0xff]  ;;  %v1009_v8 = vld [vmem:[%s1369_s3] ss:$0 sm:$0xff] (!%p1007_p11) }
  0x35   : > { %1086 = vmatpush3.bf16.msra.mxu1 %v1152_v17  ;;  %v1024_v9 = vld [vmem:[%s1370_s4] sm:$0xff] (!%p1007_p11)   ;;  %v1041_v15 = vld [vmem:[%s1370_s4 + $0x8] sm:$0xff] (!%p1007_p11)  }
  0x36   : > { %1087 = vmatprep.subr.bf16.mxu1 %v1155_v20  ;;  %v1025_v11 = vunpack.c.l.bf16 (!%p1007_p11), %v1024_v9  ;;  %v1026_v12 = vunpack.c.h.bf16 (!%p1007_p11), %v1024_v9 }
  0x37   : > { %1050 = vmatpush3.bf16.msra.mxu0 %v1154_v19  ;;  %v1029_v19 = vunpack.c.l.bf16 (!%p1007_p11), %v1041_v15 }
  0x38   : > { %1051 = vmatprep.subr.bf16.mxu0 %v1156_v21  ;;  %v1030_v21 = vunpack.c.h.bf16 (!%p1007_p11), %v1041_v15 }
  0x39   : > { %1088 = vmatpush3.bf16.msra.mxu1 %v1155_v20 }
  0x3a   : > { %1089 = vmatprep.subr.bf16.mxu1 %v1158_v22 }
  0x3b   : > { %1052 = vmatpush3.bf16.msra.mxu0 %v1157_v23 }
  0x3c   : > { %1053 = vmatprep.subr.bf16.mxu0 %v1159_v24 }
  0x3d   : > { %1090 = vmatpush3.bf16.msra.mxu1 %v1158_v22 }
  0x3e   : > { %1091 = vmatprep.subr.bf16.mxu1 %v1161_v25 }
  0x3f   : > { %1054 = vmatpush3.bf16.msra.mxu0 %v1160_v26 }
  0x40   : > { %1055 = vmatprep.subr.bf16.mxu0 %v1162_v27 }
  0x41   : > { %1092 = vmatpush3.bf16.msra.mxu1 %v1161_v25 }
  0x42   : > { %1093 = vmatprep.subr.bf16.mxu1 %v1164_v29 }
  0x43   : > { %1056 = vmatpush3.bf16.msra.mxu0 %v1163_v28 }
  0x44   : > { %1057 = vmatprep.subr.bf16.mxu0 %v1165_v30 }
  0x45   : > { %1094 = vmatpush3.bf16.msra.mxu1 %v1164_v29 }
  0x46   : > { %1095 = vmatprep.subr.bf16.mxu1 %v1167_v31 }
  0x47   : > { %1058 = vmatpush3.bf16.msra.mxu0 %v1166_v34 }
  0x49   : > { %1096 = vmatpush3.bf16.msra.mxu1 %v1167_v31 }
  0x4a   : > { %675 = vmatmul.mubr.bf16.vlgmr.msra.gmra.mrb[0].mxu0 %v1168_v35 }
  0x4b   : > { %682 = vmatprep.mubr.bf16.mxu0 %v1173_v36 }
  0x4c   : > { %1098 = vmatmul.mubr.bf16.vlgmr.msra.gmra.mrb[0].mxu1 %v1172_v37 }
  0x52   : > { %683 = vmatmul.mubr.bf16.gmra.mrb[4].mxu0 %v1175_v38 }
 0x11d   : > { %v1059_v39 = vpop.f32.mrb[0].mxu0 }
 0x11e   : > { %v1060_v40 = vpop.f32.mrb[1].mxu0 }
 0x11f   : > { %v1061_v41 = vadd.f32 %v1060_v40, %v1059_v39  ;;  %v1062_v42 = vpop.f32.mrb[2].mxu0  ;;  %v1099_v43 = vpop.f32.mrb[0].mxu1 }
 0x120   : > { %v1063_v44 = vpop.f32.mrb[3].mxu0  ;;  %v725_v46 = vpop.f32.mrb[1].mxu1 }
 0x121   : > { %v1064_v47 = vadd.f32 %v1063_v44, %v1062_v42  ;;  %v726_v48 = vadd.f32 %v1061_v41, %v725_v46  ;;  %v1100_v49 = vpop.f32.mrb[2].mxu1 }
 0x122   : > { %v728_v51 = vpop.f32.mrb[3].mxu1 }
 0x123   : > { %v740_v52 = vadd.f32 %v726_v48, %v406_v45  ;;  %v729_v53 = vadd.f32 %v1064_v47, %v728_v51 }
 0x125   : > { %744 = vst [vmem:[#allocation2] sm:$0xff] %v740_v52  ;;  %v741_v54 = vadd.f32 %v729_v53, %v407_v50  ;;  %v1065_v55 = vpop.f32.mrb[4].mxu0 }
 0x126   : > { %v1066_v56 = vpop.f32.mrb[5].mxu0 }
 0x127   : > { %745 = vst [vmem:[#allocation2 + $0x8] sm:$0xff] %v741_v54  ;;  %v1067_v57 = vadd.f32 %v1066_v56, %v1065_v55  ;;  %v1068_v58 = vpop.f32.mrb[6].mxu0 }
 0x128   : > { %v1069_v60 = vpop.f32.mrb[7].mxu0 }
 0x129   : > { %v734_v61 = vadd.f32 %v1099_v43, %v1067_v57  ;;  %v1070_v62 = vadd.f32 %v1069_v60, %v1068_v58  ;;  %751 = sbr.rel (%p1007_p11) target bundleno = 322 (0x142), region = 74 }
 0x12b   : > { %v742_v0 = vadd.f32 %v734_v61, %v408_v59  ;;  %v737_v1 = vadd.f32 %v1100_v49, %v1070_v62 }
 0x12c   : > { %v752_v3 = vld [vmem:[#allocation2] sm:$0xff] (!%p1007_p11) }
 0x12d   : > { %746 = vst [vmem:[#allocation2 + $0x10] sm:$0xff] %v742_v0  ;;  %v743_v2 = vadd.f32 %v737_v1, %v409_v63  ;;  %v763_v6 = vmul.f32 (!%p1007_p11), %v1008_v5, %v752_v3 }
 0x12e   : > { %v753_v4 = vld [vmem:[#allocation2 + $0x8] sm:$0xff] (!%p1007_p11) }
 0x12f   : > { %747 = vst [vmem:[#allocation2 + $0x18] sm:$0xff] %v743_v2  ;;  %v764_v7 = vmul.f32 (!%p1007_p11), %v1008_v5, %v753_v4  ;;  %v774_v16 = vadd.f32 (!%p1007_p11), %v1009_v8, %v763_v6 }
 0x131   : > { %v775_v17 = vadd.f32 %v1009_v8, %v764_v7  ;;  %v786_v22 = vadd.f32 %v1025_v11, %v774_v16 }
 0x133   : > { %v787_v23 = vadd.f32 %v1026_v12, %v775_v17  ;;  %v790_v26 = vmax.f32 %v786_v22, 0.0 }
 0x134   : > { %v754_v10 = vld [vmem:[#allocation2 + $0x10] sm:$0xff] }
 0x135   : > { %v765_v14 = vmul.f32 %v1008_v5, %v754_v10  ;;  %v791_v27 = vmax.f32 %v787_v23, 0.0 }
 0x136   : > { %v755_v13 = vld [vmem:[#allocation2 + $0x18] sm:$0xff] }
 0x137   : > { %v766_v18 = vmul.f32 %v1008_v5, %v755_v13  ;;  %v776_v20 = vadd.f32 %v1009_v8, %v765_v14  ;;  %v1034_v30 = vpack.c.bf16 %v791_v27, %v790_v26 }
 0x139   : > { %v777_v24 = vadd.f32 %v1009_v8, %v766_v18  ;;  %v788_v25 = vadd.f32 %v1029_v19, %v776_v20  ;;  %1035 = vst [vmem:[%s1371_s5] sm:$0xff] %v1034_v30  }
 0x13b   : > { %v789_v28 = vadd.f32 %v1030_v21, %v777_v24  ;;  %v792_v29 = vmax.f32 %v788_v25, 0.0 }
 0x13d   : > { %v793_v31 = vmax.f32 %v789_v28, 0.0 }
 0x13f   : > { %v1039_v32 = vpack.c.bf16 %v793_v31, %v792_v29 }
 0x141   : > { %1042 = vst [vmem:[%s1371_s5 + $0x8] sm:$0xff] %v1039_v32  }
 0x142 PF: > { %s15_s22 = sadd.s32 1, %s1214_s22   ;;  %s1372_s18 = smov %s1202_s19 }
 0x143   : > { %p12_p12 = scmp.ge.s32.totalorder %s15_s22, 5   ;;  %s1373_s19 = smov %s1282_s26 }
 0x144   : > { %s1374_s20 = smov %s1210_s21  ;;  %s1375_s21 = smov %s1377_s23 }
 0x145   :  { %14 = sbr.rel (!%p12_p12) target bundleno = 3 (0x3), region = 127 }

// kernel: _lambda_.18
= control target key start
LH: loop header
LB: loop body
LE: loop exit
PB: predicated region body
PF: predicated region fallthrough
CT: control target
= control target key end

     0   :  { %s1142_s15 = smov 0   ;;  %s1144_s16 = smov 0   ;;  %s1255_s0 = inlined_call_operand.vmem [shape: bf16[32,1152], index: 0, kind: input, shape index: {}]   ;;  %s1256_s1 = inlined_call_operand.vmem [shape: bf16[1152,128], index: 1, kind: input, shape index: {}]   ;;  %s1257_s2 = inlined_call_operand.vmem [shape: f32[1,128], index: 2, kind: input, shape index: {}]   ;;  %s1258_s3 = inlined_call_operand.vmem [shape: f32[1,128], index: 3, kind: input, shape index: {}]   ;;  %s1259_s4 = inlined_call_operand.vmem [shape: bf16[32,128], index: 4, kind: output, shape index: {}]  }
   0x1   :  { %s1146_s17 = smov 0   ;;  %s1148_s18 = smov 0  }
   0x2   :  { %s1150_s19 = smov 0  }
   0x3 LB: > { %s26_s20 = sadd.s32 1, %s1110_s18  ;;  %p49_p1 = scmp.ne.s32.totalorder %s1102_s16, %s1098_s15  ;;  %s1114_s19 = sphi %s1150_s19, %s14_s19   ;;  %s1110_s18 = sphi %s1148_s18, %s1263_s18   ;;  %s1106_s17 = sphi %s1146_s17, %s1262_s17   ;;  %s1102_s16 = sphi %s1144_s16, %s1261_s16   ;;  %s1098_s15 = sphi %s1142_s15, %s1260_s15  }
   0x4   : > { %p27_p0 = scmp.ge.s32.totalorder %s26_s20, 3  ;;  %p50_p2 = scmp.eq.s32.totalorder %s1114_s19, 0 }
   0x5   : > { %s42_s22 = sadd.s32 1, %s1102_s16  ;;  %p873_p5 = scmp.ge.s32.totalorder %s1114_s19, 3 }
   0x6   : > { %s1265_s20 = smov (%p27_p0, %s26_s20), 0  ;;  %p51_p3 = por %p50_p2, %p49_p1 }
   0x7   : > { %s38_s21 = ssub.s32 %s1110_s18, %s1265_s20  ;;  %195 = sbr.rel (%p873_p5) target bundleno = 23 (0x17), region = 24 }
   0x8   : > { %p40_p4 = scmp.eq.s32.totalorder %s38_s21, 0 }
   0xa   : > { %s1177_s23 = scalar_select %p40_p4, %s1102_s16, %s42_s22  }
   0xe   : > { %198 = sbr.rel (!%p51_p3) target bundleno = 23 (0x17), region = 28  ;;  %s200_s24 = sand.u32 (%p51_p3), 1, %s1102_s16  }
   0xf   : > { %s927_s25 = smul.u32 (%p51_p3), 12, %s1110_s18 }
  0x10   : > { %s1001_s26 = smul.u32 (%p51_p3), 48, %s200_s24 }
  0x11   : > { %s208_s29 = scalar_lea.vmem (%p51_p3), %s1255_s0, %s927_s25 }
  0x12   : > { %v223_v0 = vld [vmem:[%s208_s29] sm:$0xff] (%p51_p3)  ;;  %v227_v2 = vld [vmem:[%s208_s29 + $0x48] sm:$0xff] (%p51_p3)  ;;  %s202_s30 = scalar_lea.vmem (%p51_p3), [#allocation3], %s1001_s26  ;;  %v879_v6 = vld [vmem:[%s208_s29 + $0x50] sm:$0xf] (%p51_p3) }
  0x13   : > { %v225_v1 = vld [vmem:[%s208_s29 + $0x24] sm:$0xff] (%p51_p3)  ;;  %224 = vst [vmem:[%s202_s30] sm:$0xff] (%p51_p3), %v223_v0  ;;  %228 = vst [vmem:[%s202_s30 + $0x18] sm:$0xff] (%p51_p3), %v227_v2  ;;  %v229_v3 = vld [vmem:[%s208_s29 + $0x6c] sm:$0xff] (%p51_p3) }
  0x14   : > { %226 = vst [vmem:[%s202_s30 + $0xc] sm:$0xff] (%p51_p3), %v225_v1  ;;  %v875_v4 = vld [vmem:[%s208_s29 + $0x8] sm:$0xf] (%p51_p3)  ;;  %v877_v5 = vld [vmem:[%s208_s29 + $0x2c] sm:$0xf] (%p51_p3)  ;;  %230 = vst [vmem:[%s202_s30 + $0x24] sm:$0xff] (%p51_p3), %v229_v3 }
  0x15   : > { %876 = vst [vmem:[%s202_s30 + $0x8] sm:$0xf] %v875_v4  ;;  %878 = vst [vmem:[%s202_s30 + $0x14] sm:$0xf] %v877_v5  ;;  %v881_v7 = vld [vmem:[%s208_s29 + $0x74] sm:$0xf] }
  0x16   : > { %880 = vst [vmem:[%s202_s30 + $0x20] sm:$0xf] %v879_v6  ;;  %882 = vst [vmem:[%s202_s30 + $0x2c] sm:$0xf] %v881_v7 }
  0x17 PF: > { %p883_p6 = scmp.ge.s32.totalorder %s1114_s19, 1  ;;  %p262_p7 = scmp.lt.s32.totalorder %s1114_s19, 4 }
  0x19   : > { %p263_p8 = pnand %p883_p6, %p262_p7 }
  0x1a   : > { %s269_s5 = sand.u32 (!%p263_p8), 1, %s1098_s15   ;;  %s313_s6 = smul.u32 (!%p263_p8), 48, %s1106_s17 }
  0x1b   : > { %266 = sbr.rel (%p263_p8) target bundleno = 320 (0x140), region = 58  ;;  %p885_p10 = scmp.ne.s32.totalorder (!%p263_p8), %s1106_s17, 0 }
  0x1c   : > { %s1002_s7 = smul.u32 (!%p263_p8), 48, %s269_s5  ;;  %p314_p9 = scmp.lt.s32.totalorder (!%p263_p8), %s313_s6, 143 }
  0x1e   : > { %s1194_s12 = scalar_lea.vmem (!%p263_p8), [#allocation3], %s1002_s7 }
  0x22   : > { %s1267_s6 = smov (!%p314_p9, %s313_s6), 143  ;;  %341 = sbr.rel (%p885_p10) target bundleno = 41 (0x29), region = 66 }
  0x23   : > { %s884_s8 = sshll.u32 %s1267_s6, 2  ;;  %v1116_v8 = vmov (!%p885_p10), 0.0  }
  0x24   : > { %s1192_s11 = scalar_lea.vmem %s1256_s1, %s884_s8  ;;  %342 = vst [vmem:[#allocation2] sm:$0xff] (!%p885_p10), %v1116_v8  ;;  %343 = vst [vmem:[#allocation2 + $0x8] sm:$0xff] (!%p885_p10), %v1116_v8 }
  0x25   : > { %344 = vst [vmem:[#allocation2 + $0x10] sm:$0xff] (!%p885_p10), %v1116_v8  ;;  %345 = vst [vmem:[#allocation2 + $0x18] sm:$0xff] (!%p885_p10), %v1116_v8 }
  0x29 PF: > { %v1044_v9 = vld [vmem:[%s1192_s11 + $0x40] sm:$0xff]   ;;  %v1047_v12 = vld [vmem:[%s1192_s11 + $0x48] sm:$0xff]   ;;  %v1050_v15 = vld [vmem:[%s1192_s11 + $0x50] sm:$0xff]   ;;  %p916_p11 = scmp.ne.s32.totalorder %s1106_s17, 2 }
  0x2a   : > { %v1045_v10 = vld [vmem:[%s1192_s11] sm:$0xff]   ;;  %943 = vmatprep.subr.bf16.mxu0 %v1044_v9  ;;  %v1048_v13 = vld [vmem:[%s1192_s11 + $0x8] sm:$0xff]   ;;  %v1051_v16 = vld [vmem:[%s1192_s11 + $0x10] sm:$0xff]  }
  0x2b   : > { %v1046_v11 = vld [vmem:[%s1192_s11 + $0x80] sm:$0xff]   ;;  %944 = vmatpush3.bf16.msra.mxu0 %v1045_v10  ;;  %v1049_v14 = vld [vmem:[%s1192_s11 + $0x88] sm:$0xff]   ;;  %v1052_v17 = vld [vmem:[%s1192_s11 + $0x90] sm:$0xff]  }
  0x2c   : > { %981 = vmatprep.subr.bf16.mxu1 %v1046_v11  ;;  %945 = vmatprep.subr.bf16.mxu0 %v1047_v12  ;;  %v1053_v18 = vld [vmem:[%s1192_s11 + $0x58] sm:$0xff]   ;;  %v1056_v21 = vld [vmem:[%s1192_s11 + $0x60] sm:$0xff]   ;;  %v1059_v24 = vld [vmem:[%s1192_s11 + $0x68] sm:$0xff]  }
  0x2d   : > { %982 = vmatpush3.bf16.msra.mxu1 %v1046_v11  ;;  %v1054_v19 = vld [vmem:[%s1192_s11 + $0x18] sm:$0xff]   ;;  %v1058_v22 = vld [vmem:[%s1192_s11 + $0xa0] sm:$0xff]   ;;  %v1061_v25 = vld [vmem:[%s1192_s11 + $0xa8] sm:$0xff]  }
  0x2e   : > { %983 = vmatprep.subr.bf16.mxu1 %v1049_v14  ;;  %v1055_v20 = vld [vmem:[%s1192_s11 + $0x98] sm:$0xff]   ;;  %v1057_v23 = vld [vmem:[%s1192_s11 + $0x20] sm:$0xff]   ;;  %v1060_v26 = vld [vmem:[%s1192_s11 + $0x28] sm:$0xff]  }
  0x2f   : > { %946 = vmatpush3.bf16.msra.mxu0 %v1048_v13  ;;  %v1062_v27 = vld [vmem:[%s1192_s11 + $0x70] sm:$0xff]   ;;  %v1065_v30 = vld [vmem:[%s1192_s11 + $0x78] sm:$0xff]   ;;  %v346_v45 = vld [vmem:[#allocation2] sm:$0xff] }
  0x30   : > { %947 = vmatprep.subr.bf16.mxu0 %v1050_v15  ;;  %v1063_v28 = vld [vmem:[%s1192_s11 + $0x30] sm:$0xff]   ;;  %v1067_v31 = vld [vmem:[%s1192_s11 + $0xb8] sm:$0xff]   ;;  %v347_v50 = vld [vmem:[#allocation2 + $0x8] sm:$0xff] }
  0x31   : > { %984 = vmatpush3.bf16.msra.mxu1 %v1049_v14  ;;  %v1064_v29 = vld [vmem:[%s1192_s11 + $0xb0] sm:$0xff]   ;;  %v1066_v34 = vld [vmem:[%s1192_s11 + $0x38] sm:$0xff]   ;;  %v917_v5 = vld [vmem:[%s1257_s2] ss:$0 sm:$0xff] (!%p916_p11) }
  0x32   : > { %985 = vmatprep.subr.bf16.mxu1 %v1052_v17  ;;  %v1070_v32 = vld [vmem:[%s1194_s12 + $0x4] ss:$12 sps:$4 sm:$0xff]   ;;  %v1071_v33 = vld [vmem:[%s1194_s12 + $0x8] ss:$12 sps:$4 sm:$0xff]   ;;  %v1068_v35 = vld [vmem:[%s1194_s12] ss:$12 sps:$4 sm:$0xff]  }
  0x33   : > { %948 = vmatpush3.bf16.msra.mxu0 %v1051_v16  ;;  %614 = vmatprep.mubr.bf16.mxu0 %v1070_v32  ;;  %v1073_v36 = vld [vmem:[%s1194_s12 + $0x1c] ss:$12 sps:$4 sm:$0xff]   ;;  %v1072_v37 = vld [vmem:[%s1194_s12 + $0x20] ss:$12 sps:$4 sm:$0xff]   ;;  %v1075_v38 = vld [vmem:[%s1194_s12 + $0x18] ss:$12 sps:$4 sm:$0xff]  }
  0x34   : > { %949 = vmatprep.subr.bf16.mxu0 %v1053_v18  ;;  %997 = vmatprep.mubr.bf16.mxu1 %v1071_v33  ;;  %v348_v59 = vld [vmem:[#allocation2 + $0x10] sm:$0xff]  ;;  %v349_v63 = vld [vmem:[#allocation2 + $0x18] sm:$0xff]  ;;  %v918_v8 = vld [vmem:[%s1258_s3] ss:$0 sm:$0xff] (!%p916_p11) }
  0x35   : > { %986 = vmatpush3.bf16.msra.mxu1 %v1052_v17 }
  0x36   : > { %987 = vmatprep.subr.bf16.mxu1 %v1055_v20 }
  0x37   : > { %950 = vmatpush3.bf16.msra.mxu0 %v1054_v19 }
  0x38   : > { %951 = vmatprep.subr.bf16.mxu0 %v1056_v21 }
  0x39   : > { %988 = vmatpush3.bf16.msra.mxu1 %v1055_v20 }
  0x3a   : > { %989 = vmatprep.subr.bf16.mxu1 %v1058_v22 }
  0x3b   : > { %952 = vmatpush3.bf16.msra.mxu0 %v1057_v23 }
  0x3c   : > { %953 = vmatprep.subr.bf16.mxu0 %v1059_v24 }
  0x3d   : > { %990 = vmatpush3.bf16.msra.mxu1 %v1058_v22 }
  0x3e   : > { %991 = vmatprep.subr.bf16.mxu1 %v1061_v25 }
  0x3f   : > { %954 = vmatpush3.bf16.msra.mxu0 %v1060_v26 }
  0x40   : > { %955 = vmatprep.subr.bf16.mxu0 %v1062_v27 }
  0x41   : > { %992 = vmatpush3.bf16.msra.mxu1 %v1061_v25 }
  0x42   : > { %993 = vmatprep.subr.bf16.mxu1 %v1064_v29 }
  0x43   : > { %956 = vmatpush3.bf16.msra.mxu0 %v1063_v28 }
  0x44   : > { %957 = vmatprep.subr.bf16.mxu0 %v1065_v30 }
  0x45   : > { %994 = vmatpush3.bf16.msra.mxu1 %v1064_v29 }
  0x46   : > { %995 = vmatprep.subr.bf16.mxu1 %v1067_v31 }
  0x47   : > { %958 = vmatpush3.bf16.msra.mxu0 %v1066_v34 }
  0x49   : > { %996 = vmatpush3.bf16.msra.mxu1 %v1067_v31 }
  0x4a   : > { %615 = vmatmul.mubr.bf16.vlgmr.msra.gmra.mrb[0].mxu0 %v1068_v35 }
  0x4b   : > { %622 = vmatprep.mubr.bf16.mxu0 %v1073_v36 }
  0x4c   : > { %998 = vmatmul.mubr.bf16.vlgmr.msra.gmra.mrb[0].mxu1 %v1072_v37 }
  0x52   : > { %623 = vmatmul.mubr.bf16.gmra.mrb[4].mxu0 %v1075_v38 }
 0x11d   : > { %v959_v39 = vpop.f32.mrb[0].mxu0 }
 0x11e   : > { %v960_v40 = vpop.f32.mrb[1].mxu0 }
 0x11f   : > { %v961_v41 = vadd.f32 %v960_v40, %v959_v39  ;;  %v962_v42 = vpop.f32.mrb[2].mxu0  ;;  %v999_v43 = vpop.f32.mrb[0].mxu1 }
 0x120   : > { %v963_v44 = vpop.f32.mrb[3].mxu0  ;;  %v665_v46 = vpop.f32.mrb[1].mxu1 }
 0x121   : > { %v964_v47 = vadd.f32 %v963_v44, %v962_v42  ;;  %v666_v48 = vadd.f32 %v961_v41, %v665_v46  ;;  %v1000_v49 = vpop.f32.mrb[2].mxu1 }
 0x122   : > { %v668_v51 = vpop.f32.mrb[3].mxu1 }
 0x123   : > { %v680_v52 = vadd.f32 %v666_v48, %v346_v45  ;;  %v669_v53 = vadd.f32 %v964_v47, %v668_v51 }
 0x125   : > { %684 = vst [vmem:[#allocation2] sm:$0xff] %v680_v52  ;;  %v681_v54 = vadd.f32 %v669_v53, %v347_v50  ;;  %v965_v55 = vpop.f32.mrb[4].mxu0 }
 0x126   : > { %v966_v56 = vpop.f32.mrb[5].mxu0 }
 0x127   : > { %685 = vst [vmem:[#allocation2 + $0x8] sm:$0xff] %v681_v54  ;;  %v967_v57 = vadd.f32 %v966_v56, %v965_v55  ;;  %v968_v58 = vpop.f32.mrb[6].mxu0 }
 0x128   : > { %v969_v60 = vpop.f32.mrb[7].mxu0 }
 0x129   : > { %v674_v61 = vadd.f32 %v999_v43, %v967_v57  ;;  %v970_v62 = vadd.f32 %v969_v60, %v968_v58  ;;  %691 = sbr.rel (%p916_p11) target bundleno = 320 (0x140), region = 70 }
 0x12b   : > { %v682_v0 = vadd.f32 %v674_v61, %v348_v59  ;;  %v677_v1 = vadd.f32 %v1000_v49, %v970_v62 }
 0x12c   : > { %v692_v3 = vld [vmem:[#allocation2] sm:$0xff] (!%p916_p11) }
 0x12d   : > { %686 = vst [vmem:[#allocation2 + $0x10] sm:$0xff] %v682_v0  ;;  %v683_v2 = vadd.f32 %v677_v1, %v349_v63  ;;  %v703_v6 = vmul.f32 (!%p916_p11), %v917_v5, %v692_v3 }
 0x12e   : > { %v693_v4 = vld [vmem:[#allocation2 + $0x8] sm:$0xff] (!%p916_p11) }
 0x12f   : > { %687 = vst [vmem:[#allocation2 + $0x18] sm:$0xff] %v683_v2  ;;  %v704_v7 = vmul.f32 (!%p916_p11), %v917_v5, %v693_v4  ;;  %v714_v13 = vadd.f32 (!%p916_p11), %v918_v8, %v703_v6 }
 0x131   : > { %v715_v14 = vadd.f32 %v918_v8, %v704_v7  ;;  %v718_v17 = vmax.f32 %v714_v13, 0.0 }
 0x133   : > { %v719_v18 = vmax.f32 %v715_v14, 0.0 }
 0x134   : > { %v694_v9 = vld [vmem:[#allocation2 + $0x10] sm:$0xff] }
 0x135   : > { %v705_v11 = vmul.f32 %v917_v5, %v694_v9  ;;  %v935_v21 = vpack.c.bf16 %v719_v18, %v718_v17 }
 0x136   : > { %v695_v10 = vld [vmem:[#allocation2 + $0x18] sm:$0xff] }
 0x137   : > { %v706_v12 = vmul.f32 %v917_v5, %v695_v10  ;;  %v716_v15 = vadd.f32 %v918_v8, %v705_v11  ;;  %936 = vst [vmem:[%s1259_s4] sm:$0xff] %v935_v21  }
 0x139   : > { %v717_v16 = vadd.f32 %v918_v8, %v706_v12  ;;  %v720_v19 = vmax.f32 %v716_v15, 0.0 }
 0x13b   : > { %v721_v20 = vmax.f32 %v717_v16, 0.0 }
 0x13d   : > { %v940_v22 = vpack.c.bf16 %v721_v20, %v720_v19 }
 0x13f   : > { %942 = vst [vmem:[%s1259_s4 + $0x8] sm:$0xff] %v940_v22  }
 0x140 PF: > { %s14_s19 = sadd.s32 1, %s1114_s19   ;;  %s1260_s15 = smov %s1102_s16 }
 0x141   : > { %p11_p12 = scmp.ge.s32.totalorder %s14_s19, 5   ;;  %s1261_s16 = smov %s1177_s23 }
 0x142   : > { %s1262_s17 = smov %s1110_s18  ;;  %s1263_s18 = smov %s1265_s20 }
 0x143   :  { %13 = sbr.rel (!%p11_p12) target bundleno = 3 (0x3), region = 120 }

// kernel: _lambda_.22
= control target key start
LH: loop header
LB: loop body
LE: loop exit
PB: predicated region body
PF: predicated region fallthrough
CT: control target
= control target key end

     0   :  { %s934_s15 = smov 0   ;;  %s936_s16 = smov 0   ;;  %s1012_s0 = inlined_call_operand.vmem [shape: bf16[8,1152], index: 0, kind: input, shape index: {}]   ;;  %s1013_s1 = inlined_call_operand.vmem [shape: bf16[1152,128], index: 1, kind: input, shape index: {}]   ;;  %s1014_s2 = inlined_call_operand.vmem [shape: f32[1,128], index: 2, kind: input, shape index: {}]   ;;  %s1015_s3 = inlined_call_operand.vmem [shape: f32[1,128], index: 3, kind: input, shape index: {}]   ;;  %s1016_s4 = inlined_call_operand.vmem [shape: bf16[8,128], index: 4, kind: output, shape index: {}]  }
   0x1   :  { %s938_s17 = smov 0  }
   0x2 LB: > { %s26_s18 = sadd.s32 1, %s900_s16  ;;  %p740_p0 = scmp.ge.s32.totalorder %s904_s17, 1  ;;  %s904_s17 = sphi %s938_s17, %s14_s17   ;;  %s900_s16 = sphi %s936_s16, %s1018_s16   ;;  %s896_s15 = sphi %s934_s15, %s1017_s15  }
   0x3   : > { %p27_p1 = scmp.ge.s32.totalorder %s26_s18, 3  ;;  %p222_p2 = scmp.lt.s32.totalorder %s904_s17, 4 }
   0x5   : > { %s1020_s18 = smov (%p27_p1, %s26_s18), 0  ;;  %p223_p3 = pnand %p740_p0, %p222_p2 }
   0x6   : > { %s268_s19 = smul.u32 (!%p223_p3), 3, %s896_s15  ;;  %p743_p6 = scmp.ne.s32.totalorder (!%p223_p3), %s896_s15, 0 }
   0x7   : > { %226 = sbr.rel (%p223_p3) target bundleno = 293 (0x125), region = 36 }
   0x8   : > { %s278_s20 = smul.u32 (!%p223_p3), 48, %s896_s15  ;;  %p271_p4 = scmp.lt.s32.totalorder (!%p223_p3), %s268_s19, 8 }
   0xa   : > { %p279_p5 = scmp.lt.s32.totalorder (!%p223_p3), %s278_s20, 143 }
   0xe   : > { %s1022_s19 = smov (!%p271_p4, %s268_s19), 8  ;;  %s1024_s20 = smov (!%p279_p5, %s278_s20), 143 }
   0xf   : > { %s741_s21 = sshll.u32 %s1022_s19, 2  ;;  %s742_s25 = sshll.u32 %s1024_s20, 2  ;;  %v906_v0 = vmov (!%p743_p6), 0.0  }
  0x10   : > { %s959_s24 = scalar_lea.vmem %s1012_s0, %s741_s21  ;;  %s964_s28 = scalar_lea.vmem %s1013_s1, %s742_s25  ;;  %305 = vst [vmem:[#allocation2] sm:$0xff] (!%p743_p6), %v906_v0 }
  0x11   : > { %304 = sbr.rel (%p743_p6) target bundleno = 24 (0x18), region = 40 }
  0x18 PF: > { %v855_v1 = vld [vmem:[%s964_s28 + $0x40] sm:$0xff]   ;;  %v907_v2 = vmov 0.0   ;;  %vm908_vm0 = vmmov 0   ;;  %v858_v5 = vld [vmem:[%s964_s28 + $0x48] sm:$0xff]   ;;  %v861_v8 = vld [vmem:[%s964_s28 + $0x50] sm:$0xff]   ;;  %p771_p7 = scmp.ne.s32.totalorder %s896_s15, 2 }
  0x19   : > { %808 = vmatprep.subr.bf16.mxu1 %v907_v2  ;;  %v856_v3 = vld [vmem:[%s964_s28] sm:$0xff]   ;;  %777 = vmatprep.subr.bf16.mxu0 %v855_v1  ;;  %v859_v6 = vld [vmem:[%s964_s28 + $0x8] sm:$0xff]   ;;  %v862_v9 = vld [vmem:[%s964_s28 + $0x10] sm:$0xff]  }
  0x1a   : > { %v857_v4 = vld [vmem:[%s964_s28 + $0x80] sm:$0xff]   ;;  %824 = vmatprep.mubr.msk.bf16.mxu1 %vm908_vm0, %v907_v2  ;;  %778 = vmatpush3.bf16.msra.mxu0 %v856_v3  ;;  %v860_v7 = vld [vmem:[%s964_s28 + $0x88] sm:$0xff]   ;;  %v863_v10 = vld [vmem:[%s964_s28 + $0x90] sm:$0xff]  }
  0x1b   : > { %809 = vmatpush3.bf16.msra.mxu1 %v857_v4  ;;  %779 = vmatprep.subr.bf16.mxu0 %v858_v5  ;;  %v864_v11 = vld [vmem:[%s964_s28 + $0x58] sm:$0xff]   ;;  %v867_v14 = vld [vmem:[%s964_s28 + $0x60] sm:$0xff]   ;;  %v870_v17 = vld [vmem:[%s964_s28 + $0x68] sm:$0xff]  }
  0x1c   : > { %810 = vmatprep.subr.bf16.mxu1 %v907_v2  ;;  %v865_v12 = vld [vmem:[%s964_s28 + $0x18] sm:$0xff]   ;;  %v868_v15 = vld [vmem:[%s964_s28 + $0x20] sm:$0xff]   ;;  %v871_v18 = vld [vmem:[%s964_s28 + $0x28] sm:$0xff]  }
  0x1d   : > { %v866_v13 = vld [vmem:[%s964_s28 + $0x98] sm:$0xff]   ;;  %v869_v16 = vld [vmem:[%s964_s28 + $0xa0] sm:$0xff]   ;;  %v872_v19 = vld [vmem:[%s964_s28 + $0xa8] sm:$0xff]  }
  0x1e   : > { %780 = vmatpush3.bf16.msra.mxu0 %v859_v6  ;;  %v873_v20 = vld [vmem:[%s964_s28 + $0x70] sm:$0xff]   ;;  %v876_v23 = vld [vmem:[%s964_s28 + $0x78] sm:$0xff]   ;;  %v307_v24 = vld [vmem:[%s959_s24] sm:$0xff] }
  0x1f   : > { %811 = vmatpush3.bf16.msra.mxu1 %v860_v7  ;;  %781 = vmatprep.subr.bf16.mxu0 %v861_v8  ;;  %v874_v21 = vld [vmem:[%s964_s28 + $0x30] sm:$0xff]   ;;  %v745_v25 = vcombine.high %v307_v24, %v307_v24  ;;  %v877_v26 = vld [vmem:[%s964_s28 + $0x38] sm:$0xff]   ;;  %v744_v28 = vcombine.low %v307_v24, %v307_v24  ;;  %v881_v29 = vld [vmem:[%s959_s24 + $0x8] ss:$0 sps:$4 sm:$0xff]  }
  0x20   : > { %812 = vmatprep.subr.bf16.mxu1 %v907_v2  ;;  %v875_v22 = vld [vmem:[%s964_s28 + $0xb0] sm:$0xff]   ;;  %v878_v27 = vld [vmem:[%s964_s28 + $0xb8] sm:$0xff]   ;;  %v306_v36 = vld [vmem:[#allocation2] sm:$0xff] }
  0x21   : > { %544 = vmatprep.mubr.bf16.mxu0 %v745_v25  ;;  %v772_v43 = vld [vmem:[%s1014_s2] ss:$0 sm:$0xff] (!%p771_p7) }
  0x22   : > { %782 = vmatpush3.bf16.msra.mxu0 %v862_v9  ;;  %v773_v44 = vld [vmem:[%s1015_s3] ss:$0 sm:$0xff] (!%p771_p7) }
  0x23   : > { %813 = vmatpush3.bf16.msra.mxu1 %v863_v10  ;;  %783 = vmatprep.subr.bf16.mxu0 %v864_v11 }
  0x24   : > { %814 = vmatprep.subr.bf16.mxu1 %v907_v2 }
  0x26   : > { %784 = vmatpush3.bf16.msra.mxu0 %v865_v12 }
  0x27   : > { %815 = vmatpush3.bf16.msra.mxu1 %v866_v13  ;;  %785 = vmatprep.subr.bf16.mxu0 %v867_v14 }
  0x28   : > { %816 = vmatprep.subr.bf16.mxu1 %v907_v2 }
  0x2a   : > { %786 = vmatpush3.bf16.msra.mxu0 %v868_v15 }
  0x2b   : > { %817 = vmatpush3.bf16.msra.mxu1 %v869_v16  ;;  %787 = vmatprep.subr.bf16.mxu0 %v870_v17 }
  0x2c   : > { %818 = vmatprep.subr.bf16.mxu1 %v907_v2 }
  0x2e   : > { %788 = vmatpush3.bf16.msra.mxu0 %v871_v18 }
  0x2f   : > { %819 = vmatpush3.bf16.msra.mxu1 %v872_v19  ;;  %789 = vmatprep.subr.bf16.mxu0 %v873_v20 }
  0x30   : > { %820 = vmatprep.subr.bf16.mxu1 %v907_v2 }
  0x32   : > { %790 = vmatpush3.bf16.msra.mxu0 %v874_v21 }
  0x33   : > { %821 = vmatpush3.bf16.msra.mxu1 %v875_v22  ;;  %791 = vmatprep.subr.bf16.mxu0 %v876_v23 }
  0x34   : > { %822 = vmatprep.subr.bf16.mxu1 %v907_v2 }
  0x36   : > { %792 = vmatpush3.bf16.msra.mxu0 %v877_v26 }
  0x37   : > { %823 = vmatpush3.bf16.msra.mxu1 %v878_v27 }
  0x39   : > { %545 = vmatmul.mubr.bf16.vlgmr.msra.gmra.mrb[0].mxu0 %v744_v28 }
  0x3a   : > { %825 = vmatmul.mubr.bf16.vlgmr.msra.gmra.mrb[0].mxu1 %v881_v29 }
 0x10c   : > { %v793_v30 = vpop.f32.mrb[0].mxu0 }
 0x10d   : > { %v586_v31 = vpop.f32.mrb[0].mxu1  ;;  %v794_v32 = vpop.f32.mrb[1].mxu0 }
 0x10e   : > { %v795_v33 = vadd.f32 %v794_v32, %v793_v30  ;;  %v826_v34 = vpop.f32.mrb[1].mxu1  ;;  %v796_v35 = vpop.f32.mrb[2].mxu0  ;;  %597 = sbr.rel (%p771_p7) target bundleno = 293 (0x125), region = 44 }
 0x10f   : > { %v589_v37 = vpop.f32.mrb[2].mxu1  ;;  %v797_v38 = vpop.f32.mrb[3].mxu0 }
 0x110   : > { %v587_v39 = vadd.f32 %v795_v33, %v586_v31  ;;  %v827_v40 = vpop.f32.mrb[3].mxu1 }
 0x112   : > { %v592_v41 = vadd.f32 %v587_v39, %v306_v36 }
 0x114   : > { %593 = vst [vmem:[#allocation2] sm:$0xff] %v592_v41 }
 0x11b   : > { %v598_v42 = vld [vmem:[#allocation2] sm:$0xff] }
 0x11c   : > { %v606_v45 = vmul.f32 %v772_v43, %v598_v42 }
 0x11e   : > { %v614_v46 = vadd.f32 %v773_v44, %v606_v45 }
 0x120   : > { %v615_v47 = vmax.f32 %v614_v46, 0.0 }
 0x122   : > { %v616_v48 = vpack.c.bf16 %v615_v47, %v615_v47 }
 0x124   : > { %617 = vst [vmem:[%s1016_s4] sm:$0xf] %v616_v48 }
 0x125 PF: > { %s14_s17 = sadd.s32 1, %s904_s17   ;;  %s1017_s15 = smov %s900_s16 }
 0x126   : > { %p11_p8 = scmp.ge.s32.totalorder %s14_s17, 5   ;;  %s1018_s16 = smov %s1020_s18 }
 0x128   :  { %13 = sbr.rel (!%p11_p8) target bundleno = 2 (0x2), region = 83 }

// kernel: _lambda_.24
= control target key start
LH: loop header
LB: loop body
LE: loop exit
PB: predicated region body
PF: predicated region fallthrough
CT: control target
= control target key end

     0   :  { %s1016_s18 = smov 0   ;;  %s1018_s19 = smov 0   ;;  %s1097_s0 = inlined_call_operand.vmem [shape: bf16[8,1152], index: 0, kind: input, shape index: {}]   ;;  %s1098_s1 = inlined_call_operand.vmem [shape: bf16[1152,128], index: 1, kind: input, shape index: {}]   ;;  %s1099_s2 = inlined_call_operand.vmem [shape: f32[1,128], index: 2, kind: input, shape index: {}]   ;;  %s1100_s3 = inlined_call_operand.vmem [shape: f32[1,128], index: 3, kind: input, shape index: {}]   ;;  %s1101_s4 = inlined_call_operand.vmem [shape: bf16[8,128], index: 4, kind: input, shape index: {}]   ;;  %s1102_s5 = inlined_call_operand.vmem [shape: bf16[8,128], index: 5, kind: output, shape index: {}]  }
   0x1   :  { %s1020_s20 = smov 0  }
   0x2 LB: > { %s27_s21 = sadd.s32 1, %s977_s19  ;;  %p817_p0 = scmp.ge.s32.totalorder %s981_s20, 1  ;;  %s981_s20 = sphi %s1020_s20, %s15_s20   ;;  %s977_s19 = sphi %s1018_s19, %s1104_s19   ;;  %s973_s18 = sphi %s1016_s18, %s1103_s18  }
   0x3   : > { %p28_p1 = scmp.ge.s32.totalorder %s27_s21, 3  ;;  %p261_p2 = scmp.lt.s32.totalorder %s981_s20, 4 }
   0x5   : > { %s1106_s21 = smov (%p28_p1, %s27_s21), 0  ;;  %p262_p3 = pnand %p817_p0, %p261_p2 }
   0x6   : > { %s316_s22 = smul.u32 (!%p262_p3), 3, %s973_s18  ;;  %p820_p6 = scmp.ne.s32.totalorder (!%p262_p3), %s973_s18, 0 }
   0x7   : > { %265 = sbr.rel (%p262_p3) target bundleno = 295 (0x127), region = 40 }
   0x8   : > { %s326_s23 = smul.u32 (!%p262_p3), 48, %s973_s18  ;;  %p319_p4 = scmp.lt.s32.totalorder (!%p262_p3), %s316_s22, 8 }
   0xa   : > { %p327_p5 = scmp.lt.s32.totalorder (!%p262_p3), %s326_s23, 143 }
   0xe   : > { %s1108_s22 = smov (!%p319_p4, %s316_s22), 8  ;;  %s1110_s23 = smov (!%p327_p5, %s326_s23), 143 }
   0xf   : > { %s818_s24 = sshll.u32 %s1108_s22, 2  ;;  %s819_s28 = sshll.u32 %s1110_s23, 2  ;;  %v983_v0 = vmov (!%p820_p6), 0.0  }
  0x10   : > { %s1041_s27 = scalar_lea.vmem %s1097_s0, %s818_s24  ;;  %s1046_s6 = scalar_lea.vmem %s1098_s1, %s819_s28  ;;  %360 = vst [vmem:[#allocation2] sm:$0xff] (!%p820_p6), %v983_v0 }
  0x11   : > { %359 = sbr.rel (%p820_p6) target bundleno = 24 (0x18), region = 44 }
  0x18 PF: > { %v932_v1 = vld [vmem:[%s1046_s6 + $0x40] sm:$0xff]   ;;  %v984_v2 = vmov 0.0   ;;  %vm985_vm0 = vmmov 0   ;;  %v935_v5 = vld [vmem:[%s1046_s6 + $0x48] sm:$0xff]   ;;  %v938_v8 = vld [vmem:[%s1046_s6 + $0x50] sm:$0xff]   ;;  %p848_p7 = scmp.ne.s32.totalorder %s973_s18, 2 }
  0x19   : > { %885 = vmatprep.subr.bf16.mxu1 %v984_v2  ;;  %v933_v3 = vld [vmem:[%s1046_s6] sm:$0xff]   ;;  %854 = vmatprep.subr.bf16.mxu0 %v932_v1  ;;  %v936_v6 = vld [vmem:[%s1046_s6 + $0x8] sm:$0xff]   ;;  %v939_v9 = vld [vmem:[%s1046_s6 + $0x10] sm:$0xff]  }
  0x1a   : > { %v934_v4 = vld [vmem:[%s1046_s6 + $0x80] sm:$0xff]   ;;  %901 = vmatprep.mubr.msk.bf16.mxu1 %vm985_vm0, %v984_v2  ;;  %855 = vmatpush3.bf16.msra.mxu0 %v933_v3  ;;  %v937_v7 = vld [vmem:[%s1046_s6 + $0x88] sm:$0xff]   ;;  %v940_v10 = vld [vmem:[%s1046_s6 + $0x90] sm:$0xff]  }
  0x1b   : > { %886 = vmatpush3.bf16.msra.mxu1 %v934_v4  ;;  %856 = vmatprep.subr.bf16.mxu0 %v935_v5  ;;  %v941_v11 = vld [vmem:[%s1046_s6 + $0x58] sm:$0xff]   ;;  %v944_v14 = vld [vmem:[%s1046_s6 + $0x60] sm:$0xff]   ;;  %v947_v17 = vld [vmem:[%s1046_s6 + $0x68] sm:$0xff]  }
  0x1c   : > { %887 = vmatprep.subr.bf16.mxu1 %v984_v2  ;;  %v942_v12 = vld [vmem:[%s1046_s6 + $0x18] sm:$0xff]   ;;  %v945_v15 = vld [vmem:[%s1046_s6 + $0x20] sm:$0xff]   ;;  %v948_v18 = vld [vmem:[%s1046_s6 + $0x28] sm:$0xff]  }
  0x1d   : > { %v943_v13 = vld [vmem:[%s1046_s6 + $0x98] sm:$0xff]   ;;  %v946_v16 = vld [vmem:[%s1046_s6 + $0xa0] sm:$0xff]   ;;  %v949_v19 = vld [vmem:[%s1046_s6 + $0xa8] sm:$0xff]  }
  0x1e   : > { %857 = vmatpush3.bf16.msra.mxu0 %v936_v6  ;;  %v950_v20 = vld [vmem:[%s1046_s6 + $0x70] sm:$0xff]   ;;  %v953_v23 = vld [vmem:[%s1046_s6 + $0x78] sm:$0xff]   ;;  %v362_v24 = vld [vmem:[%s1041_s27] sm:$0xff] }
  0x1f   : > { %888 = vmatpush3.bf16.msra.mxu1 %v937_v7  ;;  %858 = vmatprep.subr.bf16.mxu0 %v938_v8  ;;  %v951_v21 = vld [vmem:[%s1046_s6 + $0x30] sm:$0xff]   ;;  %v822_v25 = vcombine.high %v362_v24, %v362_v24  ;;  %v954_v26 = vld [vmem:[%s1046_s6 + $0x38] sm:$0xff]   ;;  %v821_v28 = vcombine.low %v362_v24, %v362_v24  ;;  %v958_v29 = vld [vmem:[%s1041_s27 + $0x8] ss:$0 sps:$4 sm:$0xff]  }
  0x20   : > { %889 = vmatprep.subr.bf16.mxu1 %v984_v2  ;;  %v952_v22 = vld [vmem:[%s1046_s6 + $0xb0] sm:$0xff]   ;;  %v955_v27 = vld [vmem:[%s1046_s6 + $0xb8] sm:$0xff]   ;;  %v361_v36 = vld [vmem:[#allocation2] sm:$0xff] }
  0x21   : > { %599 = vmatprep.mubr.bf16.mxu0 %v822_v25  ;;  %v849_v43 = vld [vmem:[%s1099_s2] ss:$0 sm:$0xff] (!%p848_p7) }
  0x22   : > { %859 = vmatpush3.bf16.msra.mxu0 %v939_v9  ;;  %v850_v44 = vld [vmem:[%s1100_s3] ss:$0 sm:$0xff] (!%p848_p7) }
  0x23   : > { %890 = vmatpush3.bf16.msra.mxu1 %v940_v10  ;;  %860 = vmatprep.subr.bf16.mxu0 %v941_v11  ;;  %v670_v46 = vld [vmem:[%s1101_s4] sm:$0xf] (!%p848_p7) }
  0x24   : > { %891 = vmatprep.subr.bf16.mxu1 %v984_v2  ;;  %v671_v47 = vunpack.c.l.bf16 (!%p848_p7), %v670_v46 }
  0x26   : > { %861 = vmatpush3.bf16.msra.mxu0 %v942_v12 }
  0x27   : > { %892 = vmatpush3.bf16.msra.mxu1 %v943_v13  ;;  %862 = vmatprep.subr.bf16.mxu0 %v944_v14 }
  0x28   : > { %893 = vmatprep.subr.bf16.mxu1 %v984_v2 }
  0x2a   : > { %863 = vmatpush3.bf16.msra.mxu0 %v945_v15 }
  0x2b   : > { %894 = vmatpush3.bf16.msra.mxu1 %v946_v16  ;;  %864 = vmatprep.subr.bf16.mxu0 %v947_v17 }
  0x2c   : > { %895 = vmatprep.subr.bf16.mxu1 %v984_v2 }
  0x2e   : > { %865 = vmatpush3.bf16.msra.mxu0 %v948_v18 }
  0x2f   : > { %896 = vmatpush3.bf16.msra.mxu1 %v949_v19  ;;  %866 = vmatprep.subr.bf16.mxu0 %v950_v20 }
  0x30   : > { %897 = vmatprep.subr.bf16.mxu1 %v984_v2 }
  0x32   : > { %867 = vmatpush3.bf16.msra.mxu0 %v951_v21 }
  0x33   : > { %898 = vmatpush3.bf16.msra.mxu1 %v952_v22  ;;  %868 = vmatprep.subr.bf16.mxu0 %v953_v23 }
  0x34   : > { %899 = vmatprep.subr.bf16.mxu1 %v984_v2 }
  0x36   : > { %869 = vmatpush3.bf16.msra.mxu0 %v954_v26 }
  0x37   : > { %900 = vmatpush3.bf16.msra.mxu1 %v955_v27 }
  0x39   : > { %600 = vmatmul.mubr.bf16.vlgmr.msra.gmra.mrb[0].mxu0 %v821_v28 }
  0x3a   : > { %902 = vmatmul.mubr.bf16.vlgmr.msra.gmra.mrb[0].mxu1 %v958_v29 }
 0x10c   : > { %v870_v30 = vpop.f32.mrb[0].mxu0 }
 0x10d   : > { %v641_v31 = vpop.f32.mrb[0].mxu1  ;;  %v871_v32 = vpop.f32.mrb[1].mxu0 }
 0x10e   : > { %v872_v33 = vadd.f32 %v871_v32, %v870_v30  ;;  %v903_v34 = vpop.f32.mrb[1].mxu1  ;;  %v873_v35 = vpop.f32.mrb[2].mxu0  ;;  %652 = sbr.rel (%p848_p7) target bundleno = 295 (0x127), region = 48 }
 0x10f   : > { %v644_v37 = vpop.f32.mrb[2].mxu1  ;;  %v874_v38 = vpop.f32.mrb[3].mxu0 }
 0x110   : > { %v642_v39 = vadd.f32 %v872_v33, %v641_v31  ;;  %v904_v40 = vpop.f32.mrb[3].mxu1 }
 0x112   : > { %v647_v41 = vadd.f32 %v642_v39, %v361_v36 }
 0x114   : > { %648 = vst [vmem:[#allocation2] sm:$0xff] %v647_v41 }
 0x11b   : > { %v653_v42 = vld [vmem:[#allocation2] sm:$0xff] }
 0x11c   : > { %v661_v45 = vmul.f32 %v849_v43, %v653_v42 }
 0x11e   : > { %v669_v48 = vadd.f32 %v850_v44, %v661_v45 }
 0x120   : > { %v672_v49 = vadd.f32 %v671_v47, %v669_v48 }
 0x122   : > { %v673_v50 = vmax.f32 %v672_v49, 0.0 }
 0x124   : > { %v674_v51 = vpack.c.bf16 %v673_v50, %v673_v50 }
 0x126   : > { %675 = vst [vmem:[%s1102_s5] sm:$0xf] %v674_v51 }
 0x127 PF: > { %s15_s20 = sadd.s32 1, %s981_s20   ;;  %s1103_s18 = smov %s977_s19 }
 0x128   : > { %p12_p8 = scmp.ge.s32.totalorder %s15_s20, 5   ;;  %s1104_s19 = smov %s1106_s21 }
 0x12a   :  { %14 = sbr.rel (!%p12_p8) target bundleno = 2 (0x2), region = 90 }

// kernel: _lambda_.23
= control target key start
LH: loop header
LB: loop body
LE: loop exit
PB: predicated region body
PF: predicated region fallthrough
CT: control target
= control target key end

     0   :  { %v206_v0 = vmov 0.0   ;;  %vm207_vm0 = vmmov 0   ;;  %s269_s1 = inlined_call_operand.vmem [shape: bf16[128,128], index: 1, kind: input, shape index: {}]   ;;  %s270_s0 = inlined_call_operand.vmem [shape: bf16[8,128], index: 0, kind: input, shape index: {}]   ;;  %s271_s2 = inlined_call_operand.vmem [shape: f32[1,128], index: 2, kind: input, shape index: {}]   ;;  %s272_s3 = inlined_call_operand.vmem [shape: f32[1,128], index: 3, kind: input, shape index: {}]   ;;  %s273_s4 = inlined_call_operand.vmem [shape: bf16[8,128], index: 4, kind: output, shape index: {}]  }
   0x1   :  { %176 = vmatprep.subr.bf16.mxu0 %v206_v0  ;;  %v198_v1 = vld [vmem:[%s269_s1] sm:$0xff]   ;;  %192 = vmatprep.mubr.msk.bf16.mxu0 %vm207_vm0, %v206_v0  ;;  %v199_v2 = vld [vmem:[%s269_s1 + $0x8] sm:$0xff]   ;;  %v200_v3 = vld [vmem:[%s269_s1 + $0x10] sm:$0xff]  }
   0x2   :  { %177 = vmatpush3.bf16.msra.mxu0 %v198_v1  ;;  %v201_v4 = vld [vmem:[%s269_s1 + $0x18] sm:$0xff]   ;;  %v202_v5 = vld [vmem:[%s269_s1 + $0x20] sm:$0xff]   ;;  %v203_v6 = vld [vmem:[%s269_s1 + $0x28] sm:$0xff]  }
   0x3   :  { %178 = vmatprep.subr.bf16.mxu0 %v206_v0  ;;  %v204_v7 = vld [vmem:[%s269_s1 + $0x30] sm:$0xff]   ;;  %v205_v8 = vld [vmem:[%s269_s1 + $0x38] sm:$0xff]   ;;  %v24_v9 = vld [vmem:[%s270_s0] sm:$0xf] }
   0x4   :  { %v165_v10 = vld [vmem:[%s271_s2] ss:$0 sm:$0xff] }
   0x5   :  { %v166_v12 = vld [vmem:[%s272_s3] ss:$0 sm:$0xff] }
   0x6   :  { %179 = vmatpush3.bf16.msra.mxu0 %v199_v2 }
   0x7   :  { %180 = vmatprep.subr.bf16.mxu0 %v206_v0 }
   0xa   :  { %181 = vmatpush3.bf16.msra.mxu0 %v200_v3 }
   0xb   :  { %182 = vmatprep.subr.bf16.mxu0 %v206_v0 }
   0xe   :  { %183 = vmatpush3.bf16.msra.mxu0 %v201_v4 }
   0xf   :  { %184 = vmatprep.subr.bf16.mxu0 %v206_v0 }
  0x12   :  { %185 = vmatpush3.bf16.msra.mxu0 %v202_v5 }
  0x13   :  { %186 = vmatprep.subr.bf16.mxu0 %v206_v0 }
  0x16   :  { %187 = vmatpush3.bf16.msra.mxu0 %v203_v6 }
  0x17   :  { %188 = vmatprep.subr.bf16.mxu0 %v206_v0 }
  0x1a   :  { %189 = vmatpush3.bf16.msra.mxu0 %v204_v7 }
  0x1b   :  { %190 = vmatprep.subr.bf16.mxu0 %v206_v0 }
  0x1e   :  { %191 = vmatpush3.bf16.msra.mxu0 %v205_v8 }
  0x21   :  { %193 = vmatmul.mubr.bf16.vlgmr.msra.gmra.mrb[0].mxu0 %v24_v9 }
  0xf4   :  { %v123_v11 = vpop.f32.mrb[0].mxu0 }
  0xf5   :  { %v142_v13 = vmul.f32 %v165_v10, %v123_v11  ;;  %v194_v14 = vpop.f32.mrb[1].mxu0 }
  0xf6   :  { %v126_v15 = vpop.f32.mrb[2].mxu0 }
  0xf7   :  { %v150_v16 = vadd.f32 %v166_v12, %v142_v13  ;;  %v195_v17 = vpop.f32.mrb[3].mxu0 }
  0xf9   :  { %v151_v18 = vpack.c.bf16 %v150_v16, %v150_v16 }
  0xfb   :  { %152 = vst [vmem:[%s273_s4] sm:$0xf] %v151_v18 }

// kernel: _lambda_.27
= control target key start
LH: loop header
LB: loop body
LE: loop exit
PB: predicated region body
PF: predicated region fallthrough
CT: control target
= control target key end

     0   :  { %s1114_s15 = smov 0   ;;  %s1116_s16 = smov 0   ;;  %s1216_s0 = inlined_call_operand.vmem [shape: bf16[8,1152], index: 0, kind: input, shape index: {}]   ;;  %s1217_s1 = inlined_call_operand.vmem [shape: bf16[1152,256], index: 1, kind: input, shape index: {}]   ;;  %s1218_s2 = inlined_call_operand.vmem [shape: f32[1,256], index: 2, kind: input, shape index: {}]   ;;  %s1219_s3 = inlined_call_operand.vmem [shape: f32[1,256], index: 3, kind: input, shape index: {}]   ;;  %s1220_s4 = inlined_call_operand.vmem [shape: bf16[8,256], index: 4, kind: output, shape index: {}]  }
   0x1   :  { %s1118_s17 = smov 0  }
   0x2 LB: > { %s26_s18 = sadd.s32 1, %s1081_s16  ;;  %p898_p0 = scmp.ge.s32.totalorder %s1085_s17, 1  ;;  %s1085_s17 = sphi %s1118_s17, %s14_s17   ;;  %s1081_s16 = sphi %s1116_s16, %s1222_s16   ;;  %s1077_s15 = sphi %s1114_s15, %s1221_s15  }
   0x3   : > { %p27_p1 = scmp.ge.s32.totalorder %s26_s18, 3  ;;  %p229_p2 = scmp.lt.s32.totalorder %s1085_s17, 4 }
   0x5   : > { %s1224_s18 = smov (%p27_p1, %s26_s18), 0  ;;  %p230_p3 = pnand %p898_p0, %p229_p2 }
   0x6   : > { %s281_s19 = smul.u32 (!%p230_p3), 3, %s1077_s15  ;;  %p902_p6 = scmp.ne.s32.totalorder (!%p230_p3), %s1077_s15, 0 }
   0x7   : > { %233 = sbr.rel (%p230_p3) target bundleno = 323 (0x143), region = 36 }
   0x8   : > { %s291_s20 = smul.u32 (!%p230_p3), 48, %s1077_s15  ;;  %p284_p4 = scmp.lt.s32.totalorder (!%p230_p3), %s281_s19, 8 }
   0xa   : > { %p293_p5 = scmp.lt.s32.totalorder (!%p230_p3), %s291_s20, 143 }
   0xe   : > { %s1226_s19 = smov (!%p284_p4, %s281_s19), 8  ;;  %s1228_s20 = smov (!%p293_p5, %s291_s20), 143 }
   0xf   : > { %s899_s21 = sshll.u32 %s1226_s19, 2  ;;  %s960_s25 = sshll.u32 %s1228_s20, 3  ;;  %v1087_v0 = vmov (!%p902_p6), 0.0  }
  0x10   : > { %s1139_s24 = scalar_lea.vmem %s1216_s0, %s899_s21  ;;  %s1144_s28 = scalar_lea.vmem %s1217_s1, %s960_s25  ;;  %328 = vst [vmem:[#allocation2] sm:$0xff] (!%p902_p6), %v1087_v0  ;;  %329 = vst [vmem:[#allocation2 + $0x8] sm:$0xff] (!%p902_p6), %v1087_v0 }
  0x11   : > { %327 = sbr.rel (%p902_p6) target bundleno = 24 (0x18), region = 40 }
  0x18 PF: > { %v988_v1 = vld [vmem:[%s1144_s28 + $0x4] ss:$8 sps:$4 sm:$0xff]   ;;  %v990_v2 = vld [vmem:[%s1144_s28] ss:$8 sps:$4 sm:$0xff]   ;;  %v1088_v3 = vmov 0   ;;  %p954_p7 = scmp.ne.s32.totalorder %s1077_s15, 2 }
  0x19   : > { %706 = vmatprep.mubr.bf16.mxu1 %v1088_v3  ;;  %633 = vmatprep.subr.bf16.mxu0 %v988_v1  ;;  %v991_v4 = vld [vmem:[%s1144_s28 + $0x14] ss:$8 sps:$4 sm:$0xff]   ;;  %v993_v5 = vld [vmem:[%s1144_s28 + $0x10] ss:$8 sps:$4 sm:$0xff]   ;;  %v994_v6 = vld [vmem:[%s1144_s28 + $0x24] ss:$8 sps:$4 sm:$0xff]  }
  0x1a   : > { %634 = vmatpush1.bf16.msra.mxu0 %v990_v2  ;;  %v996_v7 = vld [vmem:[%s1144_s28 + $0x20] ss:$8 sps:$4 sm:$0xff]   ;;  %v997_v8 = vld [vmem:[%s1144_s28 + $0x34] ss:$8 sps:$4 sm:$0xff]   ;;  %v999_v9 = vld [vmem:[%s1144_s28 + $0x30] ss:$8 sps:$4 sm:$0xff]  }
  0x1b   : > { %635 = vmatprep.subr.bf16.mxu0 %v991_v4  ;;  %v1012_v10 = vld [vmem:[%s1144_s28 + $0x104] ss:$8 sps:$4 sm:$0xff]   ;;  %v1014_v11 = vld [vmem:[%s1144_s28 + $0x100] ss:$8 sps:$4 sm:$0xff]   ;;  %v1018_v13 = vld [vmem:[%s1144_s28 + $0x114] ss:$8 sps:$4 sm:$0xff]   ;;  %v727_v4 = vlaneseq (!%p954_p7) }
  0x1c   : > { %v1000_v12 = vld [vmem:[%s1144_s28 + $0x44] ss:$8 sps:$4 sm:$0xff]   ;;  %674 = vmatprep.subr.bf16.mxu1 %v1012_v10  ;;  %v1020_v14 = vld [vmem:[%s1144_s28 + $0x110] ss:$8 sps:$4 sm:$0xff]   ;;  %v1002_v15 = vld [vmem:[%s1144_s28 + $0x40] ss:$8 sps:$4 sm:$0xff]  }
  0x1d   : > { %675 = vmatpush1.bf16.msra.mxu1 %v1014_v11  ;;  %v1003_v16 = vld [vmem:[%s1144_s28 + $0x54] ss:$8 sps:$4 sm:$0xff]   ;;  %v1024_v17 = vld [vmem:[%s1144_s28 + $0x124] ss:$8 sps:$4 sm:$0xff]   ;;  %v1026_v18 = vld [vmem:[%s1144_s28 + $0x120] ss:$8 sps:$4 sm:$0xff]  }
  0x1e   : > { %636 = vmatpush1.bf16.msra.mxu0 %v993_v5  ;;  %676 = vmatprep.subr.bf16.mxu1 %v1018_v13  ;;  %v1005_v19 = vld [vmem:[%s1144_s28 + $0x50] ss:$8 sps:$4 sm:$0xff]   ;;  %v1030_v20 = vld [vmem:[%s1144_s28 + $0x134] ss:$8 sps:$4 sm:$0xff]   ;;  %v1006_v21 = vld [vmem:[%s1144_s28 + $0x64] ss:$8 sps:$4 sm:$0xff]  }
  0x1f   : > { %637 = vmatprep.subr.bf16.mxu0 %v994_v6  ;;  %v1032_v22 = vld [vmem:[%s1144_s28 + $0x130] ss:$8 sps:$4 sm:$0xff]   ;;  %v1008_v23 = vld [vmem:[%s1144_s28 + $0x60] ss:$8 sps:$4 sm:$0xff]   ;;  %v1036_v24 = vld [vmem:[%s1144_s28 + $0x144] ss:$8 sps:$4 sm:$0xff]  }
  0x20   : > { %v1009_v25 = vld [vmem:[%s1144_s28 + $0x74] ss:$8 sps:$4 sm:$0xff]   ;;  %v1038_v26 = vld [vmem:[%s1144_s28 + $0x140] ss:$8 sps:$4 sm:$0xff]   ;;  %v1011_v27 = vld [vmem:[%s1144_s28 + $0x70] ss:$8 sps:$4 sm:$0xff]  }
  0x21   : > { %677 = vmatpush1.bf16.msra.mxu1 %v1020_v14  ;;  %v1042_v28 = vld [vmem:[%s1144_s28 + $0x154] ss:$8 sps:$4 sm:$0xff]   ;;  %v1015_v29 = vld [vmem:[%s1144_s28 + $0x84] ss:$8 sps:$4 sm:$0xff]   ;;  %v1044_v30 = vld [vmem:[%s1144_s28 + $0x150] ss:$8 sps:$4 sm:$0xff]  }
  0x22   : > { %638 = vmatpush1.bf16.msra.mxu0 %v996_v7  ;;  %678 = vmatprep.subr.bf16.mxu1 %v1024_v17  ;;  %v1017_v31 = vld [vmem:[%s1144_s28 + $0x80] ss:$8 sps:$4 sm:$0xff]   ;;  %v1048_v32 = vld [vmem:[%s1144_s28 + $0x164] ss:$8 sps:$4 sm:$0xff]   ;;  %v1021_v33 = vld [vmem:[%s1144_s28 + $0x94] ss:$8 sps:$4 sm:$0xff]  }
  0x23   : > { %639 = vmatprep.subr.bf16.mxu0 %v997_v8  ;;  %v332_v34 = vld [vmem:[%s1139_s24] sm:$0xff]  ;;  %v1023_v37 = vld [vmem:[%s1144_s28 + $0x90] ss:$8 sps:$4 sm:$0xff]   ;;  %v1054_v38 = vld [vmem:[%s1144_s28 + $0x174] ss:$8 sps:$4 sm:$0xff]   ;;  %v728_v5 = vshrl.u32 (!%p954_p7), %v727_v4, 7 }
  0x24   : > { %v904_v35 = vcombine.high %v332_v34, %v332_v34  ;;  %v1050_v36 = vld [vmem:[%s1144_s28 + $0x160] ss:$8 sps:$4 sm:$0xff]   ;;  %v1027_v39 = vld [vmem:[%s1144_s28 + $0xa4] ss:$8 sps:$4 sm:$0xff]   ;;  %v1056_v40 = vld [vmem:[%s1144_s28 + $0x170] ss:$8 sps:$4 sm:$0xff]   ;;  %v903_v53 = vcombine.low %v332_v34, %v332_v34 }
  0x25   : > { %679 = vmatpush1.bf16.msra.mxu1 %v1026_v18  ;;  %v1029_v41 = vld [vmem:[%s1144_s28 + $0xa0] ss:$8 sps:$4 sm:$0xff]   ;;  %v1033_v42 = vld [vmem:[%s1144_s28 + $0xb4] ss:$8 sps:$4 sm:$0xff]   ;;  %v1035_v44 = vld [vmem:[%s1144_s28 + $0xb0] ss:$8 sps:$4 sm:$0xff]  }
  0x26   : > { %640 = vmatpush1.bf16.msra.mxu0 %v999_v9  ;;  %680 = vmatprep.subr.bf16.mxu1 %v1030_v20  ;;  %v1060_v43 = vld [vmem:[%s1139_s24 + $0x8] ss:$0 sps:$4 sm:$0xff]   ;;  %v1039_v45 = vld [vmem:[%s1144_s28 + $0xc4] ss:$8 sps:$4 sm:$0xff]   ;;  %v1045_v47 = vld [vmem:[%s1144_s28 + $0xd4] ss:$8 sps:$4 sm:$0xff]  }
  0x27   : > { %641 = vmatprep.subr.bf16.mxu0 %v1000_v12  ;;  %665 = vmatprep.mubr.bf16.mxu0 %v904_v35  ;;  %v1041_v46 = vld [vmem:[%s1144_s28 + $0xc0] ss:$8 sps:$4 sm:$0xff]   ;;  %v1047_v48 = vld [vmem:[%s1144_s28 + $0xd0] ss:$8 sps:$4 sm:$0xff]   ;;  %v1051_v49 = vld [vmem:[%s1144_s28 + $0xe4] ss:$8 sps:$4 sm:$0xff]  }
  0x28   : > { %v1053_v50 = vld [vmem:[%s1144_s28 + $0xe0] ss:$8 sps:$4 sm:$0xff]   ;;  %v1057_v51 = vld [vmem:[%s1144_s28 + $0xf4] ss:$8 sps:$4 sm:$0xff]   ;;  %v1059_v52 = vld [vmem:[%s1144_s28 + $0xf0] ss:$8 sps:$4 sm:$0xff]  }
  0x29   : > { %681 = vmatpush1.bf16.msra.mxu1 %v1032_v22  ;;  %v330_v58 = vld [vmem:[#allocation2] sm:$0xff]  ;;  %v331_v61 = vld [vmem:[#allocation2 + $0x8] sm:$0xff]  ;;  %v729_v8 = vsub.s32 (!%p954_p7), 0, %v728_v5  ;;  %v733_v9 = vsub.s32 (!%p954_p7), 1, %v728_v5 }
  0x2a   : > { %642 = vmatpush1.bf16.msra.mxu0 %v1002_v15  ;;  %682 = vmatprep.subr.bf16.mxu1 %v1036_v24  ;;  %v725_v6 = vld [vmem:[%s1218_s2] sm:$0x3] (!%p954_p7) }
  0x2b   : > { %643 = vmatprep.subr.bf16.mxu0 %v1003_v16  ;;  %v739_v7 = vld [vmem:[%s1219_s3] sm:$0x3] (!%p954_p7)  ;;  %v730_v12 = vrot.slane (!%p954_p7), %v725_v6, %v729_v8  ;;  %v734_v13 = vrot.slane (!%p954_p7), %v725_v6, %v733_v9 }
  0x2c   : > { %v744_v14 = vrot.slane (!%p954_p7), %v739_v7, %v729_v8  ;;  %v748_v15 = vrot.slane (!%p954_p7), %v739_v7, %v733_v9 }
  0x2d   : > { %683 = vmatpush1.bf16.msra.mxu1 %v1038_v26 }
  0x2e   : > { %644 = vmatpush1.bf16.msra.mxu0 %v1005_v19  ;;  %684 = vmatprep.subr.bf16.mxu1 %v1042_v28 }
  0x2f   : > { %645 = vmatprep.subr.bf16.mxu0 %v1006_v21 }
  0x31   : > { %685 = vmatpush1.bf16.msra.mxu1 %v1044_v30 }
  0x32   : > { %646 = vmatpush1.bf16.msra.mxu0 %v1008_v23  ;;  %686 = vmatprep.subr.bf16.mxu1 %v1048_v32 }
  0x33   : > { %647 = vmatprep.subr.bf16.mxu0 %v1009_v25 }
  0x35   : > { %687 = vmatpush1.bf16.msra.mxu1 %v1050_v36 }
  0x36   : > { %648 = vmatpush1.bf16.msra.mxu0 %v1011_v27  ;;  %688 = vmatprep.subr.bf16.mxu1 %v1054_v38 }
  0x37   : > { %649 = vmatprep.subr.bf16.mxu0 %v1015_v29 }
  0x39   : > { %689 = vmatpush1.bf16.msra.mxu1 %v1056_v40 }
  0x3a   : > { %650 = vmatpush1.bf16.msra.mxu0 %v1017_v31 }
  0x3b   : > { %651 = vmatprep.subr.bf16.mxu0 %v1021_v33 }
  0x3c   : > { %707 = vmatmul.mubr.bf16.vlgmr.msra.gmra.mrb[0].mxu1 %v1060_v43 }
  0x3e   : > { %652 = vmatpush1.bf16.msra.mxu0 %v1023_v37 }
  0x3f   : > { %653 = vmatprep.subr.bf16.mxu0 %v1027_v39 }
  0x42   : > { %654 = vmatpush1.bf16.msra.mxu0 %v1029_v41 }
  0x43   : > { %655 = vmatprep.subr.bf16.mxu0 %v1033_v42 }
  0x46   : > { %656 = vmatpush1.bf16.msra.mxu0 %v1035_v44 }
  0x47   : > { %657 = vmatprep.subr.bf16.mxu0 %v1039_v45 }
  0x4a   : > { %658 = vmatpush1.bf16.msra.mxu0 %v1041_v46 }
  0x4b   : > { %659 = vmatprep.subr.bf16.mxu0 %v1045_v47 }
  0x4e   : > { %660 = vmatpush1.bf16.msra.mxu0 %v1047_v48 }
  0x4f   : > { %661 = vmatprep.subr.bf16.mxu0 %v1051_v49 }
  0x52   : > { %662 = vmatpush1.bf16.msra.mxu0 %v1053_v50 }
  0x53   : > { %663 = vmatprep.subr.bf16.mxu0 %v1057_v51 }
  0x56   : > { %664 = vmatpush1.bf16.msra.mxu0 %v1059_v52 }
  0x59   : > { %666 = vmatmul.mubr.bf16.vlgmr.msra.gmra.mrb[0].mxu0 %v903_v53 }
 0x10f   : > { %v708_v54 = vpop.f32.mrb[0].mxu1 }
 0x110   : > { %v710_v55 = vpop.f32.mrb[1].mxu1 }
 0x111   : > { %v712_v56 = vpop.f32.mrb[2].mxu1 }
 0x112   : > { %v713_v57 = vpop.f32.mrb[3].mxu1 }
 0x12c   : > { %v667_v59 = vpop.f32.mrb[0].mxu0  ;;  %722 = sbr.rel (%p954_p7) target bundleno = 323 (0x143), region = 44 }
 0x12d   : > { %v709_v60 = vadd.f32 %v708_v54, %v667_v59  ;;  %v669_v62 = vpop.f32.mrb[1].mxu0 }
 0x12e   : > { %v711_v63 = vadd.f32 %v710_v55, %v669_v62  ;;  %v671_v0 = vpop.f32.mrb[2].mxu0 }
 0x12f   : > { %v715_v1 = vadd.f32 %v709_v60, %v330_v58  ;;  %v672_v2 = vpop.f32.mrb[3].mxu0 }
 0x130   : > { %v716_v3 = vadd.f32 %v711_v63, %v331_v61 }
 0x131   : > { %717 = vst [vmem:[#allocation2] sm:$0xff] %v715_v1 }
 0x132   : > { %718 = vst [vmem:[#allocation2 + $0x8] sm:$0xff] %v716_v3 }
 0x138   : > { %v723_v10 = vld [vmem:[#allocation2] sm:$0xff] }
 0x139   : > { %v724_v11 = vld [vmem:[#allocation2 + $0x8] sm:$0xff]  ;;  %v737_v16 = vmul.f32 %v730_v12, %v723_v10 }
 0x13a   : > { %v738_v17 = vmul.f32 %v734_v13, %v724_v11 }
 0x13b   : > { %v751_v18 = vadd.f32 %v744_v14, %v737_v16 }
 0x13c   : > { %v752_v19 = vadd.f32 %v748_v15, %v738_v17 }
 0x13d   : > { %v753_v20 = vmax.f32 %v751_v18, 0.0 }
 0x13e   : > { %v754_v21 = vmax.f32 %v752_v19, 0.0 }
 0x140   : > { %v961_v22 = vpack.c.bf16 %v754_v21, %v753_v20 }
 0x142   : > { %763 = vst [vmem:[%s1220_s4] sm:$0xff] %v961_v22 }
 0x143 PF: > { %s14_s17 = sadd.s32 1, %s1085_s17   ;;  %s1221_s15 = smov %s1081_s16 }
 0x144   : > { %p11_p8 = scmp.ge.s32.totalorder %s14_s17, 5   ;;  %s1222_s16 = smov %s1224_s18 }
 0x146   :  { %13 = sbr.rel (!%p11_p8) target bundleno = 2 (0x2), region = 83 }

// kernel: _lambda_.29
= control target key start
LH: loop header
LB: loop body
LE: loop exit
PB: predicated region body
PF: predicated region fallthrough
CT: control target
= control target key end

     0   :  { %s1209_s18 = smov 0   ;;  %s1211_s19 = smov 0   ;;  %s1314_s0 = inlined_call_operand.vmem [shape: bf16[8,2304], index: 0, kind: input, shape index: {}]   ;;  %s1315_s1 = inlined_call_operand.vmem [shape: bf16[2304,256], index: 1, kind: input, shape index: {}]   ;;  %s1316_s2 = inlined_call_operand.vmem [shape: f32[1,256], index: 2, kind: input, shape index: {}]   ;;  %s1317_s3 = inlined_call_operand.vmem [shape: f32[1,256], index: 3, kind: input, shape index: {}]   ;;  %s1318_s4 = inlined_call_operand.vmem [shape: bf16[8,256], index: 4, kind: input, shape index: {}]   ;;  %s1319_s5 = inlined_call_operand.vmem [shape: bf16[8,256], index: 5, kind: output, shape index: {}]  }
   0x1   :  { %s1213_s20 = smov 0  }
   0x2 LB: > { %s27_s21 = sadd.s32 1, %s1171_s19  ;;  %p988_p0 = scmp.ge.s32.totalorder %s1175_s20, 1  ;;  %s1175_s20 = sphi %s1213_s20, %s15_s20   ;;  %s1171_s19 = sphi %s1211_s19, %s1321_s19   ;;  %s1167_s18 = sphi %s1209_s18, %s1320_s18  }
   0x3   : > { %p28_p1 = scmp.ge.s32.totalorder %s27_s21, 6  ;;  %p271_p2 = scmp.lt.s32.totalorder %s1175_s20, 7 }
   0x5   : > { %s1323_s21 = smov (%p28_p1, %s27_s21), 0  ;;  %p272_p3 = pnand %p988_p0, %p271_p2 }
   0x6   : > { %s334_s22 = smul.u32 (!%p272_p3), 3, %s1167_s18  ;;  %p992_p6 = scmp.ne.s32.totalorder (!%p272_p3), %s1167_s18, 0 }
   0x7   : > { %275 = sbr.rel (%p272_p3) target bundleno = 325 (0x145), region = 40 }
   0x8   : > { %s344_s23 = smul.u32 (!%p272_p3), 48, %s1167_s18  ;;  %p337_p4 = scmp.lt.s32.totalorder (!%p272_p3), %s334_s22, 17 }
   0xa   : > { %p346_p5 = scmp.lt.s32.totalorder (!%p272_p3), %s344_s23, 287 }
   0xe   : > { %s1325_s22 = smov (!%p337_p4, %s334_s22), 17  ;;  %s1327_s23 = smov (!%p346_p5, %s344_s23), 287 }
   0xf   : > { %s989_s24 = sshll.u32 %s1325_s22, 2  ;;  %s1050_s28 = sshll.u32 %s1327_s23, 3  ;;  %v1177_v0 = vmov (!%p992_p6), 0.0  }
  0x10   : > { %s1234_s27 = scalar_lea.vmem %s1314_s0, %s989_s24  ;;  %s1239_s6 = scalar_lea.vmem %s1315_s1, %s1050_s28  ;;  %391 = vst [vmem:[#allocation2] sm:$0xff] (!%p992_p6), %v1177_v0  ;;  %392 = vst [vmem:[#allocation2 + $0x8] sm:$0xff] (!%p992_p6), %v1177_v0 }
  0x11   : > { %390 = sbr.rel (%p992_p6) target bundleno = 24 (0x18), region = 44 }
  0x18 PF: > { %v1078_v1 = vld [vmem:[%s1239_s6 + $0x4] ss:$8 sps:$4 sm:$0xff]   ;;  %v1080_v2 = vld [vmem:[%s1239_s6] ss:$8 sps:$4 sm:$0xff]   ;;  %v1178_v3 = vmov 0   ;;  %p1044_p7 = scmp.ne.s32.totalorder %s1167_s18, 5 }
  0x19   : > { %769 = vmatprep.mubr.bf16.mxu1 %v1178_v3  ;;  %696 = vmatprep.subr.bf16.mxu0 %v1078_v1  ;;  %v1081_v4 = vld [vmem:[%s1239_s6 + $0x14] ss:$8 sps:$4 sm:$0xff]   ;;  %v1083_v5 = vld [vmem:[%s1239_s6 + $0x10] ss:$8 sps:$4 sm:$0xff]   ;;  %v1084_v6 = vld [vmem:[%s1239_s6 + $0x24] ss:$8 sps:$4 sm:$0xff]  }
  0x1a   : > { %697 = vmatpush1.bf16.msra.mxu0 %v1080_v2  ;;  %v1086_v7 = vld [vmem:[%s1239_s6 + $0x20] ss:$8 sps:$4 sm:$0xff]   ;;  %v1087_v8 = vld [vmem:[%s1239_s6 + $0x34] ss:$8 sps:$4 sm:$0xff]   ;;  %v1089_v9 = vld [vmem:[%s1239_s6 + $0x30] ss:$8 sps:$4 sm:$0xff]  }
  0x1b   : > { %698 = vmatprep.subr.bf16.mxu0 %v1081_v4  ;;  %v1102_v10 = vld [vmem:[%s1239_s6 + $0x104] ss:$8 sps:$4 sm:$0xff]   ;;  %v1104_v11 = vld [vmem:[%s1239_s6 + $0x100] ss:$8 sps:$4 sm:$0xff]   ;;  %v1108_v13 = vld [vmem:[%s1239_s6 + $0x114] ss:$8 sps:$4 sm:$0xff]   ;;  %v790_v4 = vlaneseq (!%p1044_p7) }
  0x1c   : > { %v1090_v12 = vld [vmem:[%s1239_s6 + $0x44] ss:$8 sps:$4 sm:$0xff]   ;;  %737 = vmatprep.subr.bf16.mxu1 %v1102_v10  ;;  %v1110_v14 = vld [vmem:[%s1239_s6 + $0x110] ss:$8 sps:$4 sm:$0xff]   ;;  %v1092_v15 = vld [vmem:[%s1239_s6 + $0x40] ss:$8 sps:$4 sm:$0xff]  }
  0x1d   : > { %738 = vmatpush1.bf16.msra.mxu1 %v1104_v11  ;;  %v1093_v16 = vld [vmem:[%s1239_s6 + $0x54] ss:$8 sps:$4 sm:$0xff]   ;;  %v1114_v17 = vld [vmem:[%s1239_s6 + $0x124] ss:$8 sps:$4 sm:$0xff]   ;;  %v1116_v18 = vld [vmem:[%s1239_s6 + $0x120] ss:$8 sps:$4 sm:$0xff]  }
  0x1e   : > { %699 = vmatpush1.bf16.msra.mxu0 %v1083_v5  ;;  %739 = vmatprep.subr.bf16.mxu1 %v1108_v13  ;;  %v1095_v19 = vld [vmem:[%s1239_s6 + $0x50] ss:$8 sps:$4 sm:$0xff]   ;;  %v1120_v20 = vld [vmem:[%s1239_s6 + $0x134] ss:$8 sps:$4 sm:$0xff]   ;;  %v1096_v21 = vld [vmem:[%s1239_s6 + $0x64] ss:$8 sps:$4 sm:$0xff]  }
  0x1f   : > { %700 = vmatprep.subr.bf16.mxu0 %v1084_v6  ;;  %v1122_v22 = vld [vmem:[%s1239_s6 + $0x130] ss:$8 sps:$4 sm:$0xff]   ;;  %v1098_v23 = vld [vmem:[%s1239_s6 + $0x60] ss:$8 sps:$4 sm:$0xff]   ;;  %v1126_v24 = vld [vmem:[%s1239_s6 + $0x144] ss:$8 sps:$4 sm:$0xff]  }
  0x20   : > { %v1099_v25 = vld [vmem:[%s1239_s6 + $0x74] ss:$8 sps:$4 sm:$0xff]   ;;  %v1128_v26 = vld [vmem:[%s1239_s6 + $0x140] ss:$8 sps:$4 sm:$0xff]   ;;  %v1101_v27 = vld [vmem:[%s1239_s6 + $0x70] ss:$8 sps:$4 sm:$0xff]  }
  0x21   : > { %740 = vmatpush1.bf16.msra.mxu1 %v1110_v14  ;;  %v1132_v28 = vld [vmem:[%s1239_s6 + $0x154] ss:$8 sps:$4 sm:$0xff]   ;;  %v1105_v29 = vld [vmem:[%s1239_s6 + $0x84] ss:$8 sps:$4 sm:$0xff]   ;;  %v1134_v30 = vld [vmem:[%s1239_s6 + $0x150] ss:$8 sps:$4 sm:$0xff]  }
  0x22   : > { %701 = vmatpush1.bf16.msra.mxu0 %v1086_v7  ;;  %741 = vmatprep.subr.bf16.mxu1 %v1114_v17  ;;  %v1107_v31 = vld [vmem:[%s1239_s6 + $0x80] ss:$8 sps:$4 sm:$0xff]   ;;  %v1138_v32 = vld [vmem:[%s1239_s6 + $0x164] ss:$8 sps:$4 sm:$0xff]   ;;  %v1111_v33 = vld [vmem:[%s1239_s6 + $0x94] ss:$8 sps:$4 sm:$0xff]  }
  0x23   : > { %702 = vmatprep.subr.bf16.mxu0 %v1087_v8  ;;  %v395_v34 = vld [vmem:[%s1234_s27] sm:$0xff]  ;;  %v1113_v37 = vld [vmem:[%s1239_s6 + $0x90] ss:$8 sps:$4 sm:$0xff]   ;;  %v1144_v38 = vld [vmem:[%s1239_s6 + $0x174] ss:$8 sps:$4 sm:$0xff]   ;;  %v791_v5 = vshrl.u32 (!%p1044_p7), %v790_v4, 7 }
  0x24   : > { %v994_v35 = vcombine.high %v395_v34, %v395_v34  ;;  %v1140_v36 = vld [vmem:[%s1239_s6 + $0x160] ss:$8 sps:$4 sm:$0xff]   ;;  %v1117_v39 = vld [vmem:[%s1239_s6 + $0xa4] ss:$8 sps:$4 sm:$0xff]   ;;  %v1146_v40 = vld [vmem:[%s1239_s6 + $0x170] ss:$8 sps:$4 sm:$0xff]   ;;  %v993_v53 = vcombine.low %v395_v34, %v395_v34 }
  0x25   : > { %742 = vmatpush1.bf16.msra.mxu1 %v1116_v18  ;;  %v1119_v41 = vld [vmem:[%s1239_s6 + $0xa0] ss:$8 sps:$4 sm:$0xff]   ;;  %v1123_v42 = vld [vmem:[%s1239_s6 + $0xb4] ss:$8 sps:$4 sm:$0xff]   ;;  %v1125_v44 = vld [vmem:[%s1239_s6 + $0xb0] ss:$8 sps:$4 sm:$0xff]  }
  0x26   : > { %703 = vmatpush1.bf16.msra.mxu0 %v1089_v9  ;;  %743 = vmatprep.subr.bf16.mxu1 %v1120_v20  ;;  %v1150_v43 = vld [vmem:[%s1234_s27 + $0x8] ss:$0 sps:$4 sm:$0xff]   ;;  %v1129_v45 = vld [vmem:[%s1239_s6 + $0xc4] ss:$8 sps:$4 sm:$0xff]   ;;  %v1135_v47 = vld [vmem:[%s1239_s6 + $0xd4] ss:$8 sps:$4 sm:$0xff]  }
  0x27   : > { %704 = vmatprep.subr.bf16.mxu0 %v1090_v12  ;;  %728 = vmatprep.mubr.bf16.mxu0 %v994_v35  ;;  %v1131_v46 = vld [vmem:[%s1239_s6 + $0xc0] ss:$8 sps:$4 sm:$0xff]   ;;  %v1137_v48 = vld [vmem:[%s1239_s6 + $0xd0] ss:$8 sps:$4 sm:$0xff]   ;;  %v1141_v49 = vld [vmem:[%s1239_s6 + $0xe4] ss:$8 sps:$4 sm:$0xff]  }
  0x28   : > { %v1143_v50 = vld [vmem:[%s1239_s6 + $0xe0] ss:$8 sps:$4 sm:$0xff]   ;;  %v1147_v51 = vld [vmem:[%s1239_s6 + $0xf4] ss:$8 sps:$4 sm:$0xff]   ;;  %v1149_v52 = vld [vmem:[%s1239_s6 + $0xf0] ss:$8 sps:$4 sm:$0xff]  }
  0x29   : > { %744 = vmatpush1.bf16.msra.mxu1 %v1122_v22  ;;  %v393_v58 = vld [vmem:[#allocation2] sm:$0xff]  ;;  %v394_v61 = vld [vmem:[#allocation2 + $0x8] sm:$0xff]  ;;  %v792_v8 = vsub.s32 (!%p1044_p7), 0, %v791_v5  ;;  %v796_v9 = vsub.s32 (!%p1044_p7), 1, %v791_v5 }
  0x2a   : > { %705 = vmatpush1.bf16.msra.mxu0 %v1092_v15  ;;  %745 = vmatprep.subr.bf16.mxu1 %v1126_v24  ;;  %v788_v6 = vld [vmem:[%s1316_s2] sm:$0x3] (!%p1044_p7) }
  0x2b   : > { %706 = vmatprep.subr.bf16.mxu0 %v1093_v16  ;;  %v802_v7 = vld [vmem:[%s1317_s3] sm:$0x3] (!%p1044_p7)  ;;  %v793_v13 = vrot.slane (!%p1044_p7), %v788_v6, %v792_v8  ;;  %v797_v14 = vrot.slane (!%p1044_p7), %v788_v6, %v796_v9 }
  0x2c   : > { %v816_v12 = vld [vmem:[%s1318_s4] sm:$0xff] (!%p1044_p7)  ;;  %v807_v15 = vrot.slane (!%p1044_p7), %v802_v7, %v792_v8  ;;  %v811_v16 = vrot.slane (!%p1044_p7), %v802_v7, %v796_v9 }
  0x2d   : > { %746 = vmatpush1.bf16.msra.mxu1 %v1128_v26  ;;  %v818_v20 = vunpack.c.h.bf16 (!%p1044_p7), %v816_v12 }
  0x2e   : > { %707 = vmatpush1.bf16.msra.mxu0 %v1095_v19  ;;  %747 = vmatprep.subr.bf16.mxu1 %v1132_v28  ;;  %v817_v19 = vunpack.c.l.bf16 (!%p1044_p7), %v816_v12 }
  0x2f   : > { %708 = vmatprep.subr.bf16.mxu0 %v1096_v21 }
  0x31   : > { %748 = vmatpush1.bf16.msra.mxu1 %v1134_v30 }
  0x32   : > { %709 = vmatpush1.bf16.msra.mxu0 %v1098_v23  ;;  %749 = vmatprep.subr.bf16.mxu1 %v1138_v32 }
  0x33   : > { %710 = vmatprep.subr.bf16.mxu0 %v1099_v25 }
  0x35   : > { %750 = vmatpush1.bf16.msra.mxu1 %v1140_v36 }
  0x36   : > { %711 = vmatpush1.bf16.msra.mxu0 %v1101_v27  ;;  %751 = vmatprep.subr.bf16.mxu1 %v1144_v38 }
  0x37   : > { %712 = vmatprep.subr.bf16.mxu0 %v1105_v29 }
  0x39   : > { %752 = vmatpush1.bf16.msra.mxu1 %v1146_v40 }
  0x3a   : > { %713 = vmatpush1.bf16.msra.mxu0 %v1107_v31 }
  0x3b   : > { %714 = vmatprep.subr.bf16.mxu0 %v1111_v33 }
  0x3c   : > { %770 = vmatmul.mubr.bf16.vlgmr.msra.gmra.mrb[0].mxu1 %v1150_v43 }
  0x3e   : > { %715 = vmatpush1.bf16.msra.mxu0 %v1113_v37 }
  0x3f   : > { %716 = vmatprep.subr.bf16.mxu0 %v1117_v39 }
  0x42   : > { %717 = vmatpush1.bf16.msra.mxu0 %v1119_v41 }
  0x43   : > { %718 = vmatprep.subr.bf16.mxu0 %v1123_v42 }
  0x46   : > { %719 = vmatpush1.bf16.msra.mxu0 %v1125_v44 }
  0x47   : > { %720 = vmatprep.subr.bf16.mxu0 %v1129_v45 }
  0x4a   : > { %721 = vmatpush1.bf16.msra.mxu0 %v1131_v46 }
  0x4b   : > { %722 = vmatprep.subr.bf16.mxu0 %v1135_v47 }
  0x4e   : > { %723 = vmatpush1.bf16.msra.mxu0 %v1137_v48 }
  0x4f   : > { %724 = vmatprep.subr.bf16.mxu0 %v1141_v49 }
  0x52   : > { %725 = vmatpush1.bf16.msra.mxu0 %v1143_v50 }
  0x53   : > { %726 = vmatprep.subr.bf16.mxu0 %v1147_v51 }
  0x56   : > { %727 = vmatpush1.bf16.msra.mxu0 %v1149_v52 }
  0x59   : > { %729 = vmatmul.mubr.bf16.vlgmr.msra.gmra.mrb[0].mxu0 %v993_v53 }
 0x10f   : > { %v771_v54 = vpop.f32.mrb[0].mxu1 }
 0x110   : > { %v773_v55 = vpop.f32.mrb[1].mxu1 }
 0x111   : > { %v775_v56 = vpop.f32.mrb[2].mxu1 }
 0x112   : > { %v776_v57 = vpop.f32.mrb[3].mxu1 }
 0x12c   : > { %v730_v59 = vpop.f32.mrb[0].mxu0  ;;  %785 = sbr.rel (%p1044_p7) target bundleno = 325 (0x145), region = 48 }
 0x12d   : > { %v772_v60 = vadd.f32 %v771_v54, %v730_v59  ;;  %v732_v62 = vpop.f32.mrb[1].mxu0 }
 0x12e   : > { %v774_v63 = vadd.f32 %v773_v55, %v732_v62  ;;  %v734_v0 = vpop.f32.mrb[2].mxu0 }
 0x12f   : > { %v778_v1 = vadd.f32 %v772_v60, %v393_v58  ;;  %v735_v2 = vpop.f32.mrb[3].mxu0 }
 0x130   : > { %v779_v3 = vadd.f32 %v774_v63, %v394_v61 }
 0x131   : > { %780 = vst [vmem:[#allocation2] sm:$0xff] %v778_v1 }
 0x132   : > { %781 = vst [vmem:[#allocation2 + $0x8] sm:$0xff] %v779_v3 }
 0x138   : > { %v786_v10 = vld [vmem:[#allocation2] sm:$0xff] }
 0x139   : > { %v787_v11 = vld [vmem:[#allocation2 + $0x8] sm:$0xff]  ;;  %v800_v17 = vmul.f32 %v793_v13, %v786_v10 }
 0x13a   : > { %v801_v18 = vmul.f32 %v797_v14, %v787_v11 }
 0x13b   : > { %v814_v21 = vadd.f32 %v807_v15, %v800_v17 }
 0x13c   : > { %v815_v22 = vadd.f32 %v811_v16, %v801_v18 }
 0x13d   : > { %v819_v23 = vadd.f32 %v817_v19, %v814_v21 }
 0x13e   : > { %v820_v24 = vadd.f32 %v818_v20, %v815_v22 }
 0x13f   : > { %v821_v25 = vmax.f32 %v819_v23, 0.0 }
 0x140   : > { %v822_v26 = vmax.f32 %v820_v24, 0.0 }
 0x142   : > { %v1051_v27 = vpack.c.bf16 %v822_v26, %v821_v25 }
 0x144   : > { %831 = vst [vmem:[%s1319_s5] sm:$0xff] %v1051_v27 }
 0x145 PF: > { %s15_s20 = sadd.s32 1, %s1175_s20   ;;  %s1320_s18 = smov %s1171_s19 }
 0x146   : > { %p12_p8 = scmp.ge.s32.totalorder %s15_s20, 8   ;;  %s1321_s19 = smov %s1323_s21 }
 0x148   :  { %14 = sbr.rel (!%p12_p8) target bundleno = 2 (0x2), region = 90 }

// kernel: _lambda_.28
= control target key start
LH: loop header
LB: loop body
LE: loop exit
PB: predicated region body
PF: predicated region fallthrough
CT: control target
= control target key end

     0   :  { %v257_v1 = vmov 0   ;;  %v175_v18 = vlaneseq  ;;  %s343_s1 = inlined_call_operand.vmem [shape: bf16[128,256], index: 1, kind: input, shape index: {}]   ;;  %s344_s0 = inlined_call_operand.vmem [shape: bf16[8,128], index: 0, kind: input, shape index: {}]   ;;  %s345_s2 = inlined_call_operand.vmem [shape: f32[1,256], index: 2, kind: input, shape index: {}]   ;;  %s346_s3 = inlined_call_operand.vmem [shape: f32[1,256], index: 3, kind: input, shape index: {}]   ;;  %s347_s4 = inlined_call_operand.vmem [shape: bf16[8,256], index: 4, kind: output, shape index: {}]  }
   0x1   :  { %v233_v0 = vld [vmem:[%s343_s1 + $0x4] ss:$8 sps:$4 sm:$0xff]   ;;  %155 = vmatprep.mubr.bf16.mxu0 %v257_v1  ;;  %v235_v2 = vld [vmem:[%s343_s1] ss:$8 sps:$4 sm:$0xff]   ;;  %v236_v3 = vld [vmem:[%s343_s1 + $0x14] ss:$8 sps:$4 sm:$0xff]  }
   0x2   :  { %123 = vmatprep.subr.bf16.mxu0 %v233_v0  ;;  %v238_v4 = vld [vmem:[%s343_s1 + $0x10] ss:$8 sps:$4 sm:$0xff]   ;;  %v239_v5 = vld [vmem:[%s343_s1 + $0x24] ss:$8 sps:$4 sm:$0xff]   ;;  %v241_v6 = vld [vmem:[%s343_s1 + $0x20] ss:$8 sps:$4 sm:$0xff]  }
   0x3   :  { %124 = vmatpush1.bf16.msra.mxu0 %v235_v2  ;;  %v242_v7 = vld [vmem:[%s343_s1 + $0x34] ss:$8 sps:$4 sm:$0xff]   ;;  %v244_v8 = vld [vmem:[%s343_s1 + $0x30] ss:$8 sps:$4 sm:$0xff]   ;;  %v245_v9 = vld [vmem:[%s343_s1 + $0x44] ss:$8 sps:$4 sm:$0xff]  }
   0x4   :  { %125 = vmatprep.subr.bf16.mxu0 %v236_v3  ;;  %v247_v10 = vld [vmem:[%s343_s1 + $0x40] ss:$8 sps:$4 sm:$0xff]   ;;  %v248_v11 = vld [vmem:[%s343_s1 + $0x54] ss:$8 sps:$4 sm:$0xff]   ;;  %v250_v12 = vld [vmem:[%s343_s1 + $0x50] ss:$8 sps:$4 sm:$0xff]  }
   0x5   :  { %v251_v13 = vld [vmem:[%s343_s1 + $0x64] ss:$8 sps:$4 sm:$0xff]   ;;  %v253_v14 = vld [vmem:[%s343_s1 + $0x60] ss:$8 sps:$4 sm:$0xff]   ;;  %v254_v15 = vld [vmem:[%s343_s1 + $0x74] ss:$8 sps:$4 sm:$0xff]  }
   0x6   :  { %v256_v16 = vld [vmem:[%s343_s1 + $0x70] ss:$8 sps:$4 sm:$0xff]   ;;  %v26_v17 = vld [vmem:[%s344_s0] sm:$0xf]  ;;  %v176_v19 = vshrl.u32 %v175_v18, 7 }
   0x7   :  { %126 = vmatpush1.bf16.msra.mxu0 %v238_v4  ;;  %v173_v21 = vld [vmem:[%s345_s2] sm:$0x3] }
   0x8   :  { %127 = vmatprep.subr.bf16.mxu0 %v239_v5  ;;  %v177_v20 = vsub.s32 0, %v176_v19  ;;  %v181_v22 = vsub.s32 1, %v176_v19  ;;  %v187_v23 = vld [vmem:[%s346_s3] sm:$0x3] }
   0xa   :  { %v178_v24 = vrot.slane %v173_v21, %v177_v20  ;;  %v182_v25 = vrot.slane %v173_v21, %v181_v22  ;;  %v192_v26 = vrot.slane %v187_v23, %v177_v20  ;;  %v196_v28 = vrot.slane %v187_v23, %v181_v22 }
   0xb   :  { %128 = vmatpush1.bf16.msra.mxu0 %v241_v6 }
   0xc   :  { %129 = vmatprep.subr.bf16.mxu0 %v242_v7 }
   0xf   :  { %130 = vmatpush1.bf16.msra.mxu0 %v244_v8 }
  0x10   :  { %131 = vmatprep.subr.bf16.mxu0 %v245_v9 }
  0x13   :  { %132 = vmatpush1.bf16.msra.mxu0 %v247_v10 }
  0x14   :  { %133 = vmatprep.subr.bf16.mxu0 %v248_v11 }
  0x17   :  { %134 = vmatpush1.bf16.msra.mxu0 %v250_v12 }
  0x18   :  { %135 = vmatprep.subr.bf16.mxu0 %v251_v13 }
  0x1b   :  { %136 = vmatpush1.bf16.msra.mxu0 %v253_v14 }
  0x1c   :  { %137 = vmatprep.subr.bf16.mxu0 %v254_v15 }
  0x1f   :  { %138 = vmatpush1.bf16.msra.mxu0 %v256_v16 }
  0x22   :  { %156 = vmatmul.mubr.bf16.vlgmr.msra.gmra.mrb[0].mxu0 %v26_v17 }
  0xf5   :  { %v157_v27 = vpop.f32.mrb[0].mxu0 }
  0xf6   :  { %v185_v29 = vmul.f32 %v178_v24, %v157_v27  ;;  %v159_v30 = vpop.f32.mrb[1].mxu0 }
  0xf7   :  { %v186_v31 = vmul.f32 %v182_v25, %v159_v30  ;;  %v161_v32 = vpop.f32.mrb[2].mxu0 }
  0xf8   :  { %v199_v33 = vadd.f32 %v192_v26, %v185_v29  ;;  %v162_v34 = vpop.f32.mrb[3].mxu0 }
  0xf9   :  { %v200_v35 = vadd.f32 %v196_v28, %v186_v31 }
  0xfb   :  { %v231_v36 = vpack.c.bf16 %v200_v35, %v199_v33 }
  0xfd   :  { %209 = vst [vmem:[%s347_s4] sm:$0xff] %v231_v36 }

// kernel: _lambda_.30
= control target key start
LH: loop header
LB: loop body
LE: loop exit
PB: predicated region body
PF: predicated region fallthrough
CT: control target
= control target key end

     0   :  { %s1114_s15 = smov 0   ;;  %s1116_s16 = smov 0   ;;  %s1216_s0 = inlined_call_operand.vmem [shape: bf16[8,2304], index: 0, kind: input, shape index: {}]   ;;  %s1217_s1 = inlined_call_operand.vmem [shape: bf16[2304,256], index: 1, kind: input, shape index: {}]   ;;  %s1218_s2 = inlined_call_operand.vmem [shape: f32[1,256], index: 2, kind: input, shape index: {}]   ;;  %s1219_s3 = inlined_call_operand.vmem [shape: f32[1,256], index: 3, kind: input, shape index: {}]   ;;  %s1220_s4 = inlined_call_operand.vmem [shape: bf16[8,256], index: 4, kind: output, shape index: {}]  }
   0x1   :  { %s1118_s17 = smov 0  }
   0x2 LB: > { %s26_s18 = sadd.s32 1, %s1081_s16  ;;  %p898_p0 = scmp.ge.s32.totalorder %s1085_s17, 1  ;;  %s1085_s17 = sphi %s1118_s17, %s14_s17   ;;  %s1081_s16 = sphi %s1116_s16, %s1222_s16   ;;  %s1077_s15 = sphi %s1114_s15, %s1221_s15  }
   0x3   : > { %p27_p1 = scmp.ge.s32.totalorder %s26_s18, 6  ;;  %p229_p2 = scmp.lt.s32.totalorder %s1085_s17, 7 }
   0x5   : > { %s1224_s18 = smov (%p27_p1, %s26_s18), 0  ;;  %p230_p3 = pnand %p898_p0, %p229_p2 }
   0x6   : > { %s281_s19 = smul.u32 (!%p230_p3), 3, %s1077_s15  ;;  %p902_p6 = scmp.ne.s32.totalorder (!%p230_p3), %s1077_s15, 0 }
   0x7   : > { %233 = sbr.rel (%p230_p3) target bundleno = 323 (0x143), region = 36 }
   0x8   : > { %s291_s20 = smul.u32 (!%p230_p3), 48, %s1077_s15  ;;  %p284_p4 = scmp.lt.s32.totalorder (!%p230_p3), %s281_s19, 17 }
   0xa   : > { %p293_p5 = scmp.lt.s32.totalorder (!%p230_p3), %s291_s20, 287 }
   0xe   : > { %s1226_s19 = smov (!%p284_p4, %s281_s19), 17  ;;  %s1228_s20 = smov (!%p293_p5, %s291_s20), 287 }
   0xf   : > { %s899_s21 = sshll.u32 %s1226_s19, 2  ;;  %s960_s25 = sshll.u32 %s1228_s20, 3  ;;  %v1087_v0 = vmov (!%p902_p6), 0.0  }
  0x10   : > { %s1139_s24 = scalar_lea.vmem %s1216_s0, %s899_s21  ;;  %s1144_s28 = scalar_lea.vmem %s1217_s1, %s960_s25  ;;  %328 = vst [vmem:[#allocation2] sm:$0xff] (!%p902_p6), %v1087_v0  ;;  %329 = vst [vmem:[#allocation2 + $0x8] sm:$0xff] (!%p902_p6), %v1087_v0 }
  0x11   : > { %327 = sbr.rel (%p902_p6) target bundleno = 24 (0x18), region = 40 }
  0x18 PF: > { %v988_v1 = vld [vmem:[%s1144_s28 + $0x4] ss:$8 sps:$4 sm:$0xff]   ;;  %v990_v2 = vld [vmem:[%s1144_s28] ss:$8 sps:$4 sm:$0xff]   ;;  %v1088_v3 = vmov 0   ;;  %p954_p7 = scmp.ne.s32.totalorder %s1077_s15, 5 }
  0x19   : > { %706 = vmatprep.mubr.bf16.mxu1 %v1088_v3  ;;  %633 = vmatprep.subr.bf16.mxu0 %v988_v1  ;;  %v991_v4 = vld [vmem:[%s1144_s28 + $0x14] ss:$8 sps:$4 sm:$0xff]   ;;  %v993_v5 = vld [vmem:[%s1144_s28 + $0x10] ss:$8 sps:$4 sm:$0xff]   ;;  %v994_v6 = vld [vmem:[%s1144_s28 + $0x24] ss:$8 sps:$4 sm:$0xff]  }
  0x1a   : > { %634 = vmatpush1.bf16.msra.mxu0 %v990_v2  ;;  %v996_v7 = vld [vmem:[%s1144_s28 + $0x20] ss:$8 sps:$4 sm:$0xff]   ;;  %v997_v8 = vld [vmem:[%s1144_s28 + $0x34] ss:$8 sps:$4 sm:$0xff]   ;;  %v999_v9 = vld [vmem:[%s1144_s28 + $0x30] ss:$8 sps:$4 sm:$0xff]  }
  0x1b   : > { %635 = vmatprep.subr.bf16.mxu0 %v991_v4  ;;  %v1012_v10 = vld [vmem:[%s1144_s28 + $0x104] ss:$8 sps:$4 sm:$0xff]   ;;  %v1014_v11 = vld [vmem:[%s1144_s28 + $0x100] ss:$8 sps:$4 sm:$0xff]   ;;  %v1018_v13 = vld [vmem:[%s1144_s28 + $0x114] ss:$8 sps:$4 sm:$0xff]   ;;  %v727_v4 = vlaneseq (!%p954_p7) }
  0x1c   : > { %v1000_v12 = vld [vmem:[%s1144_s28 + $0x44] ss:$8 sps:$4 sm:$0xff]   ;;  %674 = vmatprep.subr.bf16.mxu1 %v1012_v10  ;;  %v1020_v14 = vld [vmem:[%s1144_s28 + $0x110] ss:$8 sps:$4 sm:$0xff]   ;;  %v1002_v15 = vld [vmem:[%s1144_s28 + $0x40] ss:$8 sps:$4 sm:$0xff]  }
  0x1d   : > { %675 = vmatpush1.bf16.msra.mxu1 %v1014_v11  ;;  %v1003_v16 = vld [vmem:[%s1144_s28 + $0x54] ss:$8 sps:$4 sm:$0xff]   ;;  %v1024_v17 = vld [vmem:[%s1144_s28 + $0x124] ss:$8 sps:$4 sm:$0xff]   ;;  %v1026_v18 = vld [vmem:[%s1144_s28 + $0x120] ss:$8 sps:$4 sm:$0xff]  }
  0x1e   : > { %636 = vmatpush1.bf16.msra.mxu0 %v993_v5  ;;  %676 = vmatprep.subr.bf16.mxu1 %v1018_v13  ;;  %v1005_v19 = vld [vmem:[%s1144_s28 + $0x50] ss:$8 sps:$4 sm:$0xff]   ;;  %v1030_v20 = vld [vmem:[%s1144_s28 + $0x134] ss:$8 sps:$4 sm:$0xff]   ;;  %v1006_v21 = vld [vmem:[%s1144_s28 + $0x64] ss:$8 sps:$4 sm:$0xff]  }
  0x1f   : > { %637 = vmatprep.subr.bf16.mxu0 %v994_v6  ;;  %v1032_v22 = vld [vmem:[%s1144_s28 + $0x130] ss:$8 sps:$4 sm:$0xff]   ;;  %v1008_v23 = vld [vmem:[%s1144_s28 + $0x60] ss:$8 sps:$4 sm:$0xff]   ;;  %v1036_v24 = vld [vmem:[%s1144_s28 + $0x144] ss:$8 sps:$4 sm:$0xff]  }
  0x20   : > { %v1009_v25 = vld [vmem:[%s1144_s28 + $0x74] ss:$8 sps:$4 sm:$0xff]   ;;  %v1038_v26 = vld [vmem:[%s1144_s28 + $0x140] ss:$8 sps:$4 sm:$0xff]   ;;  %v1011_v27 = vld [vmem:[%s1144_s28 + $0x70] ss:$8 sps:$4 sm:$0xff]  }
  0x21   : > { %677 = vmatpush1.bf16.msra.mxu1 %v1020_v14  ;;  %v1042_v28 = vld [vmem:[%s1144_s28 + $0x154] ss:$8 sps:$4 sm:$0xff]   ;;  %v1015_v29 = vld [vmem:[%s1144_s28 + $0x84] ss:$8 sps:$4 sm:$0xff]   ;;  %v1044_v30 = vld [vmem:[%s1144_s28 + $0x150] ss:$8 sps:$4 sm:$0xff]  }
  0x22   : > { %638 = vmatpush1.bf16.msra.mxu0 %v996_v7  ;;  %678 = vmatprep.subr.bf16.mxu1 %v1024_v17  ;;  %v1017_v31 = vld [vmem:[%s1144_s28 + $0x80] ss:$8 sps:$4 sm:$0xff]   ;;  %v1048_v32 = vld [vmem:[%s1144_s28 + $0x164] ss:$8 sps:$4 sm:$0xff]   ;;  %v1021_v33 = vld [vmem:[%s1144_s28 + $0x94] ss:$8 sps:$4 sm:$0xff]  }
  0x23   : > { %639 = vmatprep.subr.bf16.mxu0 %v997_v8  ;;  %v332_v34 = vld [vmem:[%s1139_s24] sm:$0xff]  ;;  %v1023_v37 = vld [vmem:[%s1144_s28 + $0x90] ss:$8 sps:$4 sm:$0xff]   ;;  %v1054_v38 = vld [vmem:[%s1144_s28 + $0x174] ss:$8 sps:$4 sm:$0xff]   ;;  %v728_v5 = vshrl.u32 (!%p954_p7), %v727_v4, 7 }
  0x24   : > { %v904_v35 = vcombine.high %v332_v34, %v332_v34  ;;  %v1050_v36 = vld [vmem:[%s1144_s28 + $0x160] ss:$8 sps:$4 sm:$0xff]   ;;  %v1027_v39 = vld [vmem:[%s1144_s28 + $0xa4] ss:$8 sps:$4 sm:$0xff]   ;;  %v1056_v40 = vld [vmem:[%s1144_s28 + $0x170] ss:$8 sps:$4 sm:$0xff]   ;;  %v903_v53 = vcombine.low %v332_v34, %v332_v34 }
  0x25   : > { %679 = vmatpush1.bf16.msra.mxu1 %v1026_v18  ;;  %v1029_v41 = vld [vmem:[%s1144_s28 + $0xa0] ss:$8 sps:$4 sm:$0xff]   ;;  %v1033_v42 = vld [vmem:[%s1144_s28 + $0xb4] ss:$8 sps:$4 sm:$0xff]   ;;  %v1035_v44 = vld [vmem:[%s1144_s28 + $0xb0] ss:$8 sps:$4 sm:$0xff]  }
  0x26   : > { %640 = vmatpush1.bf16.msra.mxu0 %v999_v9  ;;  %680 = vmatprep.subr.bf16.mxu1 %v1030_v20  ;;  %v1060_v43 = vld [vmem:[%s1139_s24 + $0x8] ss:$0 sps:$4 sm:$0xff]   ;;  %v1039_v45 = vld [vmem:[%s1144_s28 + $0xc4] ss:$8 sps:$4 sm:$0xff]   ;;  %v1045_v47 = vld [vmem:[%s1144_s28 + $0xd4] ss:$8 sps:$4 sm:$0xff]  }
  0x27   : > { %641 = vmatprep.subr.bf16.mxu0 %v1000_v12  ;;  %665 = vmatprep.mubr.bf16.mxu0 %v904_v35  ;;  %v1041_v46 = vld [vmem:[%s1144_s28 + $0xc0] ss:$8 sps:$4 sm:$0xff]   ;;  %v1047_v48 = vld [vmem:[%s1144_s28 + $0xd0] ss:$8 sps:$4 sm:$0xff]   ;;  %v1051_v49 = vld [vmem:[%s1144_s28 + $0xe4] ss:$8 sps:$4 sm:$0xff]  }
  0x28   : > { %v1053_v50 = vld [vmem:[%s1144_s28 + $0xe0] ss:$8 sps:$4 sm:$0xff]   ;;  %v1057_v51 = vld [vmem:[%s1144_s28 + $0xf4] ss:$8 sps:$4 sm:$0xff]   ;;  %v1059_v52 = vld [vmem:[%s1144_s28 + $0xf0] ss:$8 sps:$4 sm:$0xff]  }
  0x29   : > { %681 = vmatpush1.bf16.msra.mxu1 %v1032_v22  ;;  %v330_v58 = vld [vmem:[#allocation2] sm:$0xff]  ;;  %v331_v61 = vld [vmem:[#allocation2 + $0x8] sm:$0xff]  ;;  %v729_v8 = vsub.s32 (!%p954_p7), 0, %v728_v5  ;;  %v733_v9 = vsub.s32 (!%p954_p7), 1, %v728_v5 }
  0x2a   : > { %642 = vmatpush1.bf16.msra.mxu0 %v1002_v15  ;;  %682 = vmatprep.subr.bf16.mxu1 %v1036_v24  ;;  %v725_v6 = vld [vmem:[%s1218_s2] sm:$0x3] (!%p954_p7) }
  0x2b   : > { %643 = vmatprep.subr.bf16.mxu0 %v1003_v16  ;;  %v739_v7 = vld [vmem:[%s1219_s3] sm:$0x3] (!%p954_p7)  ;;  %v730_v12 = vrot.slane (!%p954_p7), %v725_v6, %v729_v8  ;;  %v734_v13 = vrot.slane (!%p954_p7), %v725_v6, %v733_v9 }
  0x2c   : > { %v744_v14 = vrot.slane (!%p954_p7), %v739_v7, %v729_v8  ;;  %v748_v15 = vrot.slane (!%p954_p7), %v739_v7, %v733_v9 }
  0x2d   : > { %683 = vmatpush1.bf16.msra.mxu1 %v1038_v26 }
  0x2e   : > { %644 = vmatpush1.bf16.msra.mxu0 %v1005_v19  ;;  %684 = vmatprep.subr.bf16.mxu1 %v1042_v28 }
  0x2f   : > { %645 = vmatprep.subr.bf16.mxu0 %v1006_v21 }
  0x31   : > { %685 = vmatpush1.bf16.msra.mxu1 %v1044_v30 }
  0x32   : > { %646 = vmatpush1.bf16.msra.mxu0 %v1008_v23  ;;  %686 = vmatprep.subr.bf16.mxu1 %v1048_v32 }
  0x33   : > { %647 = vmatprep.subr.bf16.mxu0 %v1009_v25 }
  0x35   : > { %687 = vmatpush1.bf16.msra.mxu1 %v1050_v36 }
  0x36   : > { %648 = vmatpush1.bf16.msra.mxu0 %v1011_v27  ;;  %688 = vmatprep.subr.bf16.mxu1 %v1054_v38 }
  0x37   : > { %649 = vmatprep.subr.bf16.mxu0 %v1015_v29 }
  0x39   : > { %689 = vmatpush1.bf16.msra.mxu1 %v1056_v40 }
  0x3a   : > { %650 = vmatpush1.bf16.msra.mxu0 %v1017_v31 }
  0x3b   : > { %651 = vmatprep.subr.bf16.mxu0 %v1021_v33 }
  0x3c   : > { %707 = vmatmul.mubr.bf16.vlgmr.msra.gmra.mrb[0].mxu1 %v1060_v43 }
  0x3e   : > { %652 = vmatpush1.bf16.msra.mxu0 %v1023_v37 }
  0x3f   : > { %653 = vmatprep.subr.bf16.mxu0 %v1027_v39 }
  0x42   : > { %654 = vmatpush1.bf16.msra.mxu0 %v1029_v41 }
  0x43   : > { %655 = vmatprep.subr.bf16.mxu0 %v1033_v42 }
  0x46   : > { %656 = vmatpush1.bf16.msra.mxu0 %v1035_v44 }
  0x47   : > { %657 = vmatprep.subr.bf16.mxu0 %v1039_v45 }
  0x4a   : > { %658 = vmatpush1.bf16.msra.mxu0 %v1041_v46 }
  0x4b   : > { %659 = vmatprep.subr.bf16.mxu0 %v1045_v47 }
  0x4e   : > { %660 = vmatpush1.bf16.msra.mxu0 %v1047_v48 }
  0x4f   : > { %661 = vmatprep.subr.bf16.mxu0 %v1051_v49 }
  0x52   : > { %662 = vmatpush1.bf16.msra.mxu0 %v1053_v50 }
  0x53   : > { %663 = vmatprep.subr.bf16.mxu0 %v1057_v51 }
  0x56   : > { %664 = vmatpush1.bf16.msra.mxu0 %v1059_v52 }
  0x59   : > { %666 = vmatmul.mubr.bf16.vlgmr.msra.gmra.mrb[0].mxu0 %v903_v53 }
 0x10f   : > { %v708_v54 = vpop.f32.mrb[0].mxu1 }
 0x110   : > { %v710_v55 = vpop.f32.mrb[1].mxu1 }
 0x111   : > { %v712_v56 = vpop.f32.mrb[2].mxu1 }
 0x112   : > { %v713_v57 = vpop.f32.mrb[3].mxu1 }
 0x12c   : > { %v667_v59 = vpop.f32.mrb[0].mxu0  ;;  %722 = sbr.rel (%p954_p7) target bundleno = 323 (0x143), region = 44 }
 0x12d   : > { %v709_v60 = vadd.f32 %v708_v54, %v667_v59  ;;  %v669_v62 = vpop.f32.mrb[1].mxu0 }
 0x12e   : > { %v711_v63 = vadd.f32 %v710_v55, %v669_v62  ;;  %v671_v0 = vpop.f32.mrb[2].mxu0 }
 0x12f   : > { %v715_v1 = vadd.f32 %v709_v60, %v330_v58  ;;  %v672_v2 = vpop.f32.mrb[3].mxu0 }
 0x130   : > { %v716_v3 = vadd.f32 %v711_v63, %v331_v61 }
 0x131   : > { %717 = vst [vmem:[#allocation2] sm:$0xff] %v715_v1 }
 0x132   : > { %718 = vst [vmem:[#allocation2 + $0x8] sm:$0xff] %v716_v3 }
 0x138   : > { %v723_v10 = vld [vmem:[#allocation2] sm:$0xff] }
 0x139   : > { %v724_v11 = vld [vmem:[#allocation2 + $0x8] sm:$0xff]  ;;  %v737_v16 = vmul.f32 %v730_v12, %v723_v10 }
 0x13a   : > { %v738_v17 = vmul.f32 %v734_v13, %v724_v11 }
 0x13b   : > { %v751_v18 = vadd.f32 %v744_v14, %v737_v16 }
 0x13c   : > { %v752_v19 = vadd.f32 %v748_v15, %v738_v17 }
 0x13d   : > { %v753_v20 = vmax.f32 %v751_v18, 0.0 }
 0x13e   : > { %v754_v21 = vmax.f32 %v752_v19, 0.0 }
 0x140   : > { %v961_v22 = vpack.c.bf16 %v754_v21, %v753_v20 }
 0x142   : > { %763 = vst [vmem:[%s1220_s4] sm:$0xff] %v961_v22 }
 0x143 PF: > { %s14_s17 = sadd.s32 1, %s1085_s17   ;;  %s1221_s15 = smov %s1081_s16 }
 0x144   : > { %p11_p8 = scmp.ge.s32.totalorder %s14_s17, 8   ;;  %s1222_s16 = smov %s1224_s18 }
 0x146   :  { %13 = sbr.rel (!%p11_p8) target bundleno = 2 (0x2), region = 83 }

</bundles_post_ra>
